<compile_context>
chip_gen: v7x
topology: tpu7x:2x2x1
jax: 0.10.0
libtpu: 0.0.40
codegen_flags: <defaults>
</compile_context>

<pallas_src>
import functools

import jax
import jax.numpy as jnp
from jax.experimental import pallas as pl
from jax.experimental.pallas import tpu as pltpu


def _round_up(x, m):
    return (x + m - 1) // m * m


def _cdiv(a, b):
    return (a + b - 1) // b


# ----------------------------- Pallas kernel --------------------------------
def _getd_kernel(cat_ref, sa_ref, sb_ref, sr_ref, sred_ref, w2_ref, ets_ref,
                 xbias_ref, pred_ref, w1_ref, m_ref, l_ref, *, two_pass):
    """One (batch-tile, softmax-phase, entity-tile) step of GETD forward.

    cat   : (tb, cat_pad)    matmul dtype, [r | e2 | e3], eval-BN folded, zero pad.
    sa/sb : (cat_pad, de*de) 0/1 selection: sa[off_e2+a, a*de+b]=1, sb[off_e3+b, .]=1.
    sr    : (cat_pad, dr*de) 0/1 selection: sr[off_r+d, d*de+o]=1.
    sred  : (dr*de, de)      tiled identity: sred[d*de+o, o]=1.
    w2    : (de*de, dr*de)   pre-permuted tensor-ring core, w2[a*de+b, d*de+o].
    ets   : (de, tn)         (E * bnw_scale)^T entity tile (zero-padded cols).
    xbias : (1, tn)          bnw_shift @ E^T, -1e9 on padded entity columns.
    pred  : (tb, tn)         softmax output tile.
    w1/m/l: VMEM scratch (per-batch-tile hidden activation / softmax stats).
    """
    p = pl.program_id(1)          # softmax phase (0: stats, 1: emit) if two_pass
    j = pl.program_id(2)          # entity tile

    # TODO(synk): input_dropout / hidden_dropout are identity (eval mode).

    def compute_w1():
        cat = cat_ref[...]
        # Lane-dense per-sample outer product via constant selection matmuls:
        #   v[i, a*de+b] = e2[i, a] * e3[i, b]
        v = (jnp.dot(cat, sa_ref[...], preferred_element_type=jnp.float32) *
             jnp.dot(cat, sb_ref[...], preferred_element_type=jnp.float32))
        # One deep-K matmul over (a, b)  (K = de*de, N = dr*de):
        #   M[i, d*de+o] = sum_{a,b} e2[i,a] e3[i,b] Wp[d,a,b,o]
        m_mat = jnp.dot(v.astype(w2_ref.dtype), w2_ref[...],
                        preferred_element_type=jnp.float32)
        # Fold the relation embedding back in (replaces dr narrow matmuls and
        # per-d column broadcasts):  w1[i,o] = sum_d r[i,d] * M[i, d*de+o]
        rw = jnp.dot(cat, sr_ref[...], preferred_element_type=jnp.float32)
        w1_ref[...] = jnp.dot((rw * m_mat).astype(sred_ref.dtype),
                              sred_ref[...],
                              preferred_element_type=jnp.float32)

    if two_pass:
        @pl.when(jnp.logical_and(p == 0, j == 0))
        def _():
            compute_w1()
            m_ref[...] = jnp.full(m_ref.shape, -jnp.inf, m_ref.dtype)
            l_ref[...] = jnp.zeros(l_ref.shape, l_ref.dtype)
    else:
        compute_w1()

    # Entity-tile logits: x = bnw(W_mat1) @ E^T  (bnw folded into ets / xbias).
    x = jnp.dot(w1_ref[...].astype(ets_ref.dtype), ets_ref[...],
                preferred_element_type=jnp.float32) + xbias_ref[...]

    if two_pass:
        @pl.when(p == 0)                     # pass 1: running row max / sumexp
        def _():
            m_new = jnp.maximum(m_ref[...], jnp.max(x, axis=1, keepdims=True))
            l_ref[...] = (l_ref[...] * jnp.exp(m_ref[...] - m_new)
                          + jnp.sum(jnp.exp(x - m_new), axis=1, keepdims=True))
            m_ref[...] = m_new

        @pl.when(p == 1)                     # pass 2: normalized tile emit
        def _():
            pred_ref[...] = (jnp.exp(x - m_ref[...])
                             * pl.reciprocal(l_ref[...], approx=True)
                             ).astype(pred_ref.dtype)
    else:
        xs = x - jnp.max(x, axis=1, keepdims=True)
        ex = jnp.exp(xs)
        pred_ref[...] = (ex * pl.reciprocal(jnp.sum(ex, axis=1, keepdims=True),
                                            approx=True)).astype(pred_ref.dtype)


# ------------------------------ glue helpers ---------------------------------
def _bn_scale_shift(dim, eps=1e-5):
    # TODO(synk): trained BatchNorm gamma/beta/running stats must be plumbed
    # through here; identity (fresh-module) eval-mode stats are used below.
    gamma = jnp.ones((1, dim), jnp.float32)
    beta = jnp.zeros((1, dim), jnp.float32)
    running_mean = jnp.zeros((1, dim), jnp.float32)
    running_var = jnp.ones((1, dim), jnp.float32)
    scale = gamma / jnp.sqrt(running_var + eps)
    shift = beta - running_mean * scale
    return scale, shift


def _vmem_limit_bytes():
    cap = 128 * 1024 * 1024
    try:  # generation-aware: ~32 MiB on v7x (64 MiB VMEM/TC), 64 MiB on v5e/v6e
        cap = int(getattr(pltpu.get_tpu_info(), "vmem_capacity_bytes", cap))
    except Exception:
        pass
    return max(16 * 1024 * 1024, min(64 * 1024 * 1024, cap // 2))


# ------------------------------ wrapper --------------------------------------
def getd_forward(E, R, Zlist, r_idx, e_idx, miss_ent_domain, tb=128,
                 tn_max=2048, matmul_dtype=jnp.bfloat16, out_dtype=jnp.float32):
    """GETD forward (ary == 3, k == 4).  Returns (pred, W).

    matmul_dtype=jnp.float32 is the exactness escape hatch; out_dtype can be
    set to bfloat16 to halve the output writeback if downstream tolerates it.
    """
    ne, de = E.shape
    nr, dr = R.shape
    de2 = de * de

    # --- tensor-ring reconstruction of the core W (glue) ---
    W0 = jnp.einsum('aib,bjc,ckd,dla->ijkl', *Zlist)
    W = W0.reshape(dr, de, de, de)                    # W[d, j, k, l]

    # Permute so axes are (d, e2-axis, e3-axis, out-axis), matching the torch
    # einsum for each miss_ent_domain.
    if miss_ent_domain == 1:      # 'ijkl,il,ik->ij' : e2<->k, e3<->l, out=j
        perm = (0, 2, 3, 1)
    elif miss_ent_domain == 2:    # 'ijkl,il,ij->ik' : e2<->j, e3<->l, out=k
        perm = (0, 1, 3, 2)
    elif miss_ent_domain == 3:    # 'ijkl,ij,ik->il' : e2<->j, e3<->k, out=l
        perm = (0, 1, 2, 3)
    else:
        raise ValueError('miss_ent_domain must be 1, 2 or 3')
    Wp = jnp.transpose(W, perm)                                  # (d, a, b, o)
    W2 = jnp.transpose(Wp, (1, 2, 0, 3)).reshape(de2, dr * de).astype(matmul_dtype)

    # --- eval-mode BatchNorms folded in glue ---
    bnr_s, bnr_b = _bn_scale_shift(dr)
    bne_s, bne_b = _bn_scale_shift(de)
    bnw_s, bnw_b = _bn_scale_shift(de)

    r_emb = R[r_idx] * bnr_s + bnr_b                  # (B, dr)
    e2_emb = E[e_idx[0]] * bne_s + bne_b              # (B, de)
    e3_emb = E[e_idx[1]] * bne_s + bne_b              # (B, de)
    B = r_emb.shape[0]

    # --- batch tiling: >=2 grid steps so both v7x TensorCores get work ---
    tb = max(8, min(tb, _round_up(_cdiv(B, 2), 8)))
    Bp = _round_up(B, tb)

    # --- one lane-dense [r | e2 | e3] input block (single DMA per step) ---
    cat_dim = dr + 2 * de
    cat_pad = _round_up(cat_dim, 128)
    cat = jnp.concatenate([r_emb, e2_emb, e3_emb], axis=1)
    cat = jnp.pad(cat, ((0, Bp - B), (0, cat_pad - cat_dim))).astype(matmul_dtype)

    # --- constant 0/1 selection matrices (exact in bf16) ---
    off_r, off_e2, off_e3 = 0, dr, dr + de
    rows = jnp.arange(cat_pad)[:, None]
    col_ab = jnp.arange(de2)[None, :]
    col_do = jnp.arange(dr * de)[None, :]
    SaP = (rows - off_e2 == col_ab // de).astype(matmul_dtype)   # (cat_pad, de2)
    SbP = (rows - off_e3 == col_ab % de).astype(matmul_dtype)    # (cat_pad, de2)
    SrP = (rows - off_r == col_do // de).astype(matmul_dtype)    # (cat_pad, dr*de)
    Sred = jnp.tile(jnp.eye(de, dtype=matmul_dtype), (dr, 1))    # (dr*de, de)

    # --- entity tiling (lane-dense output, bounded VMEM for big vocabularies)
    tn = min(_round_up(ne, 128), tn_max)
    ne_pad = _round_up(ne, tn)
    nnj = ne_pad // tn
    two_pass = nnj > 1            # two-pass softmax only when ne is tiled

    # bnw folded into the second matmul:
    #   x = (w1*s + b) @ E^T  ==  w1 @ (E*s)^T + (b @ E^T)
    ETs = jnp.zeros((de, ne_pad), matmul_dtype)
    ETs = ETs.at[:, :ne].set((E * bnw_s).T.astype(matmul_dtype))
    xbias = jnp.full((1, ne_pad), -1e9, jnp.float32)
    xbias = xbias.at[:, :ne].set(bnw_b @ E.T)

    kernel = functools.partial(_getd_kernel, two_pass=two_pass)
    grid = (Bp // tb, 2 if two_pass else 1, nnj)

    def run(single_buffer):
        def inv_spec(shape):
            imap = lambda i, p, j: (0, 0)
            if single_buffer:
                # grid-invariant operands only need one VMEM buffer
                return pl.BlockSpec(shape, imap, pipeline_mode=pl.Buffered(1))
            return pl.BlockSpec(shape, imap)

        in_specs = [
            pl.BlockSpec((tb, cat_pad), lambda i, p, j: (i, 0)),   # [r|e2|e3]
            inv_spec((cat_pad, de2)),                              # SaP
            inv_spec((cat_pad, de2)),                              # SbP
            inv_spec((cat_pad, dr * de)),                          # SrP
            inv_spec((dr * de, de)),                               # Sred
            inv_spec((de2, dr * de)),                              # W2
            pl.BlockSpec((de, tn), lambda i, p, j: (0, j)),        # (E*s)^T tile
            pl.BlockSpec((1, tn), lambda i, p, j: (0, j)),         # logit bias
        ]
        # Output index (i, p*j): during the stats phase the output block stays
        # resident (never written back), so no garbage ever reaches HBM and the
        # only writebacks are the phase-1 lane-dense tiles.
        out_spec = pl.BlockSpec((tb, tn), lambda i, p, j: (i, p * j))

        return pl.pallas_call(
            kernel,
            out_shape=jax.ShapeDtypeStruct((Bp, ne_pad), out_dtype),
            grid_spec=pltpu.PrefetchScalarGridSpec(
                num_scalar_prefetch=0,
                grid=grid,
                in_specs=in_specs,
                out_specs=out_spec,
                scratch_shapes=[pltpu.VMEM((tb, de), jnp.float32),   # w1
                                pltpu.VMEM((tb, 1), jnp.float32),    # row max
                                pltpu.VMEM((tb, 1), jnp.float32)]),  # row sumexp
            compiler_params=pltpu.CompilerParams(
                dimension_semantics=("parallel", "arbitrary", "arbitrary"),
                vmem_limit_bytes=_vmem_limit_bytes()),
        )(cat, SaP, SbP, SrP, Sred, W2, ETs, xbias)

    try:
        pred = run(single_buffer=True)
    except Exception:
        # pl.Buffered(1) unsupported on this jax/libtpu -> default buffering.
        pred = run(single_buffer=False)

    return pred[:B, :ne], W


# --------------------------- pure-JAX reference ------------------------------
def getd_reference(E, R, Zlist, r_idx, e_idx, miss_ent_domain):
    ne, de = E.shape
    nr, dr = R.shape
    W0 = jnp.einsum('aib,bjc,ckd,dla->ijkl', *Zlist)
    W = W0.reshape(dr, de, de, de)

    bnr_s, bnr_b = _bn_scale_shift(dr)
    bne_s, bne_b = _bn_scale_shift(de)
    bnw_s, bnw_b = _bn_scale_shift(de)

    r = R[r_idx] * bnr_s + bnr_b
    W_mat = (r @ W.reshape(dr, -1)).reshape(-1, de, de, de)
    e2 = E[e_idx[0]] * bne_s + bne_b
    e3 = E[e_idx[1]] * bne_s + bne_b
    if miss_ent_domain == 1:
        W_mat1 = jnp.einsum('ijkl,il,ik->ij', W_mat, e3, e2)
    elif miss_ent_domain == 2:
        W_mat1 = jnp.einsum('ijkl,il,ij->ik', W_mat, e3, e2)
    else:
        W_mat1 = jnp.einsum('ijkl,ij,ik->il', W_mat, e2, e3)
    W_mat1 = W_mat1 * bnw_s + bnw_b
    x = W_mat1 @ E.T
    return jax.nn.softmax(x, axis=1), W


# ---------------------------------- main --------------------------------------
if __name__ == "__main__":
    def make_inputs(key, ne, nr, de, dr, ni, ranks, k, B):
        k_e, k_r, k_z, k_ri, k_e2, k_e3 = jax.random.split(key, 6)
        # NOTE: larger init scale than the module's 0.001*randn so the
        # comparison exercises non-trivial softmax values.
        E = 0.4 * jax.random.normal(k_e, (ne, de), jnp.float32)
        R = 0.4 * jax.random.normal(k_r, (nr, dr), jnp.float32)
        zkeys = jax.random.split(k_z, k)
        Zlist = [jax.random.uniform(zk, (ranks, ni, ranks), jnp.float32,
                                    minval=-0.4, maxval=0.4) for zk in zkeys]
        r_idx = jax.random.randint(k_ri, (B,), 0, nr)
        e_idx = (jax.random.randint(k_e2, (B,), 0, ne),
                 jax.random.randint(k_e3, (B,), 0, ne))
        return E, R, Zlist, r_idx, e_idx

    def check(pred, pred_ref, B, ne, atol):
        assert pred.shape == (B, ne)
        err = float(jnp.max(jnp.abs(pred - pred_ref)))
        assert bool(jnp.allclose(pred, pred_ref, atol=atol, rtol=2e-2)), err
        assert bool(jnp.allclose(jnp.sum(pred, axis=1), 1.0, atol=1e-2))

    key = jax.random.PRNGKey(0)
    k1, k2 = jax.random.split(key)

    # Shapes consistent with GETD(ary=3, k=4): ni^4 == dr * de^3.
    nr, de, dr, ni, ranks, kk = 16, 16, 16, 16, 4, 4

    # --- test 1: single-pass path (ne fits one lane-dense entity tile) -------
    ne, B = 32, 256                                   # 2 parallel batch steps
    E, R, Zlist, r_idx, e_idx = make_inputs(k1, ne, nr, de, dr, ni, ranks, kk, B)
    pred, _ = getd_forward(E, R, Zlist, r_idx, e_idx, miss_ent_domain=1, tb=128)
    pred = jax.block_until_ready(pred)
    pred_ref, _ = getd_reference(E, R, Zlist, r_idx, e_idx, 1)
    check(pred, pred_ref, B, ne, atol=4e-3)

    # --- test 2: entity-tiled two-pass-softmax path (3 entity tiles) ---------
    ne, B = 320, 96
    E, R, Zlist, r_idx, e_idx = make_inputs(k2, ne, nr, de, dr, ni, ranks, kk, B)
    pred, _ = getd_forward(E, R, Zlist, r_idx, e_idx, miss_ent_domain=2,
                           tb=128, tn_max=128)
    pred = jax.block_until_ready(pred)
    pred_ref, _ = getd_reference(E, R, Zlist, r_idx, e_idx, 2)
    check(pred, pred_ref, B, ne, atol=4e-3)

    print("KERNEL_OK")
</pallas_src>

<mosaic_0001>
module attributes {stable_mosaic.version = 11 : i64} {
  func.func @_getd_kernel(%arg0: i32, %arg1: i32, %arg2: i32, %arg3: memref<128x128xbf16, #tpu.memory_space<vmem>>, %arg4: memref<128x256xbf16, #tpu.memory_space<vmem>>, %arg5: memref<128x256xbf16, #tpu.memory_space<vmem>>, %arg6: memref<128x256xbf16, #tpu.memory_space<vmem>>, %arg7: memref<256x16xbf16, #tpu.memory_space<vmem>>, %arg8: memref<256x256xbf16, #tpu.memory_space<vmem>>, %arg9: memref<16x128xbf16, #tpu.memory_space<vmem>>, %arg10: memref<1x128xf32, #tpu.memory_space<vmem>>, %arg11: memref<128x128xf32, #tpu.memory_space<vmem>>, %arg12: memref<128x16xf32, #tpu.memory_space<vmem>>, %arg13: memref<128x1xf32, #tpu.memory_space<vmem>>, %arg14: memref<128x1xf32, #tpu.memory_space<vmem>>) attributes {dimension_semantics = [#tpu.dimension_semantics<parallel>, #tpu.dimension_semantics<arbitrary>, #tpu.dimension_semantics<arbitrary>], iteration_bounds = array<i64: 2, 1, 1>, scalar_prefetch = 0 : i64, scratch_operands = 3 : i64, tpu.core_type = #tpu.core_type<tc>, window_params = [{transform_indices = @transform_0, window_bounds = array<i64: 128, 128>}, {pipeline_mode = #tpu.pipeline_mode<synchronous>, transform_indices = @transform_1, window_bounds = array<i64: 128, 256>}, {pipeline_mode = #tpu.pipeline_mode<synchronous>, transform_indices = @transform_2, window_bounds = array<i64: 128, 256>}, {pipeline_mode = #tpu.pipeline_mode<synchronous>, transform_indices = @transform_3, window_bounds = array<i64: 128, 256>}, {pipeline_mode = #tpu.pipeline_mode<synchronous>, transform_indices = @transform_4, window_bounds = array<i64: 256, 16>}, {pipeline_mode = #tpu.pipeline_mode<synchronous>, transform_indices = @transform_5, window_bounds = array<i64: 256, 256>}, {transform_indices = @transform_6, window_bounds = array<i64: 16, 128>}, {transform_indices = @transform_7, window_bounds = array<i64: 1, 128>}, {transform_indices = @transform_8, window_bounds = array<i64: 128, 128>}]} {
    %c0 = arith.constant 0 : index
    %c0_0 = arith.constant 0 : index
    %0 = vector.load %arg3[%c0, %c0_0] : memref<128x128xbf16, #tpu.memory_space<vmem>>, vector<128x128xbf16>
    %c0_1 = arith.constant 0 : index
    %c0_2 = arith.constant 0 : index
    %1 = vector.load %arg4[%c0_1, %c0_2] : memref<128x256xbf16, #tpu.memory_space<vmem>>, vector<128x256xbf16>
    %cst = arith.constant dense<0.000000e+00> : vector<128x256xf32>
    %2 = tpu.matmul %0, %1, %cst {dimension_numbers = #tpu.dot_dimension_numbers<[1], [0], [0], [1], [0, 0, 1, 1], [], []>} : vector<128x128xbf16>, vector<128x256xbf16>, vector<128x256xf32> -> vector<128x256xf32>
    %c0_3 = arith.constant 0 : index
    %c0_4 = arith.constant 0 : index
    %3 = vector.load %arg5[%c0_3, %c0_4] : memref<128x256xbf16, #tpu.memory_space<vmem>>, vector<128x256xbf16>
    %cst_5 = arith.constant dense<0.000000e+00> : vector<128x256xf32>
    %4 = tpu.matmul %0, %3, %cst_5 {dimension_numbers = #tpu.dot_dimension_numbers<[1], [0], [0], [1], [0, 0, 1, 1], [], []>} : vector<128x128xbf16>, vector<128x256xbf16>, vector<128x256xf32> -> vector<128x256xf32>
    %5 = arith.mulf %2, %4 : vector<128x256xf32>
    %6 = arith.truncf %5 : vector<128x256xf32> to vector<128x256xbf16>
    %c0_6 = arith.constant 0 : index
    %c0_7 = arith.constant 0 : index
    %7 = vector.load %arg8[%c0_6, %c0_7] : memref<256x256xbf16, #tpu.memory_space<vmem>>, vector<256x256xbf16>
    %cst_8 = arith.constant dense<0.000000e+00> : vector<128x256xf32>
    %8 = tpu.matmul %6, %7, %cst_8 {dimension_numbers = #tpu.dot_dimension_numbers<[1], [0], [0], [1], [0, 0, 1, 1], [], []>} : vector<128x256xbf16>, vector<256x256xbf16>, vector<128x256xf32> -> vector<128x256xf32>
    %c0_9 = arith.constant 0 : index
    %c0_10 = arith.constant 0 : index
    %9 = vector.load %arg6[%c0_9, %c0_10] : memref<128x256xbf16, #tpu.memory_space<vmem>>, vector<128x256xbf16>
    %cst_11 = arith.constant dense<0.000000e+00> : vector<128x256xf32>
    %10 = tpu.matmul %0, %9, %cst_11 {dimension_numbers = #tpu.dot_dimension_numbers<[1], [0], [0], [1], [0, 0, 1, 1], [], []>} : vector<128x128xbf16>, vector<128x256xbf16>, vector<128x256xf32> -> vector<128x256xf32>
    %11 = arith.mulf %10, %8 : vector<128x256xf32>
    %12 = arith.truncf %11 : vector<128x256xf32> to vector<128x256xbf16>
    %c0_12 = arith.constant 0 : index
    %c0_13 = arith.constant 0 : index
    %13 = vector.load %arg7[%c0_12, %c0_13] : memref<256x16xbf16, #tpu.memory_space<vmem>>, vector<256x16xbf16>
    %cst_14 = arith.constant dense<0.000000e+00> : vector<128x16xf32>
    %14 = tpu.matmul %12, %13, %cst_14 {dimension_numbers = #tpu.dot_dimension_numbers<[1], [0], [0], [1], [0, 0, 1, 1], [], []>} : vector<128x256xbf16>, vector<256x16xbf16>, vector<128x16xf32> -> vector<128x16xf32>
    %c0_15 = arith.constant 0 : index
    %c0_16 = arith.constant 0 : index
    %15 = vector.load %arg12[%c0_15, %c0_16] : memref<128x16xf32, #tpu.memory_space<vmem>>, vector<128x16xf32>
    tpu.vector_store %arg12[%c0_15, %c0_16], %14 {strides = array<i32>} : memref<128x16xf32, #tpu.memory_space<vmem>>, vector<128x16xf32>,
    %c0_17 = arith.constant 0 : index
    %c0_18 = arith.constant 0 : index
    %16 = vector.load %arg12[%c0_17, %c0_18] : memref<128x16xf32, #tpu.memory_space<vmem>>, vector<128x16xf32>
    %17 = arith.truncf %16 : vector<128x16xf32> to vector<128x16xbf16>
    %c0_19 = arith.constant 0 : index
    %c0_20 = arith.constant 0 : index
    %18 = vector.load %arg9[%c0_19, %c0_20] : memref<16x128xbf16, #tpu.memory_space<vmem>>, vector<16x128xbf16>
    %cst_21 = arith.constant dense<0.000000e+00> : vector<128x128xf32>
    %19 = tpu.matmul %17, %18, %cst_21 {dimension_numbers = #tpu.dot_dimension_numbers<[1], [0], [0], [1], [0, 0, 1, 1], [], []>} : vector<128x16xbf16>, vector<16x128xbf16>, vector<128x128xf32> -> vector<128x128xf32>
    %c0_22 = arith.constant 0 : index
    %c0_23 = arith.constant 0 : index
    %20 = vector.load %arg10[%c0_22, %c0_23] : memref<1x128xf32, #tpu.memory_space<vmem>>, vector<1x128xf32>
    %21 = vector.broadcast %20 : vector<1x128xf32> to vector<128x128xf32>
    %22 = arith.addf %19, %21 : vector<128x128xf32>
    %cst_24 = arith.constant dense<0xFF800000> : vector<128xf32>
    %23 = vector.multi_reduction <maximumf>, %22, %cst_24 [1] : vector<128x128xf32> to vector<128xf32>
    %24 = vector.shape_cast %23 : vector<128xf32> to vector<128x1xf32>
    %25 = vector.broadcast %24 : vector<128x1xf32> to vector<128x128xf32>
    %26 = arith.subf %22, %25 : vector<128x128xf32>
    %27 = math.exp %26 : vector<128x128xf32>
    %cst_25 = arith.constant dense<0.000000e+00> : vector<128xf32>
    %28 = vector.multi_reduction <add>, %27, %cst_25 [1] : vector<128x128xf32> to vector<128xf32>
    %29 = vector.shape_cast %28 : vector<128xf32> to vector<128x1xf32>
    %30 = tpu.reciprocal %29 {approx = true} : vector<128x1xf32> -> vector<128x1xf32>
    %31 = vector.broadcast %30 : vector<128x1xf32> to vector<128x128xf32>
    %32 = arith.mulf %27, %31 : vector<128x128xf32>
    %c0_26 = arith.constant 0 : index
    %c0_27 = arith.constant 0 : index
    %33 = vector.load %arg11[%c0_26, %c0_27] : memref<128x128xf32, #tpu.memory_space<vmem>>, vector<128x128xf32>
    tpu.vector_store %arg11[%c0_26, %c0_27], %32 {strides = array<i32>} : memref<128x128xf32, #tpu.memory_space<vmem>>, vector<128x128xf32>,
    return
  }
  func.func @transform_0(%arg0: i32, %arg1: i32, %arg2: i32) -> (i32, i32) {
    %c0_i32 = arith.constant 0 : i32
    %c0_i32_0 = arith.constant 0 : i32
    return %arg0, %c0_i32 : i32, i32
  }
  func.func @transform_1(%arg0: i32, %arg1: i32, %arg2: i32) -> (i32, i32) {
    %c0_i32 = arith.constant 0 : i32
    %c0_i32_0 = arith.constant 0 : i32
    %c0_i32_1 = arith.constant 0 : i32
    return %c0_i32, %c0_i32_0 : i32, i32
  }
  func.func @transform_2(%arg0: i32, %arg1: i32, %arg2: i32) -> (i32, i32) {
    %c0_i32 = arith.constant 0 : i32
    %c0_i32_0 = arith.constant 0 : i32
    %c0_i32_1 = arith.constant 0 : i32
    return %c0_i32, %c0_i32_0 : i32, i32
  }
  func.func @transform_3(%arg0: i32, %arg1: i32, %arg2: i32) -> (i32, i32) {
    %c0_i32 = arith.constant 0 : i32
    %c0_i32_0 = arith.constant 0 : i32
    %c0_i32_1 = arith.constant 0 : i32
    return %c0_i32, %c0_i32_0 : i32, i32
  }
  func.func @transform_4(%arg0: i32, %arg1: i32, %arg2: i32) -> (i32, i32) {
    %c0_i32 = arith.constant 0 : i32
    %c0_i32_0 = arith.constant 0 : i32
    %c0_i32_1 = arith.constant 0 : i32
    return %c0_i32, %c0_i32_0 : i32, i32
  }
  func.func @transform_5(%arg0: i32, %arg1: i32, %arg2: i32) -> (i32, i32) {
    %c0_i32 = arith.constant 0 : i32
    %c0_i32_0 = arith.constant 0 : i32
    %c0_i32_1 = arith.constant 0 : i32
    return %c0_i32, %c0_i32_0 : i32, i32
  }
  func.func @transform_6(%arg0: i32, %arg1: i32, %arg2: i32) -> (i32, i32) {
    %c0_i32 = arith.constant 0 : i32
    %c0_i32_0 = arith.constant 0 : i32
    return %c0_i32, %arg2 : i32, i32
  }
  func.func @transform_7(%arg0: i32, %arg1: i32, %arg2: i32) -> (i32, i32) {
    %c0_i32 = arith.constant 0 : i32
    %c0_i32_0 = arith.constant 0 : i32
    return %c0_i32, %arg2 : i32, i32
  }
  func.func @transform_8(%arg0: i32, %arg1: i32, %arg2: i32) -> (i32, i32) {
    %0 = arith.muli %arg1, %arg2 : i32
    %c0_i32 = arith.constant 0 : i32
    return %arg0, %0 : i32, i32
  }
}

module attributes {stable_mosaic.version = 11 : i64} {
  func.func @_getd_kernel(%arg0: i32, %arg1: i32, %arg2: i32, %arg3: memref<128x128xbf16, #tpu.memory_space<vmem>>, %arg4: memref<128x256xbf16, #tpu.memory_space<vmem>>, %arg5: memref<128x256xbf16, #tpu.memory_space<vmem>>, %arg6: memref<128x256xbf16, #tpu.memory_space<vmem>>, %arg7: memref<256x16xbf16, #tpu.memory_space<vmem>>, %arg8: memref<256x256xbf16, #tpu.memory_space<vmem>>, %arg9: memref<16x128xbf16, #tpu.memory_space<vmem>>, %arg10: memref<1x128xf32, #tpu.memory_space<vmem>>, %arg11: memref<128x128xf32, #tpu.memory_space<vmem>>, %arg12: memref<128x16xf32, #tpu.memory_space<vmem>>, %arg13: memref<128x1xf32, #tpu.memory_space<vmem>>, %arg14: memref<128x1xf32, #tpu.memory_space<vmem>>) attributes {dimension_semantics = [#tpu.dimension_semantics<parallel>, #tpu.dimension_semantics<arbitrary>, #tpu.dimension_semantics<arbitrary>], iteration_bounds = array<i64: 2, 1, 1>, scalar_prefetch = 0 : i64, scratch_operands = 3 : i64, tpu.core_type = #tpu.core_type<tc>, window_params = [{transform_indices = @transform_0, window_bounds = array<i64: 128, 128>}, {pipeline_mode = #tpu.pipeline_mode<synchronous>, transform_indices = @transform_1, window_bounds = array<i64: 128, 256>}, {pipeline_mode = #tpu.pipeline_mode<synchronous>, transform_indices = @transform_2, window_bounds = array<i64: 128, 256>}, {pipeline_mode = #tpu.pipeline_mode<synchronous>, transform_indices = @transform_3, window_bounds = array<i64: 128, 256>}, {pipeline_mode = #tpu.pipeline_mode<synchronous>, transform_indices = @transform_4, window_bounds = array<i64: 256, 16>}, {pipeline_mode = #tpu.pipeline_mode<synchronous>, transform_indices = @transform_5, window_bounds = array<i64: 256, 256>}, {transform_indices = @transform_6, window_bounds = array<i64: 16, 128>}, {transform_indices = @transform_7, window_bounds = array<i64: 1, 128>}, {transform_indices = @transform_8, window_bounds = array<i64: 128, 128>}]} {
    %c0 = arith.constant 0 : index
    %c0_0 = arith.constant 0 : index
    %0 = vector.load %arg3[%c0, %c0_0] : memref<128x128xbf16, #tpu.memory_space<vmem>>, vector<128x128xbf16>
    %c0_1 = arith.constant 0 : index
    %c0_2 = arith.constant 0 : index
    %1 = vector.load %arg4[%c0_1, %c0_2] : memref<128x256xbf16, #tpu.memory_space<vmem>>, vector<128x256xbf16>
    %cst = arith.constant dense<0.000000e+00> : vector<128x256xf32>
    %2 = tpu.matmul %0, %1, %cst {dimension_numbers = #tpu.dot_dimension_numbers<[1], [0], [0], [1], [0, 0, 1, 1], [], []>} : vector<128x128xbf16>, vector<128x256xbf16>, vector<128x256xf32> -> vector<128x256xf32>
    %c0_3 = arith.constant 0 : index
    %c0_4 = arith.constant 0 : index
    %3 = vector.load %arg5[%c0_3, %c0_4] : memref<128x256xbf16, #tpu.memory_space<vmem>>, vector<128x256xbf16>
    %cst_5 = arith.constant dense<0.000000e+00> : vector<128x256xf32>
    %4 = tpu.matmul %0, %3, %cst_5 {dimension_numbers = #tpu.dot_dimension_numbers<[1], [0], [0], [1], [0, 0, 1, 1], [], []>} : vector<128x128xbf16>, vector<128x256xbf16>, vector<128x256xf32> -> vector<128x256xf32>
    %5 = arith.mulf %2, %4 : vector<128x256xf32>
    %6 = arith.truncf %5 : vector<128x256xf32> to vector<128x256xbf16>
    %c0_6 = arith.constant 0 : index
    %c0_7 = arith.constant 0 : index
    %7 = vector.load %arg8[%c0_6, %c0_7] : memref<256x256xbf16, #tpu.memory_space<vmem>>, vector<256x256xbf16>
    %cst_8 = arith.constant dense<0.000000e+00> : vector<128x256xf32>
    %8 = tpu.matmul %6, %7, %cst_8 {dimension_numbers = #tpu.dot_dimension_numbers<[1], [0], [0], [1], [0, 0, 1, 1], [], []>} : vector<128x256xbf16>, vector<256x256xbf16>, vector<128x256xf32> -> vector<128x256xf32>
    %c0_9 = arith.constant 0 : index
    %c0_10 = arith.constant 0 : index
    %9 = vector.load %arg6[%c0_9, %c0_10] : memref<128x256xbf16, #tpu.memory_space<vmem>>, vector<128x256xbf16>
    %cst_11 = arith.constant dense<0.000000e+00> : vector<128x256xf32>
    %10 = tpu.matmul %0, %9, %cst_11 {dimension_numbers = #tpu.dot_dimension_numbers<[1], [0], [0], [1], [0, 0, 1, 1], [], []>} : vector<128x128xbf16>, vector<128x256xbf16>, vector<128x256xf32> -> vector<128x256xf32>
    %11 = arith.mulf %10, %8 : vector<128x256xf32>
    %12 = arith.truncf %11 : vector<128x256xf32> to vector<128x256xbf16>
    %c0_12 = arith.constant 0 : index
    %c0_13 = arith.constant 0 : index
    %13 = vector.load %arg7[%c0_12, %c0_13] : memref<256x16xbf16, #tpu.memory_space<vmem>>, vector<256x16xbf16>
    %cst_14 = arith.constant dense<0.000000e+00> : vector<128x16xf32>
    %14 = tpu.matmul %12, %13, %cst_14 {dimension_numbers = #tpu.dot_dimension_numbers<[1], [0], [0], [1], [0, 0, 1, 1], [], []>} : vector<128x256xbf16>, vector<256x16xbf16>, vector<128x16xf32> -> vector<128x16xf32>
    %c0_15 = arith.constant 0 : index
    %c0_16 = arith.constant 0 : index
    %15 = vector.load %arg12[%c0_15, %c0_16] : memref<128x16xf32, #tpu.memory_space<vmem>>, vector<128x16xf32>
    tpu.vector_store %arg12[%c0_15, %c0_16], %14 {strides = array<i32>} : memref<128x16xf32, #tpu.memory_space<vmem>>, vector<128x16xf32>,
    %c0_17 = arith.constant 0 : index
    %c0_18 = arith.constant 0 : index
    %16 = vector.load %arg12[%c0_17, %c0_18] : memref<128x16xf32, #tpu.memory_space<vmem>>, vector<128x16xf32>
    %17 = arith.truncf %16 : vector<128x16xf32> to vector<128x16xbf16>
    %c0_19 = arith.constant 0 : index
    %c0_20 = arith.constant 0 : index
    %18 = vector.load %arg9[%c0_19, %c0_20] : memref<16x128xbf16, #tpu.memory_space<vmem>>, vector<16x128xbf16>
    %cst_21 = arith.constant dense<0.000000e+00> : vector<128x128xf32>
    %19 = tpu.matmul %17, %18, %cst_21 {dimension_numbers = #tpu.dot_dimension_numbers<[1], [0], [0], [1], [0, 0, 1, 1], [], []>} : vector<128x16xbf16>, vector<16x128xbf16>, vector<128x128xf32> -> vector<128x128xf32>
    %c0_22 = arith.constant 0 : index
    %c0_23 = arith.constant 0 : index
    %20 = vector.load %arg10[%c0_22, %c0_23] : memref<1x128xf32, #tpu.memory_space<vmem>>, vector<1x128xf32>
    %21 = vector.broadcast %20 : vector<1x128xf32> to vector<128x128xf32>
    %22 = arith.addf %19, %21 : vector<128x128xf32>
    %cst_24 = arith.constant dense<0xFF800000> : vector<128xf32>
    %23 = vector.multi_reduction <maximumf>, %22, %cst_24 [1] : vector<128x128xf32> to vector<128xf32>
    %24 = vector.shape_cast %23 : vector<128xf32> to vector<128x1xf32>
    %25 = vector.broadcast %24 : vector<128x1xf32> to vector<128x128xf32>
    %26 = arith.subf %22, %25 : vector<128x128xf32>
    %27 = math.exp %26 : vector<128x128xf32>
    %cst_25 = arith.constant dense<0.000000e+00> : vector<128xf32>
    %28 = vector.multi_reduction <add>, %27, %cst_25 [1] : vector<128x128xf32> to vector<128xf32>
    %29 = vector.shape_cast %28 : vector<128xf32> to vector<128x1xf32>
    %30 = tpu.reciprocal %29 {approx = true} : vector<128x1xf32> -> vector<128x1xf32>
    %31 = vector.broadcast %30 : vector<128x1xf32> to vector<128x128xf32>
    %32 = arith.mulf %27, %31 : vector<128x128xf32>
    %c0_26 = arith.constant 0 : index
    %c0_27 = arith.constant 0 : index
    %33 = vector.load %arg11[%c0_26, %c0_27] : memref<128x128xf32, #tpu.memory_space<vmem>>, vector<128x128xf32>
    tpu.vector_store %arg11[%c0_26, %c0_27], %32 {strides = array<i32>} : memref<128x128xf32, #tpu.memory_space<vmem>>, vector<128x128xf32>,
    return
  }
  func.func @transform_0(%arg0: i32, %arg1: i32, %arg2: i32) -> (i32, i32) {
    %c0_i32 = arith.constant 0 : i32
    %c0_i32_0 = arith.constant 0 : i32
    return %arg0, %c0_i32 : i32, i32
  }
  func.func @transform_1(%arg0: i32, %arg1: i32, %arg2: i32) -> (i32, i32) {
    %c0_i32 = arith.constant 0 : i32
    %c0_i32_0 = arith.constant 0 : i32
    %c0_i32_1 = arith.constant 0 : i32
    return %c0_i32, %c0_i32_0 : i32, i32
  }
  func.func @transform_2(%arg0: i32, %arg1: i32, %arg2: i32) -> (i32, i32) {
    %c0_i32 = arith.constant 0 : i32
    %c0_i32_0 = arith.constant 0 : i32
    %c0_i32_1 = arith.constant 0 : i32
    return %c0_i32, %c0_i32_0 : i32, i32
  }
  func.func @transform_3(%arg0: i32, %arg1: i32, %arg2: i32) -> (i32, i32) {
    %c0_i32 = arith.constant 0 : i32
    %c0_i32_0 = arith.constant 0 : i32
    %c0_i32_1 = arith.constant 0 : i32
    return %c0_i32, %c0_i32_0 : i32, i32
  }
  func.func @transform_4(%arg0: i32, %arg1: i32, %arg2: i32) -> (i32, i32) {
    %c0_i32 = arith.constant 0 : i32
    %c0_i32_0 = arith.constant 0 : i32
    %c0_i32_1 = arith.constant 0 : i32
    return %c0_i32, %c0_i32_0 : i32, i32
  }
  func.func @transform_5(%arg0: i32, %arg1: i32, %arg2: i32) -> (i32, i32) {
    %c0_i32 = arith.constant 0 : i32
    %c0_i32_0 = arith.constant 0 : i32
    %c0_i32_1 = arith.constant 0 : i32
    return %c0_i32, %c0_i32_0 : i32, i32
  }
  func.func @transform_6(%arg0: i32, %arg1: i32, %arg2: i32) -> (i32, i32) {
    %c0_i32 = arith.constant 0 : i32
    %c0_i32_0 = arith.constant 0 : i32
    return %c0_i32, %arg2 : i32, i32
  }
  func.func @transform_7(%arg0: i32, %arg1: i32, %arg2: i32) -> (i32, i32) {
    %c0_i32 = arith.constant 0 : i32
    %c0_i32_0 = arith.constant 0 : i32
    return %c0_i32, %arg2 : i32, i32
  }
  func.func @transform_8(%arg0: i32, %arg1: i32, %arg2: i32) -> (i32, i32) {
    %0 = arith.muli %arg1, %arg2 : i32
    %c0_i32 = arith.constant 0 : i32
    return %arg0, %0 : i32, i32
  }
}

</mosaic_0001>

<bundles_post_ra>
// kernel: tpu_custom_call.1
= control target key start
LH: loop header
LB: loop body
LE: loop exit
PB: predicated region body
PF: predicated region fallthrough
CT: control target
= control target key end

     0   :  { %s3930_s0 = inlined_call_operand.hbm [shape: bf16[256,128], index: 0, kind: input, shape index: {}]   ;;  %s3931_s1 = inlined_call_operand.hbm [shape: bf16[128,256], index: 1, kind: input, shape index: {}]   ;;  %s3932_s2 = inlined_call_operand.hbm [shape: bf16[128,256], index: 2, kind: input, shape index: {}]   ;;  %s3933_s3 = inlined_call_operand.hbm [shape: bf16[128,256], index: 3, kind: input, shape index: {}]   ;;  %s3934_s4 = inlined_call_operand.hbm [shape: bf16[256,16], index: 4, kind: input, shape index: {}]   ;;  %s3935_s5 = inlined_call_operand.hbm [shape: bf16[256,256], index: 5, kind: input, shape index: {}]   ;;  %s3936_s6 = inlined_call_operand.hbm [shape: bf16[16,128], index: 6, kind: input, shape index: {}]   ;;  %s3937_s7 = inlined_call_operand.hbm [shape: f32[1,128], index: 7, kind: input, shape index: {}]   ;;  %s3938_s8 = inlined_call_operand.hbm [shape: f32[256,128], index: 8, kind: output, shape index: {}]  }
   0x1   :  { %3945 = sst [smem:[#allocation27_spill]] %s3931_s1 }
   0x2   :  { %3946 = sst [smem:[#allocation28_spill]] %s3932_s2 }
   0x3   :  { %3947 = sst [smem:[#allocation29_spill]] %s3938_s8 }
   0x4   :  { %13 = vsyncpa [#allocation6], 0 }
   0x5   :  { %15 = vsyncpa [#allocation6 + $0x1], 0 }
   0x6   :  { %16 = vsyncpa [#allocation9], 0 }
   0x7   :  { %17 = vsyncpa [#allocation12], 0 }
   0x8   :  { %18 = vsyncpa [#allocation15], 0 }
   0x9   :  { %19 = vsyncpa [#allocation18], 0 }
   0xa   :  { %20 = vsyncpa [#allocation7], 0 }
   0xb   :  { %22 = vsyncpa [#allocation7 + $0x1], 0  ;;  %s3280_s27 = smov 0   ;;  %s3282_s28 = smov 0  }
   0xc   :  { %s3284_s29 = smov 0   ;;  %s3286_s30 = smov 0  }
   0xd   :  { %s3288_s9 = smov 0   ;;  %s3290_s10 = smov 0  }
   0xe LB: > { %3948 = sst [smem:[#allocation26_spill]] %s3209_s30  ;;  %s3939_s11 = sadd.s32 4294967295, %s3217_s10   ;;  %s3217_s10 = sphi %s3290_s10, %s28_s10   ;;  %s3213_s9 = sphi %s3288_s9, %s3973_s9   ;;  %s3209_s30 = sphi %s3286_s30, %s3972_s30   ;;  %s3205_s29 = sphi %s3284_s29, %s3971_s29   ;;  %s3201_s28 = sphi %s3282_s28, %s3970_s28   ;;  %s3197_s27 = sphi %s3280_s27, %s3969_s27  }
   0xf   : > { %p2294_p0 = scmp.ge.s32.totalorder %s3217_s10, 1  ;;  %p3314_p1 = scmp.eq.s32.totalorder %s3939_s11, 0 }
  0x10   : > { %p265_p2 = scmp.lt.s32.totalorder %s3217_s10, 3  ;;  %s3219_s14 = smov [#allocation8]  }
  0x11   : > { %s3949_s12 = scalar_select %p3314_p1, 1, 0 }
  0x12   : > { %p3319_p3 = pnand %p2294_p0, %p265_p2  ;;  %s277_s15 = sshll.u32 %s3219_s14, 4  ;;  %s3323_s15 = int_to_ptr.vmem [resolvable:$true] %s277_s15 }
  0x13   : > { %s3220_s17 = smov [#allocation11]   ;;  %s3221_s19 = smov [#allocation14]  }
  0x14   : > { %s3950_s13 = scalar_select %p3319_p3, 1, 0 }
  0x15   : > { %p2576_p4 = pneg %p3319_p3  ;;  %s303_s18 = sshll.u32 %s3220_s17, 4  ;;  %s3334_s18 = int_to_ptr.vmem [resolvable:$true] %s303_s18 }
  0x16   : > { %s3336_s20 = sshll.u32 %s3221_s19, 4  ;;  %s3952_s1 = sld [smem:[#allocation27_spill]]  ;;  %s330_s20 = int_to_ptr.vmem [resolvable:$true] %s3336_s20 }
  0x17   : > { %p3330_p6 = pnand %p2576_p4, %p3314_p1 }
  0x19   : > { %p3346_p8 = pneg %p3330_p6 }
  0x1c   : > { %s2893_s23 = scalar_lea.hbm %s3952_s1, 2048 }
  0x1d   : > { %p2894_p7 = scmp.ne.s32.totalorder %s3952_s1, %s2893_s23  ;;  %p2900_p11 = scmp.lt.u32.totalorder %s2893_s23, %s3952_s1 }
  0x1f   : > { %p2896_p9 = pnand %p3346_p8, %p2894_p7 }
  0x21   : > { %p2897_p10 = pneg %p2896_p9 }
  0x23   : > { %p2902_p12 = pnand %p2900_p11, %p2897_p10 }
  0x25   : > { %2905 = shalt.err (!%p2902_p12)
}
  0x26   : > { %s2906_s19 = scalar_lea.vmem %s3323_s15, 2048  ;;  %p2914_p4 = scmp.lt.s32.totalorder %s3323_s15, %s3323_s15 }
  0x27   : > { %p2907_p13 = scmp.ne.s32.totalorder %s3323_s15, %s2906_s19  ;;  %p2915_p5 = scmp.lt.s32.totalorder %s2906_s19, %s2906_s19 }
  0x29   : > { %p2909_p0 = pnand %p2907_p13, %p3346_p8  ;;  %p2916_p7 = por %p2915_p5, %p2914_p4 }
  0x2b   : > { %p2910_p2 = pneg %p2909_p0 }
  0x2d   : > { %p2917_p9 = pnand %p2916_p7, %p2910_p2 }
  0x2f   : > { %2920 = shalt.err (!%p2917_p9)
}
  0x30   : > { %s3222_s21 = smov 128   ;;  %s3223_s22 = smov 8  }
  0x31   : > { %2579 = dma.hbm_to_vmem [thread:$0]  (!%p3330_p6), %s3952_s1, 2048, %s3323_s15, [#allocation9], %s3222_s21, %s3222_s21, %s3223_s22  }
  0x32   : > { %s2921_s17 = scalar_lea.hbm %s3933_s3, 2048 }
  0x33   : > { %p2922_p5 = scmp.ne.s32.totalorder %s3933_s3, %s2921_s17  ;;  %p2928_p12 = scmp.lt.u32.totalorder %s2921_s17, %s3933_s3 }
  0x35   : > { %p2924_p10 = pnand %p2922_p5, %p3346_p8 }
  0x37   : > { %p2925_p11 = pneg %p2924_p10 }
  0x39   : > { %p2930_p13 = pnand %p2928_p12, %p2925_p11 }
  0x3b   : > { %2933 = shalt.err (!%p2930_p13)
}
  0x3c   : > { %s2934_s15 = scalar_lea.vmem %s3334_s18, 2048  ;;  %p2942_p7 = scmp.lt.s32.totalorder %s3334_s18, %s3334_s18 }
  0x3d   : > { %p2935_p0 = scmp.ne.s32.totalorder %s3334_s18, %s2934_s15  ;;  %p2943_p9 = scmp.lt.s32.totalorder %s2934_s15, %s2934_s15 }
  0x3f   : > { %p2937_p2 = pnand %p2935_p0, %p3346_p8  ;;  %p2944_p5 = por %p2943_p9, %p2942_p7 }
  0x41   : > { %p2938_p4 = pneg %p2937_p2 }
  0x43   : > { %p2945_p10 = pnand %p2944_p5, %p2938_p4 }
  0x45   : > { %2948 = shalt.err (!%p2945_p10)
}
  0x46   : > { %2585 = dma.hbm_to_vmem [thread:$0]  (!%p3330_p6), %s3933_s3, 2048, %s3334_s18, [#allocation12], %s3222_s21, %s3222_s21, %s3223_s22  }
  0x47   : > { %s2949_s24 = scalar_lea.hbm %s3935_s5, 4096 }
  0x48   : > { %p2950_p11 = scmp.ne.s32.totalorder %s3935_s5, %s2949_s24  ;;  %p2956_p0 = scmp.lt.u32.totalorder %s2949_s24, %s3935_s5 }
  0x4a   : > { %p2952_p12 = pnand %p2950_p11, %p3346_p8 }
  0x4c   : > { %p2953_p13 = pneg %p2952_p12 }
  0x4e   : > { %p2958_p2 = pnand %p2956_p0, %p2953_p13 }
  0x50   : > { %2961 = shalt.err (!%p2958_p2)
}
  0x51   : > { %s2962_s15 = scalar_lea.vmem %s330_s20, 4096  ;;  %p2970_p5 = scmp.lt.s32.totalorder %s330_s20, %s330_s20 }
  0x52   : > { %p2963_p4 = scmp.ne.s32.totalorder %s330_s20, %s2962_s15  ;;  %p2971_p10 = scmp.lt.s32.totalorder %s2962_s15, %s2962_s15 }
  0x54   : > { %p2965_p7 = pnand %p2963_p4, %p3346_p8  ;;  %p2972_p3 = por %p2971_p10, %p2970_p5 }
  0x56   : > { %p2966_p9 = pneg %p2965_p7 }
  0x58   : > { %p2973_p1 = pnand %p2972_p3, %p2966_p9 }
  0x5a   : > { %2976 = shalt.err (!%p2973_p1)
}
  0x5b   : > { %2591 = dma.hbm_to_vmem [thread:$0]  (!%p3330_p6), %s3935_s5, 4096, %s330_s20, [#allocation15], %s3222_s21, %s3222_s21, %s3223_s22  }
  0x5c   : > { %s3224_s30 = smov [#allocation10]   ;;  %s3225_s23 = smov [#allocation13]  }
  0x5d   : > { %s290_s11 = sshll.u32 %s3224_s30, 4  ;;  %s316_s24 = sshll.u32 %s3225_s23, 4  ;;  %s291_s11 = int_to_ptr.vmem [resolvable:$true] %s290_s11  ;;  %s317_s24 = int_to_ptr.vmem [resolvable:$true] %s316_s24 }
  0x5e   : > { %s3954_s2 = sld [smem:[#allocation28_spill]] }
  0x64   : > { %s2977_s17 = scalar_lea.hbm %s3954_s2, 2048 }
  0x65   : > { %p2978_p1 = scmp.ne.s32.totalorder %s3954_s2, %s2977_s17  ;;  %p2984_p12 = scmp.lt.u32.totalorder %s2977_s17, %s3954_s2 }
  0x67   : > { %p2980_p3 = pnand %p2978_p1, %p3346_p8 }
  0x69   : > { %p2981_p11 = pneg %p2980_p3 }
  0x6b   : > { %p2986_p13 = pnand %p2984_p12, %p2981_p11 }
  0x6d   : > { %2989 = shalt.err (!%p2986_p13)
}
  0x6e   : > { %s2990_s20 = scalar_lea.vmem %s291_s11, 2048  ;;  %p2998_p7 = scmp.lt.s32.totalorder %s291_s11, %s291_s11 }
  0x6f   : > { %p2991_p0 = scmp.ne.s32.totalorder %s291_s11, %s2990_s20  ;;  %p2999_p9 = scmp.lt.s32.totalorder %s2990_s20, %s2990_s20 }
  0x71   : > { %p2993_p2 = pnand %p2991_p0, %p3346_p8  ;;  %p3000_p5 = por %p2999_p9, %p2998_p7 }
  0x73   : > { %p2994_p4 = pneg %p2993_p2 }
  0x75   : > { %p3001_p10 = pnand %p3000_p5, %p2994_p4 }
  0x77   : > { %3004 = shalt.err (!%p3001_p10)
}
  0x78   : > { %2582 = dma.hbm_to_vmem [thread:$0]  (!%p3330_p6), %s3954_s2, 2048, %s291_s11, [#allocation9], %s3222_s21, %s3222_s21, %s3223_s22  }
  0x79   : > { %s3005_s25 = scalar_lea.hbm %s3934_s4, 2048 }
  0x7a   : > { %p3006_p1 = scmp.ne.s32.totalorder %s3934_s4, %s3005_s25  ;;  %p3012_p12 = scmp.lt.u32.totalorder %s3005_s25, %s3934_s4 }
  0x7c   : > { %p3008_p3 = pnand %p3006_p1, %p3346_p8 }
  0x7e   : > { %p3009_p11 = pneg %p3008_p3 }
  0x80   : > { %p3014_p13 = pnand %p3012_p12, %p3009_p11 }
  0x82   : > { %3017 = shalt.err (!%p3014_p13)
}
  0x83   : > { %s3018_s18 = scalar_lea.vmem %s317_s24, 2048  ;;  %p3026_p7 = scmp.lt.s32.totalorder %s317_s24, %s317_s24 }
  0x84   : > { %p3019_p0 = scmp.ne.s32.totalorder %s317_s24, %s3018_s18  ;;  %p3027_p9 = scmp.lt.s32.totalorder %s3018_s18, %s3018_s18 }
  0x86   : > { %p3021_p2 = pnand %p3019_p0, %p3346_p8  ;;  %p3028_p5 = por %p3027_p9, %p3026_p7 }
  0x88   : > { %p3022_p4 = pneg %p3021_p2 }
  0x8a   : > { %p3029_p10 = pnand %p3028_p5, %p3022_p4 }
  0x8c   : > { %3032 = shalt.err (!%p3029_p10)
}
  0x8d   : > { %s3226_s21 = smov 64   ;;  %s3227_s22 = smov 4  }
  0x8e   : > { %2588 = dma.hbm_to_vmem [thread:$0]  (!%p3330_p6), %s3934_s4, 2048, %s317_s24, [#allocation12], %s3226_s21, %s3226_s21, %s3227_s22  }
  0x8f   : > { %s3228_s1 = smov [#allocation16]   ;;  %s3229_s30 = smov [#allocation17]  }
  0x90   : > { %s344_s8 = sshll.u32 %s3228_s1, 4  ;;  %s360_s23 = sshll.u32 %s3229_s30, 4  ;;  %s345_s8 = int_to_ptr.vmem [resolvable:$true] %s344_s8  ;;  %s361_s23 = int_to_ptr.vmem [resolvable:$true] %s360_s23 }
  0x91   : > { %s3033_s17 = scalar_lea.hbm %s3936_s6, 128 }
  0x92   : > { %p3034_p1 = scmp.ne.s32.totalorder %s3936_s6, %s3033_s17  ;;  %p3040_p12 = scmp.lt.u32.totalorder %s3033_s17, %s3936_s6 }
  0x94   : > { %p3036_p3 = pnand %p3034_p1, %p3346_p8 }
  0x96   : > { %p3037_p11 = pneg %p3036_p3 }
  0x98   : > { %p3042_p13 = pnand %p3040_p12, %p3037_p11 }
  0x9a   : > { %3045 = shalt.err (!%p3042_p13)
}
  0x9b   : > { %s3046_s24 = scalar_lea.vmem %s345_s8, 128  ;;  %p3054_p7 = scmp.lt.s32.totalorder %s345_s8, %s345_s8 }
  0x9c   : > { %p3047_p0 = scmp.ne.s32.totalorder %s345_s8, %s3046_s24  ;;  %p3055_p9 = scmp.lt.s32.totalorder %s3046_s24, %s3046_s24 }
  0x9e   : > { %p3049_p2 = pnand %p3047_p0, %p3346_p8  ;;  %p3056_p5 = por %p3055_p9, %p3054_p7 }
  0xa0   : > { %p3050_p4 = pneg %p3049_p2 }
  0xa2   : > { %p3057_p10 = pnand %p3056_p5, %p3050_p4 }
  0xa4   : > { %3060 = shalt.err (!%p3057_p10)
}
  0xa5   : > { %2594 = dma.hbm_to_vmem [thread:$0]  (!%p3330_p6), %s3936_s6, 128, %s345_s8, [#allocation15], %s3226_s21, %s3226_s21, %s3227_s22  }
  0xa6   : > { %s3061_s30 = scalar_lea.hbm %s3937_s7, 16 }
  0xa7   : > { %p3062_p1 = scmp.ne.s32.totalorder %s3937_s7, %s3061_s30  ;;  %p3068_p12 = scmp.lt.u32.totalorder %s3061_s30, %s3937_s7 }
  0xa9   : > { %p3064_p3 = pnand %p3062_p1, %p3346_p8 }
  0xab   : > { %p3065_p11 = pneg %p3064_p3 }
  0xad   : > { %p3070_p13 = pnand %p3068_p12, %p3065_p11 }
  0xaf   : > { %3073 = shalt.err (!%p3070_p13)
}
  0xb0   : > { %s3074_s15 = scalar_lea.vmem %s361_s23, 16  ;;  %s3081_s8 = scalar_lea.vmem %s361_s23, 32 }
  0xb1   : > { %p3075_p0 = scmp.ne.s32.totalorder %s361_s23, %s3074_s15  ;;  %p3082_p7 = scmp.lt.s32.totalorder %s361_s23, %s361_s23 }
  0xb2   : > { %p3083_p9 = scmp.lt.s32.totalorder %s3081_s8, %s3074_s15 }
  0xb3   : > { %p3077_p2 = pnand %p3075_p0, %p3346_p8 }
  0xb4   : > { %p3084_p5 = por %p3083_p9, %p3082_p7 }
  0xb5   : > { %p3078_p4 = pneg %p3077_p2 }
  0xb7   : > { %p3085_p10 = pnand %p3084_p5, %p3078_p4 }
  0xb9   : > { %3088 = shalt.err (!%p3085_p10)
}
  0xba   : > { %2597 = dma.hbm_to_vmem [thread:$0]  (!%p3330_p6), %s3937_s7, 16, %s361_s23, [#allocation18]  }
  0xbb   : > { %s2293_s26 = sadd.s32 4294967294, %s3217_s10   ;;  %s47_s2 = sadd.s32 1, %s3213_s9 }
  0xbc   : > { %s54_s16 = sadd.s32 1, %s3205_s29  ;;  %p49_p8 = scmp.ge.s32.totalorder %s47_s2, 2 }
  0xbd   : > { %p61_p1 = scmp.ne.s32.totalorder %s3205_s29, %s3201_s28  ;;  %p62_p3 = scmp.eq.s32.totalorder %s3217_s10, 0 }
  0xbe   : > { %p67_p11 = scmp.ne.s32.totalorder %s3201_s28, %s3197_s27  ;;  %s3975_s2 = smov (%p49_p8, %s47_s2), 0 }
  0xbf   : > { %p3509_p12 = por %p62_p3, %p61_p1  ;;  %p3956_p13 = scmp.ne.s32.totalorder %s3949_s12, 0 }
  0xc0   : > { %s51_s20 = ssub.s32 %s3213_s9, %s3975_s2  ;;  %s3958_s1 = sadd.s32 4294967295, %s3217_s10  }
  0xc1   : > { %p3515_p6 = por %p3956_p13, %p67_p11  ;;  %p252_p0 = scmp.eq.s32.totalorder %s3958_s1, 1 }
  0xc2   : > { %p52_p2 = scmp.eq.s32.totalorder %s51_s20, 0  ;;  %p258_p4 = scmp.eq.s32.totalorder %s2293_s26, 1 }
  0xc3   : > { %p3523_p7 = por %p252_p0, %p61_p1  ;;  %p2613_p9 = scmp.lt.s32.totalorder %s3217_s10, 2 }
  0xc4   : > { %s3529_s25 = scalar_select %p52_p2, %s3205_s29, %s54_s16  }
  0xc5   : > { %s3959_s30 = scalar_select %p3523_p7, 1, 0 }
  0xc6   : > { %p3531_p5 = por %p258_p4, %p67_p11  ;;  %s371_s17 = sand.u32 1, %s3205_s29  }
  0xc7   : > { %s2303_s19 = sshll.u32 %s371_s17, 6  ;;  %s2435_s15 = sshll.u32 %s3213_s9, 10 }
  0xc8   : > { %s3960_s14 = scalar_select %p3531_p5, 1, 0 }
  0xc9   : > { %s3540_s24 = scalar_lea.hbm %s3930_s0, %s2435_s15  ;;  %s375_s26 = scalar_lea.vmem [#allocation5], %s2303_s19 }
  0xca   : > { %s382_s20 = sshll.u32 %s375_s26, 4  ;;  %p3546_p10 = pnand %p2613_p9, %p3509_p12  ;;  %s3542_s20 = int_to_ptr.vmem [resolvable:$true] %s382_s20 }
  0xcb   : > { %s3550_s1 = scalar_lea.sflag [#allocation6], %s371_s17  ;;  %s3089_s8 = scalar_lea.hbm %s3540_s24, 1024 }
  0xcc   : > { %p3090_p8 = scmp.ne.s32.totalorder %s3540_s24, %s3089_s8  ;;  %p3091_p1 = pneg %p3546_p10 }
  0xcd   : > { %s3094_s11 = scalar_lea.hbm %s3930_s0, 2048  ;;  %p3095_p12 = scmp.lt.u32.totalorder %s3540_s24, %s3930_s0 }
  0xce   : > { %p3092_p3 = pnand %p3091_p1, %p3090_p8  ;;  %p3096_p13 = scmp.lt.u32.totalorder %s3094_s11, %s3089_s8 }
  0xcf   : > { %p3098_p2 = scmp.lt.u32.totalorder %s3089_s8, %s3540_s24 }
  0xd0   : > { %p3093_p11 = pneg %p3092_p3  ;;  %p3097_p0 = por %p3096_p13, %p3095_p12 }
  0xd2   : > { %p3099_p4 = por %p3098_p2, %p3097_p0 }
  0xd4   : > { %p3100_p9 = pnand %p3099_p4, %p3093_p11 }
  0xd6   : > { %3103 = shalt.err (!%p3100_p9)
}
  0xd7   : > { %s3104_s17 = scalar_lea.vmem %s3542_s20, 1024  ;;  %s3230_s19 = smov [#allocation5]  }
  0xd8   : > { %p3105_p8 = scmp.ne.s32.totalorder %s3542_s20, %s3104_s17  ;;  %s3109_s15 = sshll.u32 %s3230_s19, 4  ;;  %s3110_s15 = int_to_ptr.vmem [resolvable:$false] %s3109_s15 }
  0xd9   : > { %s3111_s18 = scalar_lea.vmem %s3110_s15, 2048  ;;  %p3112_p7 = scmp.lt.s32.totalorder %s3542_s20, %s3110_s15 }
  0xda   : > { %p3107_p3 = pnand %p3105_p8, %p3091_p1  ;;  %p3113_p12 = scmp.lt.s32.totalorder %s3111_s18, %s3104_s17 }
  0xdc   : > { %p3108_p5 = pneg %p3107_p3  ;;  %p3114_p13 = por %p3113_p12, %p3112_p7 }
  0xde   : > { %p3115_p0 = pnand %p3114_p13, %p3108_p5 }
  0xe0   : > { %3118 = shalt.err (!%p3115_p0)
}
  0xe1   : > { %2601 = dma.hbm_to_vmem [thread:$0]  (!%p3546_p10), %s3540_s24, 1024, %s3542_s20, %s3550_s1, %s3226_s21, %s3226_s21, %s3227_s22  }
  0xe2   : > { %p3962_p1 = scmp.ne.s32.totalorder %s3950_s13, 0 }
  0xe3   : > { %s3584_s8 = sand.u32 (!%p3962_p1), 1, %s3201_s28  }
  0xe4   : > { %394 = sbr.rel (%p3962_p1) target bundleno = 1550 (0x60e), region = 52  ;;  %s2307_s11 = sshll.u32 (!%p3962_p1), %s3584_s8, 6 }
  0xe5   : > { %s397_s26 = scalar_lea.sflag (!%p3962_p1), [#allocation6], %s3584_s8  ;;  %s3588_s17 = scalar_lea.vmem (!%p3962_p1), [#allocation5], %s2307_s11 }
  0xeb   : > { %3172 = dma.done.wait (%p3515_p6), %s397_s26, 1024  }
  0xec   : > { %3174 = vsyncadd (%p3515_p6), %s397_s26, 4294966272  ;;  %p3963_p7 = scmp.ne.s32.totalorder %s3949_s12, 0 }
  0xee   : > { %3176 = dma.done.wait (%p3963_p7), [#allocation9], 4096  }
  0xef   : > { %3178 = vsyncadd (%p3963_p7), [#allocation9], 4294963200 }
  0xf0   : > { %3180 = dma.done.wait (%p3963_p7), [#allocation12], 4096  }
  0xf1   : > { %3182 = vsyncadd (%p3963_p7), [#allocation12], 4294963200 }
  0xf2   : > { %3184 = dma.done.wait (%p3963_p7), [#allocation15], 4224  }
  0xf3   : > { %3186 = vsyncadd (%p3963_p7), [#allocation15], 4294963072 }
  0xf4   : > { %3188 = dma.done.wait (%p3963_p7), [#allocation18], 16  }
  0xf5   : > { %3190 = vsyncadd (%p3963_p7), [#allocation18], 4294967280  ;;  %v3231_v0 = vmov 0   ;;  %v2684_v1 = vld [vmem:[#allocation8 + $0x4] ss:$8 sps:$4 sm:$0xff]   ;;  %v3627_v52 = vld [vmem:[%s3588_s17 + $0x10] sm:$0xff]  }
  0xf6   : > { %657 = vmatprep.mubr.bf16.mxu0 %v3231_v0  ;;  %866 = vmatprep.mubr.bf16.mxu1 %v3231_v0  ;;  %v2686_v2 = vld [vmem:[#allocation10 + $0x4] ss:$8 sps:$4 sm:$0xff]   ;;  %v2688_v3 = vld [vmem:[#allocation8] ss:$8 sps:$4 sm:$0xff]   ;;  %v2690_v5 = vld [vmem:[#allocation8 + $0x14] ss:$8 sps:$4 sm:$0xff]  }
  0xf7   : > { %625 = vmatprep.subr.bf16.mxu0 %v2684_v1  ;;  %v2689_v4 = vld [vmem:[#allocation10] ss:$8 sps:$4 sm:$0xff]   ;;  %834 = vmatprep.subr.bf16.mxu1 %v2686_v2  ;;  %v2692_v6 = vld [vmem:[#allocation10 + $0x14] ss:$8 sps:$4 sm:$0xff]   ;;  %v2694_v7 = vld [vmem:[#allocation8 + $0x10] ss:$8 sps:$4 sm:$0xff]  }
  0xf8   : > { %626 = vmatpush1.bf16.msra.mxu0 %v2688_v3  ;;  %835 = vmatpush1.bf16.msra.mxu1 %v2689_v4  ;;  %v2695_v8 = vld [vmem:[#allocation10 + $0x10] ss:$8 sps:$4 sm:$0xff]   ;;  %v2696_v9 = vld [vmem:[#allocation8 + $0x24] ss:$8 sps:$4 sm:$0xff]   ;;  %v2700_v11 = vld [vmem:[#allocation8 + $0x20] ss:$8 sps:$4 sm:$0xff]  }
  0xf9   : > { %627 = vmatprep.subr.bf16.mxu0 %v2690_v5  ;;  %836 = vmatprep.subr.bf16.mxu1 %v2692_v6  ;;  %v2698_v10 = vld [vmem:[#allocation10 + $0x24] ss:$8 sps:$4 sm:$0xff]   ;;  %v2701_v12 = vld [vmem:[#allocation10 + $0x20] ss:$8 sps:$4 sm:$0xff]   ;;  %v2702_v13 = vld [vmem:[#allocation8 + $0x34] ss:$8 sps:$4 sm:$0xff]  }
  0xfa   : > { %v2704_v14 = vld [vmem:[#allocation10 + $0x34] ss:$8 sps:$4 sm:$0xff]   ;;  %v2706_v15 = vld [vmem:[#allocation8 + $0x30] ss:$8 sps:$4 sm:$0xff]   ;;  %v2708_v17 = vld [vmem:[#allocation8 + $0x44] ss:$8 sps:$4 sm:$0xff]  }
  0xfb   : > { %v2707_v16 = vld [vmem:[#allocation10 + $0x30] ss:$8 sps:$4 sm:$0xff]   ;;  %v2710_v18 = vld [vmem:[#allocation10 + $0x44] ss:$8 sps:$4 sm:$0xff]   ;;  %v2712_v19 = vld [vmem:[#allocation8 + $0x40] ss:$8 sps:$4 sm:$0xff]  }
  0xfc   : > { %628 = vmatpush1.bf16.msra.mxu0 %v2694_v7  ;;  %837 = vmatpush1.bf16.msra.mxu1 %v2695_v8  ;;  %v2713_v20 = vld [vmem:[#allocation10 + $0x40] ss:$8 sps:$4 sm:$0xff]   ;;  %v2714_v21 = vld [vmem:[#allocation8 + $0x54] ss:$8 sps:$4 sm:$0xff]   ;;  %v2718_v23 = vld [vmem:[#allocation8 + $0x50] ss:$8 sps:$4 sm:$0xff]  }
  0xfd   : > { %629 = vmatprep.subr.bf16.mxu0 %v2696_v9  ;;  %838 = vmatprep.subr.bf16.mxu1 %v2698_v10  ;;  %v2716_v22 = vld [vmem:[#allocation10 + $0x54] ss:$8 sps:$4 sm:$0xff]   ;;  %v2719_v24 = vld [vmem:[#allocation10 + $0x50] ss:$8 sps:$4 sm:$0xff]   ;;  %v2720_v25 = vld [vmem:[#allocation8 + $0x64] ss:$8 sps:$4 sm:$0xff]  }
  0xfe   : > { %v2722_v26 = vld [vmem:[#allocation10 + $0x64] ss:$8 sps:$4 sm:$0xff]   ;;  %v2724_v27 = vld [vmem:[#allocation8 + $0x60] ss:$8 sps:$4 sm:$0xff]   ;;  %v2726_v29 = vld [vmem:[#allocation8 + $0x74] ss:$8 sps:$4 sm:$0xff]  }
  0xff   : > { %v2725_v28 = vld [vmem:[#allocation10 + $0x60] ss:$8 sps:$4 sm:$0xff]   ;;  %v2728_v30 = vld [vmem:[#allocation10 + $0x74] ss:$8 sps:$4 sm:$0xff]   ;;  %v2730_v31 = vld [vmem:[#allocation8 + $0x70] ss:$8 sps:$4 sm:$0xff]  }
 0x100   : > { %630 = vmatpush1.bf16.msra.mxu0 %v2700_v11  ;;  %839 = vmatpush1.bf16.msra.mxu1 %v2701_v12  ;;  %v2731_v32 = vld [vmem:[#allocation10 + $0x70] ss:$8 sps:$4 sm:$0xff]   ;;  %v2742_v33 = vld [vmem:[#allocation14 + $0x4] ss:$8 sps:$4 sm:$0xff]   ;;  %v2740_v36 = vld [vmem:[#allocation14] ss:$8 sps:$4 sm:$0xff]  }
 0x101   : > { %631 = vmatprep.subr.bf16.mxu0 %v2702_v13  ;;  %840 = vmatprep.subr.bf16.mxu1 %v2704_v14  ;;  %v3613_v34 = vld [vmem:[%s3588_s17] sm:$0xff]   ;;  %v2748_v38 = vld [vmem:[#allocation14 + $0x14] ss:$8 sps:$4 sm:$0xff]   ;;  %v2746_v40 = vld [vmem:[#allocation14 + $0x10] ss:$8 sps:$4 sm:$0xff]   ;;  %vm1782_vm0 = vcmask 130048  }
 0x102   : > { %v2745_v35 = vld [vmem:[#allocation11 + $0x4] ss:$8 sps:$4 sm:$0xff]   ;;  %v2743_v37 = vld [vmem:[#allocation11] ss:$8 sps:$4 sm:$0xff]   ;;  %v2754_v39 = vld [vmem:[#allocation11 + $0x14] ss:$8 sps:$4 sm:$0xff]  }
 0x103   : > { %v2752_v41 = vld [vmem:[#allocation11 + $0x10] ss:$8 sps:$4 sm:$0xff]   ;;  %v2751_v42 = vld [vmem:[#allocation14 + $0x24] ss:$8 sps:$4 sm:$0xff]   ;;  %v2749_v45 = vld [vmem:[#allocation14 + $0x20] ss:$8 sps:$4 sm:$0xff]  }
 0x104   : > { %632 = vmatpush1.bf16.msra.mxu0 %v2706_v15  ;;  %841 = vmatpush1.bf16.msra.mxu1 %v2707_v16  ;;  %v3620_v43 = vld [vmem:[%s3588_s17 + $0x8] sm:$0xff]   ;;  %v2757_v47 = vld [vmem:[#allocation14 + $0x34] ss:$8 sps:$4 sm:$0xff]   ;;  %v2755_v49 = vld [vmem:[#allocation14 + $0x30] ss:$8 sps:$4 sm:$0xff]   ;;  %s2315_s12 = sshll.u32 %s3584_s8, 7 }
 0x105   : > { %633 = vmatprep.subr.bf16.mxu0 %v2708_v17  ;;  %842 = vmatprep.subr.bf16.mxu1 %v2710_v18  ;;  %v2763_v44 = vld [vmem:[#allocation11 + $0x24] ss:$8 sps:$4 sm:$0xff]   ;;  %v2761_v46 = vld [vmem:[#allocation11 + $0x20] ss:$8 sps:$4 sm:$0xff]   ;;  %v2772_v48 = vld [vmem:[#allocation11 + $0x34] ss:$8 sps:$4 sm:$0xff]  }
 0x106   : > { %v2770_v50 = vld [vmem:[#allocation11 + $0x30] ss:$8 sps:$4 sm:$0xff]   ;;  %v2760_v51 = vld [vmem:[#allocation14 + $0x44] ss:$8 sps:$4 sm:$0xff]   ;;  %v2758_v54 = vld [vmem:[#allocation14 + $0x40] ss:$8 sps:$4 sm:$0xff]  }
 0x107   : > { %v2781_v53 = vld [vmem:[#allocation11 + $0x44] ss:$8 sps:$4 sm:$0xff]   ;;  %v2779_v55 = vld [vmem:[#allocation11 + $0x40] ss:$8 sps:$4 sm:$0xff]   ;;  %v2766_v56 = vld [vmem:[#allocation14 + $0x54] ss:$8 sps:$4 sm:$0xff]  }
 0x108   : > { %634 = vmatpush1.bf16.msra.mxu0 %v2712_v19  ;;  %843 = vmatpush1.bf16.msra.mxu1 %v2713_v20  ;;  %v2790_v57 = vld [vmem:[#allocation11 + $0x54] ss:$8 sps:$4 sm:$0xff]   ;;  %v2764_v58 = vld [vmem:[#allocation14 + $0x50] ss:$8 sps:$4 sm:$0xff]   ;;  %v2769_v61 = vld [vmem:[#allocation14 + $0x64] ss:$8 sps:$4 sm:$0xff]  }
 0x109   : > { %635 = vmatprep.subr.bf16.mxu0 %v2714_v21  ;;  %844 = vmatprep.subr.bf16.mxu1 %v2716_v22  ;;  %v2788_v59 = vld [vmem:[#allocation11 + $0x50] ss:$8 sps:$4 sm:$0xff]   ;;  %v2767_v62 = vld [vmem:[#allocation14 + $0x60] ss:$8 sps:$4 sm:$0xff]   ;;  %v2799_v63 = vld [vmem:[#allocation11 + $0x64] ss:$8 sps:$4 sm:$0xff]  }
 0x10a   : > { %v3634_v60 = vld [vmem:[%s3588_s17 + $0x18] sm:$0xff]   ;;  %v2797_v2 = vld [vmem:[#allocation11 + $0x60] ss:$8 sps:$4 sm:$0xff]   ;;  %v2778_v4 = vld [vmem:[#allocation14 + $0x84] ss:$8 sps:$4 sm:$0xff]   ;;  %s3841_s13 = scalar_lea.vmem [#allocation19], %s2315_s12 }
 0x10b   : > { %v2775_v1 = vld [vmem:[#allocation14 + $0x74] ss:$8 sps:$4 sm:$0xff]   ;;  %v2773_v3 = vld [vmem:[#allocation14 + $0x70] ss:$8 sps:$4 sm:$0xff]   ;;  %v3641_v5 = vld [vmem:[%s3588_s17 + $0x20] sm:$0xff]   ;;  %s3964_s21 = sld [smem:[#allocation26_spill]] }
 0x10c   : > { %636 = vmatpush1.bf16.msra.mxu0 %v2718_v23  ;;  %845 = vmatpush1.bf16.msra.mxu1 %v2719_v24  ;;  %v2776_v6 = vld [vmem:[#allocation14 + $0x80] ss:$8 sps:$4 sm:$0xff]   ;;  %v2784_v7 = vld [vmem:[#allocation14 + $0x94] ss:$8 sps:$4 sm:$0xff]   ;;  %v2782_v8 = vld [vmem:[#allocation14 + $0x90] ss:$8 sps:$4 sm:$0xff]  }
 0x10d   : > { %637 = vmatprep.subr.bf16.mxu0 %v2720_v25  ;;  %846 = vmatprep.subr.bf16.mxu1 %v2722_v26  ;;  %v2787_v9 = vld [vmem:[#allocation14 + $0xa4] ss:$8 sps:$4 sm:$0xff]   ;;  %v2785_v11 = vld [vmem:[#allocation14 + $0xa0] ss:$8 sps:$4 sm:$0xff]   ;;  %v2793_v12 = vld [vmem:[#allocation14 + $0xb4] ss:$8 sps:$4 sm:$0xff]  }
 0x10e   : > { %v2737_v10 = vld [vmem:[%s3588_s17 + $0x28] sm:$0xff]   ;;  %v2791_v13 = vld [vmem:[#allocation14 + $0xb0] ss:$8 sps:$4 sm:$0xff]   ;;  %v2802_v17 = vld [vmem:[#allocation14 + $0xd4] ss:$8 sps:$4 sm:$0xff]   ;;  %s2135_s23 = sshll.u32 %s3841_s13, 4  ;;  %s3878_s23 = int_to_ptr.vmem [resolvable:$true] %s2135_s23 }
 0x10f   : > { %v2796_v14 = vld [vmem:[#allocation14 + $0xc4] ss:$8 sps:$4 sm:$0xff]   ;;  %v2738_v15 = vld [vmem:[%s3588_s17 + $0x30] sm:$0xff]   ;;  %v2794_v16 = vld [vmem:[#allocation14 + $0xc0] ss:$8 sps:$4 sm:$0xff]   ;;  %s3965_s16 = sld [smem:[#allocation29_spill]] }
 0x110   : > { %638 = vmatpush1.bf16.msra.mxu0 %v2724_v27  ;;  %847 = vmatpush1.bf16.msra.mxu1 %v2725_v28  ;;  %v2800_v18 = vld [vmem:[#allocation14 + $0xd0] ss:$8 sps:$4 sm:$0xff]   ;;  %v2805_v20 = vld [vmem:[#allocation14 + $0xe4] ss:$8 sps:$4 sm:$0xff]   ;;  %v2803_v21 = vld [vmem:[#allocation14 + $0xe0] ss:$8 sps:$4 sm:$0xff]  }
 0x111   : > { %639 = vmatprep.subr.bf16.mxu0 %v2726_v29  ;;  %848 = vmatprep.subr.bf16.mxu1 %v2728_v30  ;;  %v2739_v19 = vld [vmem:[%s3588_s17 + $0x38] sm:$0xff]   ;;  %v2812_v26 = vld [vmem:[#allocation13 + $0x40] sm:$0xff]   ;;  %v2814_v28 = vld [vmem:[#allocation13 + $0x48] sm:$0xff]   ;;  %s2436_s22 = sshll.u32 %s3964_s21, 11  ;;  %s2120_s19 = scalar_lea.sflag [#allocation7], %s3584_s8 }
 0x112   : > { %v2808_v22 = vld [vmem:[#allocation11 + $0x74] ss:$8 sps:$4 sm:$0xff]   ;;  %v2806_v23 = vld [vmem:[#allocation11 + $0x70] ss:$8 sps:$4 sm:$0xff]   ;;  %v2813_v27 = vld [vmem:[#allocation13] sm:$0xff]   ;;  %s3119_s15 = scalar_lea.vmem %s3878_s23, 2048 }
 0x113   : > { %v2811_v24 = vld [vmem:[#allocation14 + $0xf4] ss:$8 sps:$4 sm:$0xff]   ;;  %v2809_v25 = vld [vmem:[#allocation14 + $0xf0] ss:$8 sps:$4 sm:$0xff]   ;;  %v2815_v29 = vld [vmem:[#allocation13 + $0x8] sm:$0xff]   ;;  %p3120_p6 = scmp.ne.s32.totalorder %s3878_s23, %s3119_s15  ;;  %p3966_p5 = scmp.ne.s32.totalorder %s3959_s30, 0 }
 0x114   : > { %640 = vmatpush1.bf16.msra.mxu0 %v2730_v31  ;;  %849 = vmatpush1.bf16.msra.mxu1 %v2731_v32  ;;  %v2816_v30 = vld [vmem:[#allocation13 + $0x50] sm:$0xff]   ;;  %v2818_v32 = vld [vmem:[#allocation13 + $0x58] sm:$0xff]   ;;  %s3232_s18 = smov [#allocation19]  }
 0x115   : > { %1187 = vmatprep.subr.bf16.mxu0 %v2742_v33  ;;  %1396 = vmatprep.subr.bf16.mxu1 %v2745_v35  ;;  %v2817_v31 = vld [vmem:[#allocation13 + $0x10] sm:$0xff]   ;;  %v2819_v33 = vld [vmem:[#allocation13 + $0x18] sm:$0xff]   ;;  %v3669_v35 = vld [vmem:[#allocation13 + $0x68] sm:$0xff]   ;;  %s3876_s1 = scalar_lea.hbm %s3965_s16, %s2436_s22  ;;  %p3121_p10 = pnand %p3120_p6, %p3966_p5 }
 0x116   : > { %s3123_s11 = sshll.u32 %s3232_s18, 4  ;;  %s3124_s11 = int_to_ptr.vmem [resolvable:$false] %s3123_s11 }
 0x117   : > { %658 = vmatmul.mubr.bf16.vlgmr.msra.gmra.mrb[0].mxu0 %v3613_v34  ;;  %867 = vmatmul.mubr.bf16.vlgmr.msra.gmra.mrb[0].mxu1 %v3613_v34  ;;  %p3122_p11 = pneg %p3121_p10  ;;  %s3125_s26 = scalar_lea.vmem %s3124_s11, 4096 }
 0x118   : > { %667 = vmatprep.mubr.bf16.mxu0 %v3231_v0  ;;  %876 = vmatprep.mubr.bf16.mxu1 %v3231_v0  ;;  %p3126_p2 = scmp.lt.s32.totalorder %s3878_s23, %s3124_s11  ;;  %p3127_p4 = scmp.lt.s32.totalorder %s3125_s26, %s3119_s15 }
 0x119   : > { %1188 = vmatpush1.bf16.msra.mxu0 %v2740_v36  ;;  %1397 = vmatpush1.bf16.msra.mxu1 %v2743_v37  ;;  %v3673_v36 = vld [vmem:[#allocation13 + $0x28] sm:$0xff]  }
 0x11a   : > { %1189 = vmatprep.subr.bf16.mxu0 %v2748_v38  ;;  %1398 = vmatprep.subr.bf16.mxu1 %v2754_v39  ;;  %p3128_p9 = por %p3127_p4, %p3126_p2 }
 0x11c   : > { %p3129_p8 = pnand %p3128_p9, %p3122_p11 }
 0x11d   : > { %1190 = vmatpush1.bf16.msra.mxu0 %v2746_v40  ;;  %1399 = vmatpush1.bf16.msra.mxu1 %v2752_v41 }
 0x11e   : > { %1191 = vmatprep.subr.bf16.mxu0 %v2751_v42  ;;  %1400 = vmatprep.subr.bf16.mxu1 %v2763_v44 }
 0x11f   : > { %668 = vmatmul.mubr.bf16.gmra.mrb[4].mxu0 %v3620_v43  ;;  %877 = vmatmul.mubr.bf16.gmra.mrb[4].mxu1 %v3620_v43 }
 0x120   : > { %677 = vmatprep.mubr.bf16.mxu0 %v3231_v0  ;;  %886 = vmatprep.mubr.bf16.mxu1 %v3231_v0 }
 0x121   : > { %1192 = vmatpush1.bf16.msra.mxu0 %v2749_v45  ;;  %1401 = vmatpush1.bf16.msra.mxu1 %v2761_v46 }
 0x122   : > { %1193 = vmatprep.subr.bf16.mxu0 %v2757_v47  ;;  %1402 = vmatprep.subr.bf16.mxu1 %v2772_v48 }
 0x125   : > { %1194 = vmatpush1.bf16.msra.mxu0 %v2755_v49  ;;  %1403 = vmatpush1.bf16.msra.mxu1 %v2770_v50 }
 0x126   : > { %1195 = vmatprep.subr.bf16.mxu0 %v2760_v51  ;;  %1404 = vmatprep.subr.bf16.mxu1 %v2781_v53 }
 0x127   : > { %678 = vmatmul.mubr.bf16.gmra.mrb[8].mxu0 %v3627_v52  ;;  %887 = vmatmul.mubr.bf16.gmra.mrb[8].mxu1 %v3627_v52 }
 0x128   : > { %687 = vmatprep.mubr.bf16.mxu0 %v3231_v0  ;;  %896 = vmatprep.mubr.bf16.mxu1 %v3231_v0 }
 0x129   : > { %1196 = vmatpush1.bf16.msra.mxu0 %v2758_v54  ;;  %1405 = vmatpush1.bf16.msra.mxu1 %v2779_v55 }
 0x12a   : > { %1197 = vmatprep.subr.bf16.mxu0 %v2766_v56  ;;  %1406 = vmatprep.subr.bf16.mxu1 %v2790_v57 }
 0x12d   : > { %1198 = vmatpush1.bf16.msra.mxu0 %v2764_v58  ;;  %1407 = vmatpush1.bf16.msra.mxu1 %v2788_v59 }
 0x12e   : > { %1199 = vmatprep.subr.bf16.mxu0 %v2769_v61  ;;  %1408 = vmatprep.subr.bf16.mxu1 %v2799_v63 }
 0x12f   : > { %688 = vmatmul.mubr.bf16.gmra.mrb[12].mxu0 %v3634_v60  ;;  %897 = vmatmul.mubr.bf16.gmra.mrb[12].mxu1 %v3634_v60 }
 0x130   : > { %697 = vmatprep.mubr.bf16.mxu0 %v3231_v0  ;;  %906 = vmatprep.mubr.bf16.mxu1 %v3231_v0 }
 0x131   : > { %1200 = vmatpush1.bf16.msra.mxu0 %v2767_v62  ;;  %1409 = vmatpush1.bf16.msra.mxu1 %v2797_v2 }
 0x132   : > { %1201 = vmatprep.subr.bf16.mxu0 %v2775_v1  ;;  %1410 = vmatprep.subr.bf16.mxu1 %v2808_v22 }
 0x135   : > { %1202 = vmatpush1.bf16.msra.mxu0 %v2773_v3  ;;  %1411 = vmatpush1.bf16.msra.mxu1 %v2806_v23 }
 0x136   : > { %1203 = vmatprep.subr.bf16.mxu0 %v2778_v4  ;;  %2528 = vmatprep.subr.bf16.mxu1 %v2812_v26 }
 0x137   : > { %698 = vmatmul.mubr.bf16.gmra.mrb[16].mxu0 %v3641_v5  ;;  %907 = vmatmul.mubr.bf16.gmra.mrb[16].mxu1 %v3641_v5 }
 0x138   : > { %707 = vmatprep.mubr.bf16.mxu0 %v3231_v0  ;;  %916 = vmatprep.mubr.bf16.mxu1 %v3231_v0 }
 0x139   : > { %1204 = vmatpush1.bf16.msra.mxu0 %v2776_v6 }
 0x13a   : > { %1205 = vmatprep.subr.bf16.mxu0 %v2784_v7 }
 0x13d   : > { %1206 = vmatpush1.bf16.msra.mxu0 %v2782_v8 }
 0x13e   : > { %1207 = vmatprep.subr.bf16.mxu0 %v2787_v9 }
 0x13f   : > { %708 = vmatmul.mubr.bf16.gmra.mrb[20].mxu0 %v2737_v10  ;;  %917 = vmatmul.mubr.bf16.gmra.mrb[20].mxu1 %v2737_v10 }
 0x140   : > { %717 = vmatprep.mubr.bf16.mxu0 %v3231_v0  ;;  %926 = vmatprep.mubr.bf16.mxu1 %v3231_v0 }
 0x141   : > { %1208 = vmatpush1.bf16.msra.mxu0 %v2785_v11 }
 0x142   : > { %1209 = vmatprep.subr.bf16.mxu0 %v2793_v12 }
 0x145   : > { %1210 = vmatpush1.bf16.msra.mxu0 %v2791_v13 }
 0x146   : > { %1211 = vmatprep.subr.bf16.mxu0 %v2796_v14 }
 0x147   : > { %718 = vmatmul.mubr.bf16.gmra.mrb[24].mxu0 %v2738_v15  ;;  %927 = vmatmul.mubr.bf16.gmra.mrb[24].mxu1 %v2738_v15 }
 0x148   : > { %727 = vmatprep.mubr.bf16.mxu0 %v3231_v0  ;;  %936 = vmatprep.mubr.bf16.mxu1 %v3231_v0 }
 0x149   : > { %1212 = vmatpush1.bf16.msra.mxu0 %v2794_v16 }
 0x14a   : > { %1213 = vmatprep.subr.bf16.mxu0 %v2802_v17 }
 0x14d   : > { %1214 = vmatpush1.bf16.msra.mxu0 %v2800_v18 }
 0x14e   : > { %1215 = vmatprep.subr.bf16.mxu0 %v2805_v20 }
 0x14f   : > { %728 = vmatmul.mubr.bf16.gmra.mrb[28].mxu0 %v2739_v19  ;;  %937 = vmatmul.mubr.bf16.gmra.mrb[28].mxu1 %v2739_v19 }
 0x150   : > { %1428 = vmatprep.mubr.bf16.mxu1 %v3231_v0 }
 0x151   : > { %1216 = vmatpush1.bf16.msra.mxu0 %v2803_v21 }
 0x152   : > { %1217 = vmatprep.subr.bf16.mxu0 %v2811_v24 }
 0x155   : > { %1218 = vmatpush1.bf16.msra.mxu0 %v2809_v25 }
 0x156   : > { %2437 = vmatprep.subr.bf16.mxu0 %v2812_v26 }
 0x157   : > { %1429 = vmatmul.mubr.bf16.vlgmr.msra.gmra.mrb[32].mxu1 %v3613_v34  ;;  %v2820_v34 = vld [vmem:[#allocation13 + $0x60] sm:$0xff]  }
 0x158   : > { %1438 = vmatprep.mubr.bf16.mxu1 %v3231_v0  ;;  %2536 = vmatpush3.bf16.msra.mxu1 %v2813_v27 }
 0x159   : > { %2529 = vmatprep.subr.bf16.mxu1 %v2814_v28 }
 0x15c   : > { %2537 = vmatpush3.bf16.msra.mxu1 %v2815_v29 }
 0x15d   : > { %2530 = vmatprep.subr.bf16.mxu1 %v2816_v30 }
 0x15f   : > { %1439 = vmatmul.mubr.bf16.gmra.mrb[36].mxu1 %v3620_v43 }
 0x160   : > { %1448 = vmatprep.mubr.bf16.mxu1 %v3231_v0  ;;  %2538 = vmatpush3.bf16.msra.mxu1 %v2817_v31 }
 0x161   : > { %2531 = vmatprep.subr.bf16.mxu1 %v2818_v32 }
 0x164   : > { %2539 = vmatpush3.bf16.msra.mxu1 %v2819_v33 }
 0x165   : > { %2532 = vmatprep.subr.bf16.mxu1 %v2820_v34 }
 0x167   : > { %1449 = vmatmul.mubr.bf16.gmra.mrb[40].mxu1 %v3627_v52 }
 0x168   : > { %1458 = vmatprep.mubr.bf16.mxu1 %v3231_v0 }
 0x16f   : > { %1459 = vmatmul.mubr.bf16.gmra.mrb[44].mxu1 %v3634_v60 }
 0x170   : > { %1468 = vmatprep.mubr.bf16.mxu1 %v3231_v0 }
 0x177   : > { %1469 = vmatmul.mubr.bf16.gmra.mrb[48].mxu1 %v3641_v5 }
 0x178   : > { %1478 = vmatprep.mubr.bf16.mxu1 %v3231_v0 }
 0x17f   : > { %1479 = vmatmul.mubr.bf16.gmra.mrb[52].mxu1 %v2737_v10 }
 0x180   : > { %1488 = vmatprep.mubr.bf16.mxu1 %v3231_v0 }
 0x187   : > { %1489 = vmatmul.mubr.bf16.gmra.mrb[56].mxu1 %v2738_v15 }
 0x188   : > { %1498 = vmatprep.mubr.bf16.mxu1 %v3231_v0  ;;  %v3667_v0 = vld [vmem:[#allocation13 + $0x20] sm:$0xff]  }
 0x189   : > { %2540 = vmatpush3.bf16.msra.mxu1 %v3667_v0 }
 0x18a   : > { %2533 = vmatprep.subr.bf16.mxu1 %v3669_v35 }
 0x18d   : > { %2541 = vmatpush3.bf16.msra.mxu1 %v3673_v36 }
 0x18f   : > { %1499 = vmatmul.mubr.bf16.gmra.mrb[60].mxu1 %v2739_v19 }
 0x1ea   : > { %v659_v37 = vpop.f32.mrb[0].mxu0  ;;  %v868_v38 = vpop.f32.mrb[0].mxu1 }
 0x1eb   : > { %v947_v39 = vmul.f32 %v868_v38, %v659_v37  ;;  %v661_v40 = vpop.f32.mrb[1].mxu0  ;;  %v870_v41 = vpop.f32.mrb[1].mxu1 }
 0x1ec   : > { %v948_v42 = vmul.f32 %v870_v41, %v661_v40  ;;  %v663_v43 = vpop.f32.mrb[2].mxu0  ;;  %v872_v44 = vpop.f32.mrb[2].mxu1 }
 0x1ed   : > { %v949_v45 = vmul.f32 %v872_v44, %v663_v43  ;;  %v665_v46 = vpop.f32.mrb[3].mxu0  ;;  %v874_v47 = vpop.f32.mrb[3].mxu1 }
 0x1ee   : > { %v950_v48 = vmul.f32 %v874_v47, %v665_v46 }
 0x1ef   : > { %v979_v49 = vpack.c.bf16 %v949_v45, %v947_v39 }
 0x1f0   : > { %v980_v50 = vpack.c.bf16 %v950_v48, %v948_v42 }
 0x1f2   : > { %v669_v51 = vpop.f32.mrb[4].mxu0  ;;  %v878_v52 = vpop.f32.mrb[4].mxu1  ;;  %1219 = vmatprep.mubr.bf16.mxu0 %v980_v50 }
 0x1f3   : > { %v951_v53 = vmul.f32 %v878_v52, %v669_v51  ;;  %v671_v54 = vpop.f32.mrb[5].mxu0  ;;  %v880_v55 = vpop.f32.mrb[5].mxu1  ;;  %1220 = vmatmul.mubr.bf16.vlgmr.msra.gmra.mrb[32].mxu0 %v979_v49 }
 0x1f4   : > { %v952_v56 = vmul.f32 %v880_v55, %v671_v54  ;;  %v673_v57 = vpop.f32.mrb[6].mxu0  ;;  %v882_v58 = vpop.f32.mrb[6].mxu1  ;;  %2438 = vmatpush3.bf16.msra.mxu0 %v2813_v27 }
 0x1f5   : > { %v953_v59 = vmul.f32 %v882_v58, %v673_v57  ;;  %v675_v60 = vpop.f32.mrb[7].mxu0  ;;  %v884_v61 = vpop.f32.mrb[7].mxu1  ;;  %2439 = vmatprep.subr.bf16.mxu0 %v2814_v28 }
 0x1f6   : > { %v954_v62 = vmul.f32 %v884_v61, %v675_v60 }
 0x1f7   : > { %v981_v63 = vpack.c.bf16 %v953_v59, %v951_v53 }
 0x1f8   : > { %v982_v1 = vpack.c.bf16 %v954_v62, %v952_v56  ;;  %2440 = vmatpush3.bf16.msra.mxu0 %v2815_v29 }
 0x1f9   : > { %2441 = vmatprep.subr.bf16.mxu0 %v2816_v30 }
 0x1fa   : > { %v679_v2 = vpop.f32.mrb[8].mxu0  ;;  %v888_v3 = vpop.f32.mrb[8].mxu1  ;;  %1229 = vmatprep.mubr.bf16.mxu0 %v982_v1 }
 0x1fb   : > { %v955_v4 = vmul.f32 %v888_v3, %v679_v2  ;;  %v681_v5 = vpop.f32.mrb[9].mxu0  ;;  %v890_v6 = vpop.f32.mrb[9].mxu1  ;;  %1230 = vmatmul.mubr.bf16.gmra.mrb[36].mxu0 %v981_v63 }
 0x1fc   : > { %v956_v7 = vmul.f32 %v890_v6, %v681_v5  ;;  %v683_v8 = vpop.f32.mrb[10].mxu0  ;;  %v892_v9 = vpop.f32.mrb[10].mxu1  ;;  %2442 = vmatpush3.bf16.msra.mxu0 %v2817_v31 }
 0x1fd   : > { %v957_v10 = vmul.f32 %v892_v9, %v683_v8  ;;  %v685_v11 = vpop.f32.mrb[11].mxu0  ;;  %v894_v12 = vpop.f32.mrb[11].mxu1  ;;  %2443 = vmatprep.subr.bf16.mxu0 %v2818_v32 }
 0x1fe   : > { %v958_v13 = vmul.f32 %v894_v12, %v685_v11 }
 0x1ff   : > { %v983_v14 = vpack.c.bf16 %v957_v10, %v955_v4 }
 0x200   : > { %v984_v15 = vpack.c.bf16 %v958_v13, %v956_v7  ;;  %2444 = vmatpush3.bf16.msra.mxu0 %v2819_v33 }
 0x201   : > { %2445 = vmatprep.subr.bf16.mxu0 %v2820_v34 }
 0x202   : > { %v689_v16 = vpop.f32.mrb[12].mxu0  ;;  %v898_v17 = vpop.f32.mrb[12].mxu1  ;;  %1239 = vmatprep.mubr.bf16.mxu0 %v984_v15 }
 0x203   : > { %v959_v18 = vmul.f32 %v898_v17, %v689_v16  ;;  %v691_v19 = vpop.f32.mrb[13].mxu0  ;;  %v900_v20 = vpop.f32.mrb[13].mxu1  ;;  %1240 = vmatmul.mubr.bf16.gmra.mrb[40].mxu0 %v983_v14 }
 0x204   : > { %v960_v21 = vmul.f32 %v900_v20, %v691_v19  ;;  %v693_v22 = vpop.f32.mrb[14].mxu0  ;;  %v902_v23 = vpop.f32.mrb[14].mxu1  ;;  %2446 = vmatpush3.bf16.msra.mxu0 %v3667_v0 }
 0x205   : > { %v961_v24 = vmul.f32 %v902_v23, %v693_v22  ;;  %v695_v25 = vpop.f32.mrb[15].mxu0  ;;  %v904_v26 = vpop.f32.mrb[15].mxu1  ;;  %2447 = vmatprep.subr.bf16.mxu0 %v3669_v35 }
 0x206   : > { %v962_v27 = vmul.f32 %v904_v26, %v695_v25  ;;  %v2824_v25 = vld [vmem:[#allocation13 + $0x70] sm:$0xff]  }
 0x207   : > { %v985_v28 = vpack.c.bf16 %v961_v24, %v959_v18  ;;  %2534 = vmatprep.subr.bf16.mxu1 %v2824_v25 }
 0x208   : > { %v986_v29 = vpack.c.bf16 %v962_v27, %v960_v21  ;;  %2448 = vmatpush3.bf16.msra.mxu0 %v3673_v36  ;;  %v2825_v27 = vld [vmem:[#allocation13 + $0x30] sm:$0xff]  }
 0x209   : > { %2449 = vmatprep.subr.bf16.mxu0 %v2824_v25  ;;  %2542 = vmatpush3.bf16.msra.mxu1 %v2825_v27 }
 0x20a   : > { %v699_v30 = vpop.f32.mrb[16].mxu0  ;;  %v908_v31 = vpop.f32.mrb[16].mxu1  ;;  %1249 = vmatprep.mubr.bf16.mxu0 %v986_v29  ;;  %v2827_v29 = vld [vmem:[#allocation13 + $0x38] sm:$0xff]  }
 0x20b   : > { %v963_v32 = vmul.f32 %v908_v31, %v699_v30  ;;  %v701_v33 = vpop.f32.mrb[17].mxu0  ;;  %v910_v34 = vpop.f32.mrb[17].mxu1  ;;  %1250 = vmatmul.mubr.bf16.gmra.mrb[44].mxu0 %v985_v28  ;;  %v2826_v28 = vld [vmem:[#allocation13 + $0x78] sm:$0xff]  }
 0x20c   : > { %v964_v37 = vmul.f32 %v910_v34, %v701_v33  ;;  %v703_v38 = vpop.f32.mrb[18].mxu0  ;;  %v912_v0 = vpop.f32.mrb[18].mxu1  ;;  %2450 = vmatpush3.bf16.msra.mxu0 %v2825_v27  ;;  %2535 = vmatprep.subr.bf16.mxu1 %v2826_v28 }
 0x20d   : > { %v965_v39 = vmul.f32 %v912_v0, %v703_v38  ;;  %v705_v40 = vpop.f32.mrb[19].mxu0  ;;  %v914_v41 = vpop.f32.mrb[19].mxu1  ;;  %2451 = vmatprep.subr.bf16.mxu0 %v2826_v28  ;;  %2543 = vmatpush3.bf16.msra.mxu1 %v2827_v29 }
 0x20e   : > { %v966_v42 = vmul.f32 %v914_v41, %v705_v40 }
 0x20f   : > { %v987_v35 = vpack.c.bf16 %v965_v39, %v963_v32 }
 0x210   : > { %v988_v43 = vpack.c.bf16 %v966_v42, %v964_v37  ;;  %2452 = vmatpush3.bf16.msra.mxu0 %v2827_v29 }
 0x212   : > { %v709_v44 = vpop.f32.mrb[20].mxu0  ;;  %v918_v45 = vpop.f32.mrb[20].mxu1  ;;  %1259 = vmatprep.mubr.bf16.mxu0 %v988_v43 }
 0x213   : > { %v967_v36 = vmul.f32 %v918_v45, %v709_v44  ;;  %v711_v46 = vpop.f32.mrb[21].mxu0  ;;  %v920_v47 = vpop.f32.mrb[21].mxu1  ;;  %1260 = vmatmul.mubr.bf16.gmra.mrb[48].mxu0 %v987_v35 }
 0x214   : > { %v968_v48 = vmul.f32 %v920_v47, %v711_v46  ;;  %v713_v49 = vpop.f32.mrb[22].mxu0  ;;  %v922_v50 = vpop.f32.mrb[22].mxu1 }
 0x215   : > { %v969_v51 = vmul.f32 %v922_v50, %v713_v49  ;;  %v715_v52 = vpop.f32.mrb[23].mxu0  ;;  %v924_v53 = vpop.f32.mrb[23].mxu1 }
 0x216   : > { %v970_v54 = vmul.f32 %v924_v53, %v715_v52 }
 0x217   : > { %v989_v55 = vpack.c.bf16 %v969_v51, %v967_v36 }
 0x218   : > { %v990_v56 = vpack.c.bf16 %v970_v54, %v968_v48 }
 0x21a   : > { %v719_v57 = vpop.f32.mrb[24].mxu0  ;;  %v928_v58 = vpop.f32.mrb[24].mxu1  ;;  %1269 = vmatprep.mubr.bf16.mxu0 %v990_v56 }
 0x21b   : > { %v971_v59 = vmul.f32 %v928_v58, %v719_v57  ;;  %v721_v60 = vpop.f32.mrb[25].mxu0  ;;  %v930_v61 = vpop.f32.mrb[25].mxu1  ;;  %1270 = vmatmul.mubr.bf16.gmra.mrb[52].mxu0 %v989_v55 }
 0x21c   : > { %v972_v62 = vmul.f32 %v930_v61, %v721_v60  ;;  %v723_v63 = vpop.f32.mrb[26].mxu0  ;;  %v932_v1 = vpop.f32.mrb[26].mxu1 }
 0x21d   : > { %v973_v2 = vmul.f32 %v932_v1, %v723_v63  ;;  %v725_v3 = vpop.f32.mrb[27].mxu0  ;;  %v934_v4 = vpop.f32.mrb[27].mxu1 }
 0x21e   : > { %v974_v5 = vmul.f32 %v934_v4, %v725_v3 }
 0x21f   : > { %v991_v6 = vpack.c.bf16 %v973_v2, %v971_v59 }
 0x220   : > { %v992_v7 = vpack.c.bf16 %v974_v5, %v972_v62 }
 0x222   : > { %v729_v8 = vpop.f32.mrb[28].mxu0  ;;  %v938_v9 = vpop.f32.mrb[28].mxu1  ;;  %1279 = vmatprep.mubr.bf16.mxu0 %v992_v7 }
 0x223   : > { %v975_v10 = vmul.f32 %v938_v9, %v729_v8  ;;  %v731_v11 = vpop.f32.mrb[29].mxu0  ;;  %v940_v12 = vpop.f32.mrb[29].mxu1  ;;  %1280 = vmatmul.mubr.bf16.gmra.mrb[56].mxu0 %v991_v6 }
 0x224   : > { %v976_v13 = vmul.f32 %v940_v12, %v731_v11  ;;  %v733_v14 = vpop.f32.mrb[30].mxu0  ;;  %v942_v15 = vpop.f32.mrb[30].mxu1 }
 0x225   : > { %v977_v16 = vmul.f32 %v942_v15, %v733_v14  ;;  %v735_v17 = vpop.f32.mrb[31].mxu0  ;;  %v944_v18 = vpop.f32.mrb[31].mxu1 }
 0x226   : > { %v978_v19 = vmul.f32 %v944_v18, %v735_v17 }
 0x227   : > { %v993_v20 = vpack.c.bf16 %v977_v16, %v975_v10 }
 0x228   : > { %v994_v21 = vpack.c.bf16 %v978_v19, %v976_v13 }
 0x22a   : > { %1289 = vmatprep.mubr.bf16.mxu0 %v994_v21  ;;  %v1430_v22 = vpop.f32.mrb[32].mxu1 }
 0x22b   : > { %1290 = vmatmul.mubr.bf16.gmra.mrb[60].mxu0 %v993_v20  ;;  %v1432_v23 = vpop.f32.mrb[33].mxu1 }
 0x22c   : > { %v1434_v24 = vpop.f32.mrb[34].mxu1 }
 0x22d   : > { %v1436_v26 = vpop.f32.mrb[35].mxu1 }
 0x232   : > { %v1440_v30 = vpop.f32.mrb[36].mxu1 }
 0x233   : > { %v1442_v31 = vpop.f32.mrb[37].mxu1 }
 0x234   : > { %v1444_v32 = vpop.f32.mrb[38].mxu1 }
 0x235   : > { %v1446_v33 = vpop.f32.mrb[39].mxu1 }
 0x23a   : > { %v1450_v34 = vpop.f32.mrb[40].mxu1 }
 0x23b   : > { %v1452_v37 = vpop.f32.mrb[41].mxu1 }
 0x23c   : > { %v1454_v38 = vpop.f32.mrb[42].mxu1 }
 0x23d   : > { %v1456_v0 = vpop.f32.mrb[43].mxu1 }
 0x242   : > { %v1460_v39 = vpop.f32.mrb[44].mxu1 }
 0x243   : > { %v1462_v40 = vpop.f32.mrb[45].mxu1 }
 0x244   : > { %v1464_v41 = vpop.f32.mrb[46].mxu1 }
 0x245   : > { %v1466_v42 = vpop.f32.mrb[47].mxu1 }
 0x24a   : > { %v3679_v35 = vpop.f32.mrb[48].mxu1 }
 0x24b   : > { %v3681_v43 = vpop.f32.mrb[49].mxu1 }
 0x24c   : > { %v3683_v44 = vpop.f32.mrb[50].mxu1 }
 0x24d   : > { %v3685_v45 = vpop.f32.mrb[51].mxu1 }
 0x252   : > { %v3687_v36 = vpop.f32.mrb[52].mxu1 }
 0x253   : > { %v3689_v46 = vpop.f32.mrb[53].mxu1 }
 0x254   : > { %v3691_v47 = vpop.f32.mrb[54].mxu1 }
 0x255   : > { %v3693_v48 = vpop.f32.mrb[55].mxu1 }
 0x25a   : > { %v3695_v49 = vpop.f32.mrb[56].mxu1 }
 0x25b   : > { %v3697_v50 = vpop.f32.mrb[57].mxu1 }
 0x25c   : > { %v3699_v51 = vpop.f32.mrb[58].mxu1 }
 0x25d   : > { %v3701_v52 = vpop.f32.mrb[59].mxu1 }
 0x262   : > { %v3703_v53 = vpop.f32.mrb[60].mxu1 }
 0x263   : > { %v3705_v54 = vpop.f32.mrb[61].mxu1 }
 0x264   : > { %v3707_v55 = vpop.f32.mrb[62].mxu1 }
 0x265   : > { %v3709_v56 = vpop.f32.mrb[63].mxu1 }
 0x2c6   : > { %v1221_v57 = vpop.f32.mrb[32].mxu0 }
 0x2c7   : > { %v1509_v58 = vmul.f32 %v1430_v22, %v1221_v57  ;;  %v1223_v59 = vpop.f32.mrb[33].mxu0 }
 0x2c8   : > { %v1510_v60 = vmul.f32 %v1432_v23, %v1223_v59  ;;  %v1225_v61 = vpop.f32.mrb[34].mxu0 }
 0x2c9   : > { %v1511_v62 = vmul.f32 %v1434_v24, %v1225_v61  ;;  %v1227_v63 = vpop.f32.mrb[35].mxu0 }
 0x2ca   : > { %v1512_v1 = vmul.f32 %v1436_v26, %v1227_v63 }
 0x2cb   : > { %v1541_v2 = vpack.c.bf16 %v1511_v62, %v1509_v58 }
 0x2cc   : > { %v1542_v3 = vpack.c.bf16 %v1512_v1, %v1510_v60 }
 0x2ce   : > { %v1231_v4 = vpop.f32.mrb[36].mxu0  ;;  %1717 = vmatprep.mubr.bf16.mxu0 %v1542_v3 }
 0x2cf   : > { %v1513_v5 = vmul.f32 %v1440_v30, %v1231_v4  ;;  %v1233_v6 = vpop.f32.mrb[37].mxu0  ;;  %1718 = vmatmul.mubr.bf16.vlgmr.msra.gmra.mrb[64].mxu0 %v1541_v2 }
 0x2d0   : > { %v1514_v7 = vmul.f32 %v1442_v31, %v1233_v6  ;;  %v1235_v8 = vpop.f32.mrb[38].mxu0 }
 0x2d1   : > { %v1515_v9 = vmul.f32 %v1444_v32, %v1235_v8  ;;  %v1237_v10 = vpop.f32.mrb[39].mxu0 }
 0x2d2   : > { %v1516_v11 = vmul.f32 %v1446_v33, %v1237_v10 }
 0x2d3   : > { %v1543_v12 = vpack.c.bf16 %v1515_v9, %v1513_v5 }
 0x2d4   : > { %v1544_v13 = vpack.c.bf16 %v1516_v11, %v1514_v7 }
 0x2d6   : > { %v1241_v14 = vpop.f32.mrb[40].mxu0  ;;  %1725 = vmatprep.mubr.bf16.mxu0 %v1544_v13 }
 0x2d7   : > { %v1517_v15 = vmul.f32 %v1450_v34, %v1241_v14  ;;  %v1243_v16 = vpop.f32.mrb[41].mxu0  ;;  %1726 = vmatmul.mubr.bf16.gmra.mrb[68].mxu0 %v1543_v12 }
 0x2d8   : > { %v1518_v17 = vmul.f32 %v1452_v37, %v1243_v16  ;;  %v1245_v18 = vpop.f32.mrb[42].mxu0 }
 0x2d9   : > { %v1519_v19 = vmul.f32 %v1454_v38, %v1245_v18  ;;  %v1247_v20 = vpop.f32.mrb[43].mxu0 }
 0x2da   : > { %v1520_v21 = vmul.f32 %v1456_v0, %v1247_v20 }
 0x2db   : > { %v1545_v22 = vpack.c.bf16 %v1519_v19, %v1517_v15 }
 0x2dc   : > { %v1546_v23 = vpack.c.bf16 %v1520_v21, %v1518_v17 }
 0x2de   : > { %v1251_v24 = vpop.f32.mrb[44].mxu0  ;;  %1733 = vmatprep.mubr.bf16.mxu0 %v1546_v23 }
 0x2df   : > { %v1521_v25 = vmul.f32 %v1460_v39, %v1251_v24  ;;  %v1253_v26 = vpop.f32.mrb[45].mxu0  ;;  %1734 = vmatmul.mubr.bf16.gmra.mrb[72].mxu0 %v1545_v22 }
 0x2e0   : > { %v1522_v27 = vmul.f32 %v1462_v40, %v1253_v26  ;;  %v1255_v28 = vpop.f32.mrb[46].mxu0 }
 0x2e1   : > { %v1523_v29 = vmul.f32 %v1464_v41, %v1255_v28  ;;  %v1257_v30 = vpop.f32.mrb[47].mxu0 }
 0x2e2   : > { %v1524_v31 = vmul.f32 %v1466_v42, %v1257_v30 }
 0x2e3   : > { %v1547_v32 = vpack.c.bf16 %v1523_v29, %v1521_v25 }
 0x2e4   : > { %v1548_v33 = vpack.c.bf16 %v1524_v31, %v1522_v27 }
 0x2e6   : > { %v1261_v34 = vpop.f32.mrb[48].mxu0  ;;  %1741 = vmatprep.mubr.bf16.mxu0 %v1548_v33 }
 0x2e7   : > { %v1525_v37 = vmul.f32 %v3679_v35, %v1261_v34  ;;  %v1263_v38 = vpop.f32.mrb[49].mxu0  ;;  %1742 = vmatmul.mubr.bf16.gmra.mrb[76].mxu0 %v1547_v32 }
 0x2e8   : > { %v1526_v0 = vmul.f32 %v3681_v43, %v1263_v38  ;;  %v1265_v57 = vpop.f32.mrb[50].mxu0 }
 0x2e9   : > { %v1527_v39 = vmul.f32 %v3683_v44, %v1265_v57  ;;  %v1267_v58 = vpop.f32.mrb[51].mxu0 }
 0x2ea   : > { %v1528_v40 = vmul.f32 %v3685_v45, %v1267_v58 }
 0x2eb   : > { %v1549_v59 = vpack.c.bf16 %v1527_v39, %v1525_v37 }
 0x2ec   : > { %v1550_v41 = vpack.c.bf16 %v1528_v40, %v1526_v0 }
 0x2ee   : > { %v1271_v60 = vpop.f32.mrb[52].mxu0  ;;  %1749 = vmatprep.mubr.bf16.mxu0 %v1550_v41 }
 0x2ef   : > { %v1529_v42 = vmul.f32 %v3687_v36, %v1271_v60  ;;  %v1273_v61 = vpop.f32.mrb[53].mxu0  ;;  %1750 = vmatmul.mubr.bf16.gmra.mrb[80].mxu0 %v1549_v59 }
 0x2f0   : > { %v1530_v35 = vmul.f32 %v3689_v46, %v1273_v61  ;;  %v1275_v62 = vpop.f32.mrb[54].mxu0 }
 0x2f1   : > { %v1531_v63 = vmul.f32 %v3691_v47, %v1275_v62  ;;  %v1277_v43 = vpop.f32.mrb[55].mxu0 }
 0x2f2   : > { %v1532_v1 = vmul.f32 %v3693_v48, %v1277_v43 }
 0x2f3   : > { %v1551_v44 = vpack.c.bf16 %v1531_v63, %v1529_v42 }
 0x2f4   : > { %v1552_v2 = vpack.c.bf16 %v1532_v1, %v1530_v35 }
 0x2f6   : > { %v1281_v3 = vpop.f32.mrb[56].mxu0  ;;  %1757 = vmatprep.mubr.bf16.mxu0 %v1552_v2 }
 0x2f7   : > { %v1533_v45 = vmul.f32 %v3695_v49, %v1281_v3  ;;  %v1283_v4 = vpop.f32.mrb[57].mxu0  ;;  %1758 = vmatmul.mubr.bf16.gmra.mrb[84].mxu0 %v1551_v44 }
 0x2f8   : > { %v1534_v36 = vmul.f32 %v3697_v50, %v1283_v4  ;;  %v1285_v5 = vpop.f32.mrb[58].mxu0 }
 0x2f9   : > { %v1535_v6 = vmul.f32 %v3699_v51, %v1285_v5  ;;  %v1287_v46 = vpop.f32.mrb[59].mxu0 }
 0x2fa   : > { %v1536_v7 = vmul.f32 %v3701_v52, %v1287_v46  ;;  %v2828_v52 = vld [vmem:[#allocation16] sm:$0xff]  }
 0x2fb   : > { %v1553_v47 = vpack.c.bf16 %v1535_v6, %v1533_v45  ;;  %2510 = vmatprep.subr.bf16.mxu1 %v2828_v52 }
 0x2fc   : > { %v1554_v8 = vpack.c.bf16 %v1536_v7, %v1534_v36 }
 0x2fe   : > { %v1291_v9 = vpop.f32.mrb[60].mxu0  ;;  %1765 = vmatprep.mubr.bf16.mxu1 %v1554_v8 }
 0x2ff   : > { %v1537_v48 = vmul.f32 %v3703_v53, %v1291_v9  ;;  %v1293_v10 = vpop.f32.mrb[61].mxu0  ;;  %1766 = vmatmul.mubr.bf16.vlgmr.msra.gmra.mrb[64].mxu1 %v1553_v47 }
 0x300   : > { %v1538_v49 = vmul.f32 %v3705_v54, %v1293_v10  ;;  %v1295_v11 = vpop.f32.mrb[62].mxu0  ;;  %2511 = vmatpush3.bf16.msra.mxu1 %v2828_v52 }
 0x301   : > { %v1539_v12 = vmul.f32 %v3707_v55, %v1295_v11  ;;  %v1297_v50 = vpop.f32.mrb[63].mxu0 }
 0x302   : > { %v1540_v13 = vmul.f32 %v3709_v56, %v1297_v50 }
 0x303   : > { %v1555_v51 = vpack.c.bf16 %v1539_v12, %v1537_v48 }
 0x304   : > { %v1556_v14 = vpack.c.bf16 %v1540_v13, %v1538_v49 }
 0x306   : > { %1773 = vmatprep.mubr.bf16.mxu1 %v1556_v14 }
 0x307   : > { %1774 = vmatmul.mubr.bf16.gmra.mrb[68].mxu1 %v1555_v51 }
 0x3a2   : > { %v2453_v15 = vpop.f32.mrb[64].mxu0 }
 0x3a3   : > { %v2454_v16 = vpop.f32.mrb[65].mxu0 }
 0x3a4   : > { %v2455_v53 = vadd.f32 %v2454_v16, %v2453_v15  ;;  %v2456_v17 = vpop.f32.mrb[66].mxu0 }
 0x3a5   : > { %v2457_v18 = vpop.f32.mrb[67].mxu0 }
 0x3a6   : > { %1783 = vst.msk [vmem:[#allocation2] sm:$0xff] %vm1782_vm0, %v2455_v53  ;;  %v2458_v54 = vadd.f32 %v2457_v18, %v2456_v17 }
 0x3a8   : > { %1784 = vst.msk [vmem:[#allocation2 + $0x8] sm:$0xff] %vm1782_vm0, %v2458_v54 }
 0x3aa   : > { %v2459_v55 = vpop.f32.mrb[68].mxu0 }
 0x3ab   : > { %v2460_v56 = vpop.f32.mrb[69].mxu0 }
 0x3ac   : > { %v2461_v19 = vadd.f32 %v2460_v56, %v2459_v55  ;;  %v2462_v20 = vpop.f32.mrb[70].mxu0 }
 0x3ad   : > { %v2463_v21 = vpop.f32.mrb[71].mxu0  ;;  %v1799_v23 = vld [vmem:[#allocation2] sm:$0xff] }
 0x3ae   : > { %1785 = vst.msk [vmem:[#allocation2 + $0x10] sm:$0xff] %vm1782_vm0, %v2461_v19  ;;  %v2464_v22 = vadd.f32 %v2463_v21, %v2462_v20  ;;  %v2420_v19 = vld [vmem:[#allocation17] ss:$0 sm:$0xff] }
 0x3af   : > { %v1800_v24 = vld [vmem:[#allocation2 + $0x8] sm:$0xff] }
 0x3b0   : > { %1786 = vst.msk [vmem:[#allocation2 + $0x18] sm:$0xff] %vm1782_vm0, %v2464_v22  ;;  %v1815_v25 = vpack.c.bf16 %v1800_v24, %v1799_v23 }
 0x3b2   : > { %v2465_v26 = vpop.f32.mrb[72].mxu0  ;;  %2512 = vmatprep.mubr.msk.bf16.mxu1 %vm1782_vm0, %v1815_v25 }
 0x3b3   : > { %v2466_v27 = vpop.f32.mrb[73].mxu0 }
 0x3b4   : > { %v2467_v28 = vadd.f32 %v2466_v27, %v2465_v26  ;;  %v2468_v29 = vpop.f32.mrb[74].mxu0 }
 0x3b5   : > { %v2469_v30 = vpop.f32.mrb[75].mxu0  ;;  %v1801_v32 = vld [vmem:[#allocation2 + $0x10] sm:$0xff] }
 0x3b6   : > { %1787 = vst.msk [vmem:[#allocation2 + $0x20] sm:$0xff] %vm1782_vm0, %v2467_v28  ;;  %v2470_v31 = vadd.f32 %v2469_v30, %v2468_v29 }
 0x3b7   : > { %v1802_v33 = vld [vmem:[#allocation2 + $0x18] sm:$0xff] }
 0x3b8   : > { %1788 = vst.msk [vmem:[#allocation2 + $0x28] sm:$0xff] %vm1782_vm0, %v2470_v31  ;;  %v1816_v34 = vpack.c.bf16 %v1802_v33, %v1801_v32 }
 0x3ba   : > { %v2471_v37 = vpop.f32.mrb[76].mxu0  ;;  %2513 = vmatmul.mubr.msk.bf16.vlgmr.msra.gmra.mrb[72].mxu1 %vm1782_vm0, %v1816_v34 }
 0x3bb   : > { %v2472_v38 = vpop.f32.mrb[77].mxu0 }
 0x3bc   : > { %v2473_v0 = vadd.f32 %v2472_v38, %v2471_v37  ;;  %v2474_v57 = vpop.f32.mrb[78].mxu0 }
 0x3bd   : > { %v2475_v39 = vpop.f32.mrb[79].mxu0  ;;  %v1803_v40 = vld [vmem:[#allocation2 + $0x20] sm:$0xff] }
 0x3be   : > { %1789 = vst.msk [vmem:[#allocation2 + $0x30] sm:$0xff] %vm1782_vm0, %v2473_v0  ;;  %v2476_v58 = vadd.f32 %v2475_v39, %v2474_v57 }
 0x3bf   : > { %v1804_v59 = vld [vmem:[#allocation2 + $0x28] sm:$0xff] }
 0x3c0   : > { %1790 = vst.msk [vmem:[#allocation2 + $0x38] sm:$0xff] %vm1782_vm0, %v2476_v58  ;;  %v1817_v41 = vpack.c.bf16 %v1804_v59, %v1803_v40 }
 0x3c2   : > { %v2477_v60 = vpop.f32.mrb[80].mxu0  ;;  %2516 = vmatprep.mubr.msk.bf16.mxu1 %vm1782_vm0, %v1817_v41 }
 0x3c3   : > { %v2478_v42 = vpop.f32.mrb[81].mxu0 }
 0x3c4   : > { %v2479_v61 = vadd.f32 %v2478_v42, %v2477_v60  ;;  %v2480_v35 = vpop.f32.mrb[82].mxu0 }
 0x3c5   : > { %v2481_v62 = vpop.f32.mrb[83].mxu0  ;;  %v1805_v43 = vld [vmem:[#allocation2 + $0x30] sm:$0xff] }
 0x3c6   : > { %1791 = vst.msk [vmem:[#allocation2 + $0x40] sm:$0xff] %vm1782_vm0, %v2479_v61  ;;  %v2482_v63 = vadd.f32 %v2481_v62, %v2480_v35 }
 0x3c7   : > { %v1806_v1 = vld [vmem:[#allocation2 + $0x38] sm:$0xff] }
 0x3c8   : > { %1792 = vst.msk [vmem:[#allocation2 + $0x48] sm:$0xff] %vm1782_vm0, %v2482_v63  ;;  %v1818_v44 = vpack.c.bf16 %v1806_v1, %v1805_v43 }
 0x3ca   : > { %v2483_v2 = vpop.f32.mrb[84].mxu0  ;;  %2517 = vmatmul.mubr.msk.bf16.gmra.mrb[76].mxu1 %vm1782_vm0, %v1818_v44 }
 0x3cb   : > { %v2484_v3 = vpop.f32.mrb[85].mxu0 }
 0x3cc   : > { %v2485_v45 = vadd.f32 %v2484_v3, %v2483_v2  ;;  %v2486_v4 = vpop.f32.mrb[86].mxu0 }
 0x3cd   : > { %v2487_v36 = vpop.f32.mrb[87].mxu0  ;;  %v1807_v6 = vld [vmem:[#allocation2 + $0x40] sm:$0xff] }
 0x3ce   : > { %1793 = vst.msk [vmem:[#allocation2 + $0x50] sm:$0xff] %vm1782_vm0, %v2485_v45  ;;  %v2488_v5 = vadd.f32 %v2487_v36, %v2486_v4 }
 0x3cf   : > { %v1808_v46 = vld [vmem:[#allocation2 + $0x48] sm:$0xff] }
 0x3d0   : > { %1794 = vst.msk [vmem:[#allocation2 + $0x58] sm:$0xff] %vm1782_vm0, %v2488_v5  ;;  %v1819_v7 = vpack.c.bf16 %v1808_v46, %v1807_v6 }
 0x3d2   : > { %v2489_v47 = vpop.f32.mrb[64].mxu1  ;;  %2520 = vmatprep.mubr.msk.bf16.mxu1 %vm1782_vm0, %v1819_v7 }
 0x3d3   : > { %v2490_v8 = vpop.f32.mrb[65].mxu1 }
 0x3d4   : > { %v2491_v9 = vadd.f32 %v2490_v8, %v2489_v47  ;;  %v2492_v48 = vpop.f32.mrb[66].mxu1 }
 0x3d5   : > { %v2493_v10 = vpop.f32.mrb[67].mxu1  ;;  %v1809_v11 = vld [vmem:[#allocation2 + $0x50] sm:$0xff] }
 0x3d6   : > { %1795 = vst.msk [vmem:[#allocation2 + $0x60] sm:$0xff] %vm1782_vm0, %v2491_v9  ;;  %v2494_v49 = vadd.f32 %v2493_v10, %v2492_v48 }
 0x3d7   : > { %v1810_v12 = vld [vmem:[#allocation2 + $0x58] sm:$0xff] }
 0x3d8   : > { %1796 = vst.msk [vmem:[#allocation2 + $0x68] sm:$0xff] %vm1782_vm0, %v2494_v49  ;;  %v1820_v50 = vpack.c.bf16 %v1810_v12, %v1809_v11 }
 0x3da   : > { %v2495_v13 = vpop.f32.mrb[68].mxu1  ;;  %2521 = vmatmul.mubr.msk.bf16.gmra.mrb[80].mxu1 %vm1782_vm0, %v1820_v50 }
 0x3db   : > { %v2496_v51 = vpop.f32.mrb[69].mxu1 }
 0x3dc   : > { %v2497_v14 = vadd.f32 %v2496_v51, %v2495_v13  ;;  %v2498_v52 = vpop.f32.mrb[70].mxu1 }
 0x3dd   : > { %v2499_v15 = vpop.f32.mrb[71].mxu1  ;;  %v1811_v53 = vld [vmem:[#allocation2 + $0x60] sm:$0xff] }
 0x3de   : > { %1797 = vst.msk [vmem:[#allocation2 + $0x70] sm:$0xff] %vm1782_vm0, %v2497_v14  ;;  %v2500_v16 = vadd.f32 %v2499_v15, %v2498_v52 }
 0x3df   : > { %v1812_v17 = vld [vmem:[#allocation2 + $0x68] sm:$0xff] }
 0x3e0   : > { %1798 = vst.msk [vmem:[#allocation2 + $0x78] sm:$0xff] %vm1782_vm0, %v2500_v16  ;;  %v1821_v18 = vpack.c.bf16 %v1812_v17, %v1811_v53 }
 0x3e2   : > { %2524 = vmatprep.mubr.msk.bf16.mxu1 %vm1782_vm0, %v1821_v18 }
 0x3e5   : > { %v1813_v54 = vld [vmem:[#allocation2 + $0x70] sm:$0xff] }
 0x3e7   : > { %v1814_v55 = vld [vmem:[#allocation2 + $0x78] sm:$0xff] }
 0x3e8   : > { %v1822_v56 = vpack.c.bf16 %v1814_v55, %v1813_v54 }
 0x3ea   : > { %2525 = vmatmul.mubr.msk.bf16.gmra.mrb[84].mxu1 %vm1782_vm0, %v1822_v56 }
 0x48d   : > { %v2514_v20 = vpop.f32.mrb[72].mxu1 }
 0x48e   : > { %v1905_v21 = vadd.f32 %v2514_v20, %v2420_v19  ;;  %v1896_v22 = vpop.f32.mrb[73].mxu1 }
 0x48f   : > { %v1897_v23 = vadd.f32 %v2420_v19, %v1896_v22  ;;  %v2515_v24 = vpop.f32.mrb[74].mxu1 }
 0x490   : > { %1963 = vmax.xlane.f32.xlu1 %v1905_v21  ;;  %v1899_v25 = vpop.f32.mrb[75].mxu1  ;;  %v1908_v26 = vadd.f32 %v2515_v24, %v2420_v19 }
 0x491   : > { %1959 = vmax.xlane.f32.xlu0 %v1897_v23  ;;  %v1900_v27 = vadd.f32 %v2420_v19, %v1899_v25 }
 0x494   : > { %1965 = vmax.xlane.f32.xlu1 %v1908_v26 }
 0x495   : > { %1961 = vmax.xlane.f32.xlu0 %v1900_v27 }
 0x49d   : > { %v2518_v28 = vpop.f32.mrb[76].mxu1 }
 0x49e   : > { %v1921_v29 = vadd.f32 %v2518_v28, %v2420_v19  ;;  %v1912_v30 = vpop.f32.mrb[77].mxu1 }
 0x49f   : > { %v2519_v31 = vpop.f32.mrb[78].mxu1  ;;  %v3751_v34 = vadd.f32 %v2420_v19, %v1912_v30 }
 0x4a0   : > { %v1924_v32 = vadd.f32 %v2519_v31, %v2420_v19  ;;  %v1915_v33 = vpop.f32.mrb[79].mxu1  ;;  %1971 = vmax.xlane.f32.xlu0 %v1921_v29 }
 0x4a1   : > { %v3753_v37 = vadd.f32 %v2420_v19, %v1915_v33 }
 0x4a2   : > { %1973 = vmax.xlane.f32.xlu1 %v1924_v32 }
 0x4a4   : > { %1967 = vmax.xlane.f32.xlu0 %v3751_v34 }
 0x4a6   : > { %1969 = vmax.xlane.f32.xlu1 %v3753_v37 }
 0x4ad   : > { %v2522_v38 = vpop.f32.mrb[80].mxu1 }
 0x4ae   : > { %v3757_v0 = vadd.f32 %v2522_v38, %v2420_v19  ;;  %v1928_v57 = vpop.f32.mrb[81].mxu1 }
 0x4af   : > { %v2523_v39 = vpop.f32.mrb[82].mxu1  ;;  %v3762_v59 = vadd.f32 %v2420_v19, %v1928_v57 }
 0x4b0   : > { %v3759_v58 = vadd.f32 %v2523_v39, %v2420_v19  ;;  %v1931_v40 = vpop.f32.mrb[83].mxu1  ;;  %1979 = vmax.xlane.f32.xlu0 %v3757_v0 }
 0x4b1   : > { %v3765_v41 = vadd.f32 %v2420_v19, %v1931_v40 }
 0x4b2   : > { %1981 = vmax.xlane.f32.xlu1 %v3759_v58 }
 0x4b4   : > { %1975 = vmax.xlane.f32.xlu0 %v3762_v59 }
 0x4b6   : > { %1977 = vmax.xlane.f32.xlu1 %v3765_v41 }
 0x4bd   : > { %v2526_v60 = vpop.f32.mrb[84].mxu1 }
 0x4be   : > { %v1944_v42 = vpop.f32.mrb[85].mxu1  ;;  %v3774_v43 = vadd.f32 %v2526_v60, %v2420_v19 }
 0x4bf   : > { %v3769_v61 = vadd.f32 %v2420_v19, %v1944_v42  ;;  %v2527_v35 = vpop.f32.mrb[86].mxu1 }
 0x4c0   : > { %v1947_v62 = vpop.f32.mrb[87].mxu1  ;;  %v3777_v1 = vadd.f32 %v2527_v35, %v2420_v19 }
 0x4c1   : > { %v3771_v63 = vadd.f32 %v2420_v19, %v1947_v62  ;;  %1983 = vmax.xlane.f32.xlu0 %v3769_v61 }
 0x4c3   : > { %1985 = vmax.xlane.f32.xlu1 %v3771_v63 }
 0x4c5   : > { %1987 = vmax.xlane.f32.xlu0 %v3774_v43 }
 0x4c7   : > { %1989 = vmax.xlane.f32.xlu1 %v3777_v1 }
 0x51d   : > { %v1964_v44 = vpop.xlane.xlu1 %1963 }
 0x51e   : > { %v1993_v2 = vsub.f32 %v1905_v21, %v1964_v44  ;;  %v1960_v3 = vpop.xlane.xlu0 %1959 }
 0x51f   : > { %v1991_v45 = vsub.f32 %v1897_v23, %v1960_v3 }
 0x520   : > { %v2011_v4 = vmul.f32 1.442695, %v1993_v2 }
 0x521   : > { %v2007_v36 = vmul.f32 1.442695, %v1991_v45  ;;  %v1966_v5 = vpop.xlane.xlu1 %1965 }
 0x522   : > { %2829 = vpow2.f32 %v2011_v4  ;;  %v1994_v6 = vsub.f32 %v1908_v26, %v1966_v5  ;;  %v1962_v46 = vpop.xlane.xlu0 %1961 }
 0x523   : > { %v1992_v7 = vsub.f32 %v1900_v27, %v1962_v46  ;;  %2831 = vpow2.f32 %v2007_v36 }
 0x524   : > { %v2013_v47 = vmul.f32 1.442695, %v1994_v6 }
 0x525   : > { %v2009_v8 = vmul.f32 1.442695, %v1992_v7 }
 0x526   : > { %2833 = vpow2.f32 %v2013_v47 }
 0x527   : > { %2835 = vpow2.f32 %v2009_v8 }
 0x52c   : > { %v3781_v9 = vpop.eup %2829 }
 0x52d   : > { %v1972_v48 = vpop.xlane.xlu0 %1971  ;;  %2043 = vadd.xlane.f32.xlu0 %v3781_v9  ;;  %v3784_v49 = vpop.eup %2831 }
 0x52e   : > { %v1997_v10 = vsub.f32 %v1921_v29, %v1972_v48 }
 0x52f   : > { %v1974_v11 = vpop.xlane.xlu1 %1973 }
 0x530   : > { %v3786_v12 = vpop.eup %2833  ;;  %v2019_v50 = vmul.f32 1.442695, %v1997_v10  ;;  %v1998_v13 = vsub.f32 %v1924_v32, %v1974_v11 }
 0x531   : > { %v1968_v51 = vpop.xlane.xlu0 %1967  ;;  %2045 = vadd.xlane.f32.xlu1 %v3786_v12  ;;  %2039 = vadd.xlane.f32.xlu0 %v3784_v49  ;;  %v3791_v16 = vpop.eup %2835 }
 0x532   : > { %2837 = vpow2.f32 %v2019_v50  ;;  %v2021_v14 = vmul.f32 1.442695, %v1998_v13  ;;  %v1995_v52 = vsub.f32 %v3751_v34, %v1968_v51 }
 0x533   : > { %v1970_v15 = vpop.xlane.xlu1 %1969 }
 0x534   : > { %2839 = vpow2.f32 %v2021_v14  ;;  %v2015_v53 = vmul.f32 1.442695, %v1995_v52  ;;  %v1996_v17 = vsub.f32 %v3753_v37, %v1970_v15 }
 0x535   : > { %2041 = vadd.xlane.f32.xlu1 %v3791_v16 }
 0x536   : > { %2841 = vpow2.f32 %v2015_v53  ;;  %v2017_v18 = vmul.f32 1.442695, %v1996_v17 }
 0x538   : > { %2843 = vpow2.f32 %v2017_v18 }
 0x53c   : > { %v3795_v54 = vpop.eup %2837 }
 0x53d   : > { %v1980_v55 = vpop.xlane.xlu0 %1979  ;;  %2051 = vadd.xlane.f32.xlu0 %v3795_v54 }
 0x53e   : > { %v3798_v56 = vpop.eup %2839  ;;  %v2001_v19 = vsub.f32 %v3757_v0, %v1980_v55 }
 0x53f   : > { %v1982_v20 = vpop.xlane.xlu1 %1981  ;;  %2053 = vadd.xlane.f32.xlu1 %v3798_v56 }
 0x540   : > { %v3802_v21 = vpop.eup %2841  ;;  %v2027_v22 = vmul.f32 1.442695, %v2001_v19  ;;  %v2002_v23 = vsub.f32 %v3759_v58, %v1982_v20 }
 0x541   : > { %v1976_v24 = vpop.xlane.xlu0 %1975  ;;  %2047 = vadd.xlane.f32.xlu0 %v3802_v21 }
 0x542   : > { %v3806_v25 = vpop.eup %2843  ;;  %2845 = vpow2.f32 %v2027_v22  ;;  %v2029_v26 = vmul.f32 1.442695, %v2002_v23  ;;  %v1999_v27 = vsub.f32 %v3762_v59, %v1976_v24 }
 0x543   : > { %v1978_v28 = vpop.xlane.xlu1 %1977  ;;  %2049 = vadd.xlane.f32.xlu1 %v3806_v25 }
 0x544   : > { %2847 = vpow2.f32 %v2029_v26  ;;  %v2023_v29 = vmul.f32 1.442695, %v1999_v27  ;;  %v2000_v30 = vsub.f32 %v3765_v41, %v1978_v28 }
 0x546   : > { %2849 = vpow2.f32 %v2023_v29  ;;  %v2025_v31 = vmul.f32 1.442695, %v2000_v30 }
 0x548   : > { %2851 = vpow2.f32 %v2025_v31 }
 0x54c   : > { %v3811_v32 = vpop.eup %2845 }
 0x54d   : > { %2059 = vadd.xlane.f32.xlu0 %v3811_v32 }
 0x54e   : > { %v3814_v33 = vpop.eup %2847  ;;  %v1984_v34 = vpop.xlane.xlu0 %1983 }
 0x54f   : > { %v2003_v37 = vsub.f32 %v3769_v61, %v1984_v34  ;;  %2061 = vadd.xlane.f32.xlu1 %v3814_v33 }
 0x550   : > { %v3818_v38 = vpop.eup %2849  ;;  %v1986_v0 = vpop.xlane.xlu1 %1985 }
 0x551   : > { %v2031_v57 = vmul.f32 1.442695, %v2003_v37  ;;  %v2004_v39 = vsub.f32 %v3771_v63, %v1986_v0  ;;  %2055 = vadd.xlane.f32.xlu0 %v3818_v38 }
 0x552   : > { %v3822_v58 = vpop.eup %2851  ;;  %v1988_v40 = vpop.xlane.xlu0 %1987 }
 0x553   : > { %2853 = vpow2.f32 %v2031_v57  ;;  %v2033_v59 = vmul.f32 1.442695, %v2004_v39  ;;  %v2005_v41 = vsub.f32 %v3774_v43, %v1988_v40  ;;  %2057 = vadd.xlane.f32.xlu1 %v3822_v58 }
 0x554   : > { %v1990_v60 = vpop.xlane.xlu1 %1989 }
 0x555   : > { %2855 = vpow2.f32 %v2033_v59  ;;  %v2035_v42 = vmul.f32 1.442695, %v2005_v41  ;;  %v2006_v61 = vsub.f32 %v3777_v1, %v1990_v60 }
 0x557   : > { %2857 = vpow2.f32 %v2035_v42  ;;  %v2037_v35 = vmul.f32 1.442695, %v2006_v61 }
 0x559   : > { %2859 = vpow2.f32 %v2037_v35 }
 0x55d   : > { %v3827_v62 = vpop.eup %2853 }
 0x55e   : > { %2063 = vadd.xlane.f32.xlu0 %v3827_v62 }
 0x55f   : > { %v3830_v63 = vpop.eup %2855 }
 0x560   : > { %2065 = vadd.xlane.f32.xlu1 %v3830_v63 }
 0x561   : > { %v3833_v43 = vpop.eup %2857 }
 0x562   : > { %2067 = vadd.xlane.f32.xlu0 %v3833_v43 }
 0x563   : > { %v3836_v44 = vpop.eup %2859 }
 0x564   : > { %2069 = vadd.xlane.f32.xlu1 %v3836_v44 }
 0x5ba   : > { %v2044_v1 = vpop.xlane.xlu0 %2043 }
 0x5bb   : > { %2861 = vrcp.f32 %v2044_v1 }
 0x5be   : > { %v2046_v2 = vpop.xlane.xlu1 %2045  ;;  %v2040_v3 = vpop.xlane.xlu0 %2039 }
 0x5bf   : > { %2863 = vrcp.f32 %v2046_v2 }
 0x5c0   : > { %2865 = vrcp.f32 %v2040_v3 }
 0x5c2   : > { %v2042_v45 = vpop.xlane.xlu1 %2041 }
 0x5c3   : > { %2867 = vrcp.f32 %v2042_v45 }
 0x5c5   : > { %v2862_v4 = vpop.eup %2861 }
 0x5c6   : > { %v2089_v36 = vmul.f32 %v2862_v4, %v3781_v9 }
 0x5c8   : > { %2105 = vst [vmem:[%s3841_s13 + $0x10] sm:$0xff] %v2089_v36 }
 0x5c9   : > { %v2864_v5 = vpop.eup %2863 }
 0x5ca   : > { %v2866_v6 = vpop.eup %2865  ;;  %v2090_v46 = vmul.f32 %v2864_v5, %v3786_v12  ;;  %v2052_v7 = vpop.xlane.xlu0 %2051 }
 0x5cb   : > { %v2087_v47 = vmul.f32 %v2866_v6, %v3784_v49  ;;  %2869 = vrcp.f32 %v2052_v7 }
 0x5cc   : > { %2106 = vst [vmem:[%s3841_s13 + $0x18] sm:$0xff] %v2090_v46  ;;  %v2054_v8 = vpop.xlane.xlu1 %2053 }
 0x5cd   : > { %v2868_v9 = vpop.eup %2867  ;;  %2103 = vst [vmem:[%s3841_s13] sm:$0xff] %v2087_v47  ;;  %2871 = vrcp.f32 %v2054_v8 }
 0x5ce   : > { %v2088_v48 = vmul.f32 %v2868_v9, %v3791_v16  ;;  %v2048_v10 = vpop.xlane.xlu0 %2047 }
 0x5cf   : > { %2873 = vrcp.f32 %v2048_v10 }
 0x5d0   : > { %2104 = vst [vmem:[%s3841_s13 + $0x8] sm:$0xff] %v2088_v48  ;;  %v2050_v11 = vpop.xlane.xlu1 %2049 }
 0x5d1   : > { %2875 = vrcp.f32 %v2050_v11 }
 0x5d5   : > { %v2870_v12 = vpop.eup %2869 }
 0x5d6   : > { %v2093_v49 = vmul.f32 %v2870_v12, %v3795_v54 }
 0x5d7   : > { %v2872_v50 = vpop.eup %2871 }
 0x5d8   : > { %2109 = vst [vmem:[%s3841_s13 + $0x30] sm:$0xff] %v2093_v49  ;;  %v2094_v13 = vmul.f32 %v2872_v50, %v3798_v56 }
 0x5d9   : > { %v2874_v51 = vpop.eup %2873 }
 0x5da   : > { %2110 = vst [vmem:[%s3841_s13 + $0x38] sm:$0xff] %v2094_v13  ;;  %v2091_v14 = vmul.f32 %v2874_v51, %v3802_v21  ;;  %v2060_v52 = vpop.xlane.xlu0 %2059 }
 0x5db   : > { %v2876_v15 = vpop.eup %2875  ;;  %2877 = vrcp.f32 %v2060_v52 }
 0x5dc   : > { %2107 = vst [vmem:[%s3841_s13 + $0x20] sm:$0xff] %v2091_v14  ;;  %v2092_v16 = vmul.f32 %v2876_v15, %v3806_v25  ;;  %v2062_v53 = vpop.xlane.xlu1 %2061 }
 0x5dd   : > { %2879 = vrcp.f32 %v2062_v53 }
 0x5de   : > { %2108 = vst [vmem:[%s3841_s13 + $0x28] sm:$0xff] %v2092_v16  ;;  %v2056_v17 = vpop.xlane.xlu0 %2055 }
 0x5df   : > { %2881 = vrcp.f32 %v2056_v17 }
 0x5e0   : > { %v2058_v18 = vpop.xlane.xlu1 %2057 }
 0x5e1   : > { %2883 = vrcp.f32 %v2058_v18 }
 0x5e5   : > { %v2878_v54 = vpop.eup %2877 }
 0x5e6   : > { %v2097_v55 = vmul.f32 %v2878_v54, %v3811_v32 }
 0x5e7   : > { %v2880_v56 = vpop.eup %2879 }
 0x5e8   : > { %2113 = vst [vmem:[%s3841_s13 + $0x50] sm:$0xff] %v2097_v55  ;;  %v2098_v19 = vmul.f32 %v2880_v56, %v3814_v33 }
 0x5e9   : > { %v2882_v20 = vpop.eup %2881 }
 0x5ea   : > { %2114 = vst [vmem:[%s3841_s13 + $0x58] sm:$0xff] %v2098_v19  ;;  %v2095_v21 = vmul.f32 %v2882_v20, %v3818_v38 }
 0x5eb   : > { %v2884_v22 = vpop.eup %2883  ;;  %v2064_v23 = vpop.xlane.xlu0 %2063 }
 0x5ec   : > { %2111 = vst [vmem:[%s3841_s13 + $0x40] sm:$0xff] %v2095_v21  ;;  %v2096_v24 = vmul.f32 %v2884_v22, %v3822_v58  ;;  %2885 = vrcp.f32 %v2064_v23 }
 0x5ed   : > { %v2066_v25 = vpop.xlane.xlu1 %2065 }
 0x5ee   : > { %2112 = vst [vmem:[%s3841_s13 + $0x48] sm:$0xff] %v2096_v24  ;;  %2887 = vrcp.f32 %v2066_v25 }
 0x5ef   : > { %v2068_v26 = vpop.xlane.xlu0 %2067 }
 0x5f0   : > { %2889 = vrcp.f32 %v2068_v26 }
 0x5f1   : > { %v2070_v27 = vpop.xlane.xlu1 %2069 }
 0x5f2   : > { %2891 = vrcp.f32 %v2070_v27 }
 0x5f6   : > { %v2886_v28 = vpop.eup %2885 }
 0x5f7   : > { %v2099_v29 = vmul.f32 %v2886_v28, %v3827_v62 }
 0x5f8   : > { %v2888_v30 = vpop.eup %2887 }
 0x5f9   : > { %2115 = vst [vmem:[%s3841_s13 + $0x60] sm:$0xff] %v2099_v29  ;;  %v2100_v31 = vmul.f32 %v2888_v30, %v3830_v63 }
 0x5fa   : > { %v2890_v32 = vpop.eup %2889 }
 0x5fb   : > { %2116 = vst [vmem:[%s3841_s13 + $0x68] sm:$0xff] %v2100_v31  ;;  %v2101_v33 = vmul.f32 %v2890_v32, %v3833_v43 }
 0x5fc   : > { %v2892_v34 = vpop.eup %2891 }
 0x5fd   : > { %2117 = vst [vmem:[%s3841_s13 + $0x70] sm:$0xff] %v2101_v33  ;;  %v2102_v37 = vmul.f32 %v2892_v34, %v3836_v44 }
 0x5ff   : > { %2118 = vst [vmem:[%s3841_s13 + $0x78] sm:$0xff] %v2102_v37 }
 0x600   : > { %3132 = shalt.err (!%p3129_p8)
}
 0x601   : > { %s3133_s17 = scalar_lea.hbm %s3876_s1, 2048  ;;  %s3137_s21 = scalar_lea.hbm %s3965_s16, 4096 }
 0x602   : > { %p3134_p3 = scmp.ne.s32.totalorder %s3876_s1, %s3133_s17  ;;  %p3138_p0 = scmp.lt.u32.totalorder %s3876_s1, %s3965_s16 }
 0x603   : > { %p3139_p1 = scmp.lt.u32.totalorder %s3137_s21, %s3133_s17  ;;  %p3141_p6 = scmp.lt.u32.totalorder %s3133_s17, %s3876_s1 }
 0x604   : > { %p3135_p12 = pnand %p3134_p3, %p3966_p5 }
 0x605   : > { %p3140_p7 = por %p3139_p1, %p3138_p0 }
 0x606   : > { %p3136_p13 = pneg %p3135_p12 }
 0x607   : > { %p3142_p10 = por %p3141_p6, %p3140_p7 }
 0x609   : > { %p3143_p11 = pnand %p3142_p10, %p3136_p13 }
 0x60b   : > { %3146 = shalt.err (!%p3143_p11)
}
 0x60c   : > { %s3233_s20 = smov 128   ;;  %s3234_s15 = smov 8  }
 0x60d   : > { %2574 = dma.vmem_to_hbm [thread:$0]  (%p3966_p5), %s3878_s23, 2048, %s3876_s1, %s2120_s19, %s3233_s20, %s3233_s20, %s3234_s15  }
 0x60e PF: > { %s2150_s18 = sand.u32 1, %s3197_s27   ;;  %p3967_p2 = scmp.ne.s32.totalorder %s3960_s14, 0 }
 0x60f   : > { %p3968_p4 = scmp.ge.s32.totalorder %s3217_s10, 2  ;;  %s2151_s11 = scalar_lea.sflag [#allocation7], %s2150_s18 }
 0x611   : > { %p2603_p9 = pnand %p3968_p4, %p3967_p2 }
 0x613   : > { %3192 = dma.done.wait (!%p2603_p9), %s2151_s11, 2048  }
 0x614   : > { %3194 = vsyncadd (!%p2603_p9), %s2151_s11, 4294965248  ;;  %s28_s10 = sadd.s32 1, %s3217_s10   ;;  %s3969_s27 = smov %s3201_s28 }
 0x615   : > { %p25_p8 = scmp.ge.s32.totalorder %s28_s10, 4   ;;  %s3970_s28 = smov %s3205_s29 }
 0x616   : > { %s3971_s29 = smov %s3529_s25  ;;  %s3972_s30 = smov %s3213_s9 }
 0x617   : > { %s3973_s9 = smov %s3975_s2  ;;  %27 = sbr.rel (!%p25_p8) target bundleno = 14 (0xe), region = 127 }
 0x61e   :  { %2156 = vsyncpa [#allocation6], 1 }
 0x61f   :  { %2158 = vsyncpa [#allocation6 + $0x1], 1 }
 0x620   :  { %2159 = vsyncpa [#allocation9], 1 }
 0x621   :  { %2160 = vsyncpa [#allocation12], 1 }
 0x622   :  { %2161 = vsyncpa [#allocation15], 1 }
 0x623   :  { %2162 = vsyncpa [#allocation18], 1 }
 0x624   :  { %2163 = vsyncpa [#allocation7], 1 }
 0x625   :  { %2165 = vsyncpa [#allocation7 + $0x1], 1 }

// kernel: tpu_custom_call.1
= control target key start
LH: loop header
LB: loop body
LE: loop exit
PB: predicated region body
PF: predicated region fallthrough
CT: control target
= control target key end

     0   :  { %s3930_s0 = inlined_call_operand.hbm [shape: bf16[256,128], index: 0, kind: input, shape index: {}]   ;;  %s3931_s1 = inlined_call_operand.hbm [shape: bf16[128,256], index: 1, kind: input, shape index: {}]   ;;  %s3932_s2 = inlined_call_operand.hbm [shape: bf16[128,256], index: 2, kind: input, shape index: {}]   ;;  %s3933_s3 = inlined_call_operand.hbm [shape: bf16[128,256], index: 3, kind: input, shape index: {}]   ;;  %s3934_s4 = inlined_call_operand.hbm [shape: bf16[256,16], index: 4, kind: input, shape index: {}]   ;;  %s3935_s5 = inlined_call_operand.hbm [shape: bf16[256,256], index: 5, kind: input, shape index: {}]   ;;  %s3936_s6 = inlined_call_operand.hbm [shape: bf16[16,128], index: 6, kind: input, shape index: {}]   ;;  %s3937_s7 = inlined_call_operand.hbm [shape: f32[1,128], index: 7, kind: input, shape index: {}]   ;;  %s3938_s8 = inlined_call_operand.hbm [shape: f32[256,128], index: 8, kind: output, shape index: {}]  }
   0x1   :  { %3945 = sst [smem:[#allocation27_spill]] %s3931_s1 }
   0x2   :  { %3946 = sst [smem:[#allocation28_spill]] %s3932_s2 }
   0x3   :  { %3947 = sst [smem:[#allocation29_spill]] %s3938_s8 }
   0x4   :  { %13 = vsyncpa [#allocation6], 0 }
   0x5   :  { %15 = vsyncpa [#allocation6 + $0x1], 0 }
   0x6   :  { %16 = vsyncpa [#allocation9], 0 }
   0x7   :  { %17 = vsyncpa [#allocation12], 0 }
   0x8   :  { %18 = vsyncpa [#allocation15], 0 }
   0x9   :  { %19 = vsyncpa [#allocation18], 0 }
   0xa   :  { %20 = vsyncpa [#allocation7], 0 }
   0xb   :  { %22 = vsyncpa [#allocation7 + $0x1], 0  ;;  %s3280_s27 = smov 0   ;;  %s3282_s28 = smov 0  }
   0xc   :  { %s3284_s29 = smov 0   ;;  %s3286_s30 = smov 0  }
   0xd   :  { %s3288_s9 = smov 0   ;;  %s3290_s10 = smov 0  }
   0xe LB: > { %3948 = sst [smem:[#allocation26_spill]] %s3209_s30  ;;  %s3939_s11 = sadd.s32 4294967295, %s3217_s10   ;;  %s3217_s10 = sphi %s3290_s10, %s28_s10   ;;  %s3213_s9 = sphi %s3288_s9, %s3973_s9   ;;  %s3209_s30 = sphi %s3286_s30, %s3972_s30   ;;  %s3205_s29 = sphi %s3284_s29, %s3971_s29   ;;  %s3201_s28 = sphi %s3282_s28, %s3970_s28   ;;  %s3197_s27 = sphi %s3280_s27, %s3969_s27  }
   0xf   : > { %p2294_p0 = scmp.ge.s32.totalorder %s3217_s10, 1  ;;  %p3314_p1 = scmp.eq.s32.totalorder %s3939_s11, 0 }
  0x10   : > { %p265_p2 = scmp.lt.s32.totalorder %s3217_s10, 3  ;;  %s3219_s14 = smov [#allocation8]  }
  0x11   : > { %s3949_s12 = scalar_select %p3314_p1, 1, 0 }
  0x12   : > { %p3319_p3 = pnand %p2294_p0, %p265_p2  ;;  %s277_s15 = sshll.u32 %s3219_s14, 4  ;;  %s3323_s15 = int_to_ptr.vmem [resolvable:$true] %s277_s15 }
  0x13   : > { %s3220_s17 = smov [#allocation11]   ;;  %s3221_s19 = smov [#allocation14]  }
  0x14   : > { %s3950_s13 = scalar_select %p3319_p3, 1, 0 }
  0x15   : > { %p2576_p4 = pneg %p3319_p3  ;;  %s303_s18 = sshll.u32 %s3220_s17, 4  ;;  %s3334_s18 = int_to_ptr.vmem [resolvable:$true] %s303_s18 }
  0x16   : > { %s3336_s20 = sshll.u32 %s3221_s19, 4  ;;  %s3952_s1 = sld [smem:[#allocation27_spill]]  ;;  %s330_s20 = int_to_ptr.vmem [resolvable:$true] %s3336_s20 }
  0x17   : > { %p3330_p6 = pnand %p2576_p4, %p3314_p1 }
  0x19   : > { %p3346_p8 = pneg %p3330_p6 }
  0x1c   : > { %s2893_s23 = scalar_lea.hbm %s3952_s1, 2048 }
  0x1d   : > { %p2894_p7 = scmp.ne.s32.totalorder %s3952_s1, %s2893_s23  ;;  %p2900_p11 = scmp.lt.u32.totalorder %s2893_s23, %s3952_s1 }
  0x1f   : > { %p2896_p9 = pnand %p3346_p8, %p2894_p7 }
  0x21   : > { %p2897_p10 = pneg %p2896_p9 }
  0x23   : > { %p2902_p12 = pnand %p2900_p11, %p2897_p10 }
  0x25   : > { %2905 = shalt.err (!%p2902_p12)
}
  0x26   : > { %s2906_s19 = scalar_lea.vmem %s3323_s15, 2048  ;;  %p2914_p4 = scmp.lt.s32.totalorder %s3323_s15, %s3323_s15 }
  0x27   : > { %p2907_p13 = scmp.ne.s32.totalorder %s3323_s15, %s2906_s19  ;;  %p2915_p5 = scmp.lt.s32.totalorder %s2906_s19, %s2906_s19 }
  0x29   : > { %p2909_p0 = pnand %p2907_p13, %p3346_p8  ;;  %p2916_p7 = por %p2915_p5, %p2914_p4 }
  0x2b   : > { %p2910_p2 = pneg %p2909_p0 }
  0x2d   : > { %p2917_p9 = pnand %p2916_p7, %p2910_p2 }
  0x2f   : > { %2920 = shalt.err (!%p2917_p9)
}
  0x30   : > { %s3222_s21 = smov 128   ;;  %s3223_s22 = smov 8  }
  0x31   : > { %2579 = dma.hbm_to_vmem [thread:$0]  (!%p3330_p6), %s3952_s1, 2048, %s3323_s15, [#allocation9], %s3222_s21, %s3222_s21, %s3223_s22  }
  0x32   : > { %s2921_s17 = scalar_lea.hbm %s3933_s3, 2048 }
  0x33   : > { %p2922_p5 = scmp.ne.s32.totalorder %s3933_s3, %s2921_s17  ;;  %p2928_p12 = scmp.lt.u32.totalorder %s2921_s17, %s3933_s3 }
  0x35   : > { %p2924_p10 = pnand %p2922_p5, %p3346_p8 }
  0x37   : > { %p2925_p11 = pneg %p2924_p10 }
  0x39   : > { %p2930_p13 = pnand %p2928_p12, %p2925_p11 }
  0x3b   : > { %2933 = shalt.err (!%p2930_p13)
}
  0x3c   : > { %s2934_s15 = scalar_lea.vmem %s3334_s18, 2048  ;;  %p2942_p7 = scmp.lt.s32.totalorder %s3334_s18, %s3334_s18 }
  0x3d   : > { %p2935_p0 = scmp.ne.s32.totalorder %s3334_s18, %s2934_s15  ;;  %p2943_p9 = scmp.lt.s32.totalorder %s2934_s15, %s2934_s15 }
  0x3f   : > { %p2937_p2 = pnand %p2935_p0, %p3346_p8  ;;  %p2944_p5 = por %p2943_p9, %p2942_p7 }
  0x41   : > { %p2938_p4 = pneg %p2937_p2 }
  0x43   : > { %p2945_p10 = pnand %p2944_p5, %p2938_p4 }
  0x45   : > { %2948 = shalt.err (!%p2945_p10)
}
  0x46   : > { %2585 = dma.hbm_to_vmem [thread:$0]  (!%p3330_p6), %s3933_s3, 2048, %s3334_s18, [#allocation12], %s3222_s21, %s3222_s21, %s3223_s22  }
  0x47   : > { %s2949_s24 = scalar_lea.hbm %s3935_s5, 4096 }
  0x48   : > { %p2950_p11 = scmp.ne.s32.totalorder %s3935_s5, %s2949_s24  ;;  %p2956_p0 = scmp.lt.u32.totalorder %s2949_s24, %s3935_s5 }
  0x4a   : > { %p2952_p12 = pnand %p2950_p11, %p3346_p8 }
  0x4c   : > { %p2953_p13 = pneg %p2952_p12 }
  0x4e   : > { %p2958_p2 = pnand %p2956_p0, %p2953_p13 }
  0x50   : > { %2961 = shalt.err (!%p2958_p2)
}
  0x51   : > { %s2962_s15 = scalar_lea.vmem %s330_s20, 4096  ;;  %p2970_p5 = scmp.lt.s32.totalorder %s330_s20, %s330_s20 }
  0x52   : > { %p2963_p4 = scmp.ne.s32.totalorder %s330_s20, %s2962_s15  ;;  %p2971_p10 = scmp.lt.s32.totalorder %s2962_s15, %s2962_s15 }
  0x54   : > { %p2965_p7 = pnand %p2963_p4, %p3346_p8  ;;  %p2972_p3 = por %p2971_p10, %p2970_p5 }
  0x56   : > { %p2966_p9 = pneg %p2965_p7 }
  0x58   : > { %p2973_p1 = pnand %p2972_p3, %p2966_p9 }
  0x5a   : > { %2976 = shalt.err (!%p2973_p1)
}
  0x5b   : > { %2591 = dma.hbm_to_vmem [thread:$0]  (!%p3330_p6), %s3935_s5, 4096, %s330_s20, [#allocation15], %s3222_s21, %s3222_s21, %s3223_s22  }
  0x5c   : > { %s3224_s30 = smov [#allocation10]   ;;  %s3225_s23 = smov [#allocation13]  }
  0x5d   : > { %s290_s11 = sshll.u32 %s3224_s30, 4  ;;  %s316_s24 = sshll.u32 %s3225_s23, 4  ;;  %s291_s11 = int_to_ptr.vmem [resolvable:$true] %s290_s11  ;;  %s317_s24 = int_to_ptr.vmem [resolvable:$true] %s316_s24 }
  0x5e   : > { %s3954_s2 = sld [smem:[#allocation28_spill]] }
  0x64   : > { %s2977_s17 = scalar_lea.hbm %s3954_s2, 2048 }
  0x65   : > { %p2978_p1 = scmp.ne.s32.totalorder %s3954_s2, %s2977_s17  ;;  %p2984_p12 = scmp.lt.u32.totalorder %s2977_s17, %s3954_s2 }
  0x67   : > { %p2980_p3 = pnand %p2978_p1, %p3346_p8 }
  0x69   : > { %p2981_p11 = pneg %p2980_p3 }
  0x6b   : > { %p2986_p13 = pnand %p2984_p12, %p2981_p11 }
  0x6d   : > { %2989 = shalt.err (!%p2986_p13)
}
  0x6e   : > { %s2990_s20 = scalar_lea.vmem %s291_s11, 2048  ;;  %p2998_p7 = scmp.lt.s32.totalorder %s291_s11, %s291_s11 }
  0x6f   : > { %p2991_p0 = scmp.ne.s32.totalorder %s291_s11, %s2990_s20  ;;  %p2999_p9 = scmp.lt.s32.totalorder %s2990_s20, %s2990_s20 }
  0x71   : > { %p2993_p2 = pnand %p2991_p0, %p3346_p8  ;;  %p3000_p5 = por %p2999_p9, %p2998_p7 }
  0x73   : > { %p2994_p4 = pneg %p2993_p2 }
  0x75   : > { %p3001_p10 = pnand %p3000_p5, %p2994_p4 }
  0x77   : > { %3004 = shalt.err (!%p3001_p10)
}
  0x78   : > { %2582 = dma.hbm_to_vmem [thread:$0]  (!%p3330_p6), %s3954_s2, 2048, %s291_s11, [#allocation9], %s3222_s21, %s3222_s21, %s3223_s22  }
  0x79   : > { %s3005_s25 = scalar_lea.hbm %s3934_s4, 2048 }
  0x7a   : > { %p3006_p1 = scmp.ne.s32.totalorder %s3934_s4, %s3005_s25  ;;  %p3012_p12 = scmp.lt.u32.totalorder %s3005_s25, %s3934_s4 }
  0x7c   : > { %p3008_p3 = pnand %p3006_p1, %p3346_p8 }
  0x7e   : > { %p3009_p11 = pneg %p3008_p3 }
  0x80   : > { %p3014_p13 = pnand %p3012_p12, %p3009_p11 }
  0x82   : > { %3017 = shalt.err (!%p3014_p13)
}
  0x83   : > { %s3018_s18 = scalar_lea.vmem %s317_s24, 2048  ;;  %p3026_p7 = scmp.lt.s32.totalorder %s317_s24, %s317_s24 }
  0x84   : > { %p3019_p0 = scmp.ne.s32.totalorder %s317_s24, %s3018_s18  ;;  %p3027_p9 = scmp.lt.s32.totalorder %s3018_s18, %s3018_s18 }
  0x86   : > { %p3021_p2 = pnand %p3019_p0, %p3346_p8  ;;  %p3028_p5 = por %p3027_p9, %p3026_p7 }
  0x88   : > { %p3022_p4 = pneg %p3021_p2 }
  0x8a   : > { %p3029_p10 = pnand %p3028_p5, %p3022_p4 }
  0x8c   : > { %3032 = shalt.err (!%p3029_p10)
}
  0x8d   : > { %s3226_s21 = smov 64   ;;  %s3227_s22 = smov 4  }
  0x8e   : > { %2588 = dma.hbm_to_vmem [thread:$0]  (!%p3330_p6), %s3934_s4, 2048, %s317_s24, [#allocation12], %s3226_s21, %s3226_s21, %s3227_s22  }
  0x8f   : > { %s3228_s1 = smov [#allocation16]   ;;  %s3229_s30 = smov [#allocation17]  }
  0x90   : > { %s344_s8 = sshll.u32 %s3228_s1, 4  ;;  %s360_s23 = sshll.u32 %s3229_s30, 4  ;;  %s345_s8 = int_to_ptr.vmem [resolvable:$true] %s344_s8  ;;  %s361_s23 = int_to_ptr.vmem [resolvable:$true] %s360_s23 }
  0x91   : > { %s3033_s17 = scalar_lea.hbm %s3936_s6, 128 }
  0x92   : > { %p3034_p1 = scmp.ne.s32.totalorder %s3936_s6, %s3033_s17  ;;  %p3040_p12 = scmp.lt.u32.totalorder %s3033_s17, %s3936_s6 }
  0x94   : > { %p3036_p3 = pnand %p3034_p1, %p3346_p8 }
  0x96   : > { %p3037_p11 = pneg %p3036_p3 }
  0x98   : > { %p3042_p13 = pnand %p3040_p12, %p3037_p11 }
  0x9a   : > { %3045 = shalt.err (!%p3042_p13)
}
  0x9b   : > { %s3046_s24 = scalar_lea.vmem %s345_s8, 128  ;;  %p3054_p7 = scmp.lt.s32.totalorder %s345_s8, %s345_s8 }
  0x9c   : > { %p3047_p0 = scmp.ne.s32.totalorder %s345_s8, %s3046_s24  ;;  %p3055_p9 = scmp.lt.s32.totalorder %s3046_s24, %s3046_s24 }
  0x9e   : > { %p3049_p2 = pnand %p3047_p0, %p3346_p8  ;;  %p3056_p5 = por %p3055_p9, %p3054_p7 }
  0xa0   : > { %p3050_p4 = pneg %p3049_p2 }
  0xa2   : > { %p3057_p10 = pnand %p3056_p5, %p3050_p4 }
  0xa4   : > { %3060 = shalt.err (!%p3057_p10)
}
  0xa5   : > { %2594 = dma.hbm_to_vmem [thread:$0]  (!%p3330_p6), %s3936_s6, 128, %s345_s8, [#allocation15], %s3226_s21, %s3226_s21, %s3227_s22  }
  0xa6   : > { %s3061_s30 = scalar_lea.hbm %s3937_s7, 16 }
  0xa7   : > { %p3062_p1 = scmp.ne.s32.totalorder %s3937_s7, %s3061_s30  ;;  %p3068_p12 = scmp.lt.u32.totalorder %s3061_s30, %s3937_s7 }
  0xa9   : > { %p3064_p3 = pnand %p3062_p1, %p3346_p8 }
  0xab   : > { %p3065_p11 = pneg %p3064_p3 }
  0xad   : > { %p3070_p13 = pnand %p3068_p12, %p3065_p11 }
  0xaf   : > { %3073 = shalt.err (!%p3070_p13)
}
  0xb0   : > { %s3074_s15 = scalar_lea.vmem %s361_s23, 16  ;;  %s3081_s8 = scalar_lea.vmem %s361_s23, 32 }
  0xb1   : > { %p3075_p0 = scmp.ne.s32.totalorder %s361_s23, %s3074_s15  ;;  %p3082_p7 = scmp.lt.s32.totalorder %s361_s23, %s361_s23 }
  0xb2   : > { %p3083_p9 = scmp.lt.s32.totalorder %s3081_s8, %s3074_s15 }
  0xb3   : > { %p3077_p2 = pnand %p3075_p0, %p3346_p8 }
  0xb4   : > { %p3084_p5 = por %p3083_p9, %p3082_p7 }
  0xb5   : > { %p3078_p4 = pneg %p3077_p2 }
  0xb7   : > { %p3085_p10 = pnand %p3084_p5, %p3078_p4 }
  0xb9   : > { %3088 = shalt.err (!%p3085_p10)
}
  0xba   : > { %2597 = dma.hbm_to_vmem [thread:$0]  (!%p3330_p6), %s3937_s7, 16, %s361_s23, [#allocation18]  }
  0xbb   : > { %s2293_s26 = sadd.s32 4294967294, %s3217_s10   ;;  %s47_s2 = sadd.s32 1, %s3213_s9 }
  0xbc   : > { %s54_s16 = sadd.s32 1, %s3205_s29  ;;  %p49_p8 = scmp.ge.s32.totalorder %s47_s2, 2 }
  0xbd   : > { %p61_p1 = scmp.ne.s32.totalorder %s3205_s29, %s3201_s28  ;;  %p62_p3 = scmp.eq.s32.totalorder %s3217_s10, 0 }
  0xbe   : > { %p67_p11 = scmp.ne.s32.totalorder %s3201_s28, %s3197_s27  ;;  %s3975_s2 = smov (%p49_p8, %s47_s2), 0 }
  0xbf   : > { %p3509_p12 = por %p62_p3, %p61_p1  ;;  %p3956_p13 = scmp.ne.s32.totalorder %s3949_s12, 0 }
  0xc0   : > { %s51_s20 = ssub.s32 %s3213_s9, %s3975_s2  ;;  %s3958_s1 = sadd.s32 4294967295, %s3217_s10  }
  0xc1   : > { %p3515_p6 = por %p3956_p13, %p67_p11  ;;  %p252_p0 = scmp.eq.s32.totalorder %s3958_s1, 1 }
  0xc2   : > { %p52_p2 = scmp.eq.s32.totalorder %s51_s20, 0  ;;  %p258_p4 = scmp.eq.s32.totalorder %s2293_s26, 1 }
  0xc3   : > { %p3523_p7 = por %p252_p0, %p61_p1  ;;  %p2613_p9 = scmp.lt.s32.totalorder %s3217_s10, 2 }
  0xc4   : > { %s3529_s25 = scalar_select %p52_p2, %s3205_s29, %s54_s16  }
  0xc5   : > { %s3959_s30 = scalar_select %p3523_p7, 1, 0 }
  0xc6   : > { %p3531_p5 = por %p258_p4, %p67_p11  ;;  %s371_s17 = sand.u32 1, %s3205_s29  }
  0xc7   : > { %s2303_s19 = sshll.u32 %s371_s17, 6  ;;  %s2435_s15 = sshll.u32 %s3213_s9, 10 }
  0xc8   : > { %s3960_s14 = scalar_select %p3531_p5, 1, 0 }
  0xc9   : > { %s3540_s24 = scalar_lea.hbm %s3930_s0, %s2435_s15  ;;  %s375_s26 = scalar_lea.vmem [#allocation5], %s2303_s19 }
  0xca   : > { %s382_s20 = sshll.u32 %s375_s26, 4  ;;  %p3546_p10 = pnand %p2613_p9, %p3509_p12  ;;  %s3542_s20 = int_to_ptr.vmem [resolvable:$true] %s382_s20 }
  0xcb   : > { %s3550_s1 = scalar_lea.sflag [#allocation6], %s371_s17  ;;  %s3089_s8 = scalar_lea.hbm %s3540_s24, 1024 }
  0xcc   : > { %p3090_p8 = scmp.ne.s32.totalorder %s3540_s24, %s3089_s8  ;;  %p3091_p1 = pneg %p3546_p10 }
  0xcd   : > { %s3094_s11 = scalar_lea.hbm %s3930_s0, 2048  ;;  %p3095_p12 = scmp.lt.u32.totalorder %s3540_s24, %s3930_s0 }
  0xce   : > { %p3092_p3 = pnand %p3091_p1, %p3090_p8  ;;  %p3096_p13 = scmp.lt.u32.totalorder %s3094_s11, %s3089_s8 }
  0xcf   : > { %p3098_p2 = scmp.lt.u32.totalorder %s3089_s8, %s3540_s24 }
  0xd0   : > { %p3093_p11 = pneg %p3092_p3  ;;  %p3097_p0 = por %p3096_p13, %p3095_p12 }
  0xd2   : > { %p3099_p4 = por %p3098_p2, %p3097_p0 }
  0xd4   : > { %p3100_p9 = pnand %p3099_p4, %p3093_p11 }
  0xd6   : > { %3103 = shalt.err (!%p3100_p9)
}
  0xd7   : > { %s3104_s17 = scalar_lea.vmem %s3542_s20, 1024  ;;  %s3230_s19 = smov [#allocation5]  }
  0xd8   : > { %p3105_p8 = scmp.ne.s32.totalorder %s3542_s20, %s3104_s17  ;;  %s3109_s15 = sshll.u32 %s3230_s19, 4  ;;  %s3110_s15 = int_to_ptr.vmem [resolvable:$false] %s3109_s15 }
  0xd9   : > { %s3111_s18 = scalar_lea.vmem %s3110_s15, 2048  ;;  %p3112_p7 = scmp.lt.s32.totalorder %s3542_s20, %s3110_s15 }
  0xda   : > { %p3107_p3 = pnand %p3105_p8, %p3091_p1  ;;  %p3113_p12 = scmp.lt.s32.totalorder %s3111_s18, %s3104_s17 }
  0xdc   : > { %p3108_p5 = pneg %p3107_p3  ;;  %p3114_p13 = por %p3113_p12, %p3112_p7 }
  0xde   : > { %p3115_p0 = pnand %p3114_p13, %p3108_p5 }
  0xe0   : > { %3118 = shalt.err (!%p3115_p0)
}
  0xe1   : > { %2601 = dma.hbm_to_vmem [thread:$0]  (!%p3546_p10), %s3540_s24, 1024, %s3542_s20, %s3550_s1, %s3226_s21, %s3226_s21, %s3227_s22  }
  0xe2   : > { %p3962_p1 = scmp.ne.s32.totalorder %s3950_s13, 0 }
  0xe3   : > { %s3584_s8 = sand.u32 (!%p3962_p1), 1, %s3201_s28  }
  0xe4   : > { %394 = sbr.rel (%p3962_p1) target bundleno = 1550 (0x60e), region = 52  ;;  %s2307_s11 = sshll.u32 (!%p3962_p1), %s3584_s8, 6 }
  0xe5   : > { %s397_s26 = scalar_lea.sflag (!%p3962_p1), [#allocation6], %s3584_s8  ;;  %s3588_s17 = scalar_lea.vmem (!%p3962_p1), [#allocation5], %s2307_s11 }
  0xeb   : > { %3172 = dma.done.wait (%p3515_p6), %s397_s26, 1024  }
  0xec   : > { %3174 = vsyncadd (%p3515_p6), %s397_s26, 4294966272  ;;  %p3963_p7 = scmp.ne.s32.totalorder %s3949_s12, 0 }
  0xee   : > { %3176 = dma.done.wait (%p3963_p7), [#allocation9], 4096  }
  0xef   : > { %3178 = vsyncadd (%p3963_p7), [#allocation9], 4294963200 }
  0xf0   : > { %3180 = dma.done.wait (%p3963_p7), [#allocation12], 4096  }
  0xf1   : > { %3182 = vsyncadd (%p3963_p7), [#allocation12], 4294963200 }
  0xf2   : > { %3184 = dma.done.wait (%p3963_p7), [#allocation15], 4224  }
  0xf3   : > { %3186 = vsyncadd (%p3963_p7), [#allocation15], 4294963072 }
  0xf4   : > { %3188 = dma.done.wait (%p3963_p7), [#allocation18], 16  }
  0xf5   : > { %3190 = vsyncadd (%p3963_p7), [#allocation18], 4294967280  ;;  %v3231_v0 = vmov 0   ;;  %v2684_v1 = vld [vmem:[#allocation8 + $0x4] ss:$8 sps:$4 sm:$0xff]   ;;  %v3627_v52 = vld [vmem:[%s3588_s17 + $0x10] sm:$0xff]  }
  0xf6   : > { %657 = vmatprep.mubr.bf16.mxu0 %v3231_v0  ;;  %866 = vmatprep.mubr.bf16.mxu1 %v3231_v0  ;;  %v2686_v2 = vld [vmem:[#allocation10 + $0x4] ss:$8 sps:$4 sm:$0xff]   ;;  %v2688_v3 = vld [vmem:[#allocation8] ss:$8 sps:$4 sm:$0xff]   ;;  %v2690_v5 = vld [vmem:[#allocation8 + $0x14] ss:$8 sps:$4 sm:$0xff]  }
  0xf7   : > { %625 = vmatprep.subr.bf16.mxu0 %v2684_v1  ;;  %v2689_v4 = vld [vmem:[#allocation10] ss:$8 sps:$4 sm:$0xff]   ;;  %834 = vmatprep.subr.bf16.mxu1 %v2686_v2  ;;  %v2692_v6 = vld [vmem:[#allocation10 + $0x14] ss:$8 sps:$4 sm:$0xff]   ;;  %v2694_v7 = vld [vmem:[#allocation8 + $0x10] ss:$8 sps:$4 sm:$0xff]  }
  0xf8   : > { %626 = vmatpush1.bf16.msra.mxu0 %v2688_v3  ;;  %835 = vmatpush1.bf16.msra.mxu1 %v2689_v4  ;;  %v2695_v8 = vld [vmem:[#allocation10 + $0x10] ss:$8 sps:$4 sm:$0xff]   ;;  %v2696_v9 = vld [vmem:[#allocation8 + $0x24] ss:$8 sps:$4 sm:$0xff]   ;;  %v2700_v11 = vld [vmem:[#allocation8 + $0x20] ss:$8 sps:$4 sm:$0xff]  }
  0xf9   : > { %627 = vmatprep.subr.bf16.mxu0 %v2690_v5  ;;  %836 = vmatprep.subr.bf16.mxu1 %v2692_v6  ;;  %v2698_v10 = vld [vmem:[#allocation10 + $0x24] ss:$8 sps:$4 sm:$0xff]   ;;  %v2701_v12 = vld [vmem:[#allocation10 + $0x20] ss:$8 sps:$4 sm:$0xff]   ;;  %v2702_v13 = vld [vmem:[#allocation8 + $0x34] ss:$8 sps:$4 sm:$0xff]  }
  0xfa   : > { %v2704_v14 = vld [vmem:[#allocation10 + $0x34] ss:$8 sps:$4 sm:$0xff]   ;;  %v2706_v15 = vld [vmem:[#allocation8 + $0x30] ss:$8 sps:$4 sm:$0xff]   ;;  %v2708_v17 = vld [vmem:[#allocation8 + $0x44] ss:$8 sps:$4 sm:$0xff]  }
  0xfb   : > { %v2707_v16 = vld [vmem:[#allocation10 + $0x30] ss:$8 sps:$4 sm:$0xff]   ;;  %v2710_v18 = vld [vmem:[#allocation10 + $0x44] ss:$8 sps:$4 sm:$0xff]   ;;  %v2712_v19 = vld [vmem:[#allocation8 + $0x40] ss:$8 sps:$4 sm:$0xff]  }
  0xfc   : > { %628 = vmatpush1.bf16.msra.mxu0 %v2694_v7  ;;  %837 = vmatpush1.bf16.msra.mxu1 %v2695_v8  ;;  %v2713_v20 = vld [vmem:[#allocation10 + $0x40] ss:$8 sps:$4 sm:$0xff]   ;;  %v2714_v21 = vld [vmem:[#allocation8 + $0x54] ss:$8 sps:$4 sm:$0xff]   ;;  %v2718_v23 = vld [vmem:[#allocation8 + $0x50] ss:$8 sps:$4 sm:$0xff]  }
  0xfd   : > { %629 = vmatprep.subr.bf16.mxu0 %v2696_v9  ;;  %838 = vmatprep.subr.bf16.mxu1 %v2698_v10  ;;  %v2716_v22 = vld [vmem:[#allocation10 + $0x54] ss:$8 sps:$4 sm:$0xff]   ;;  %v2719_v24 = vld [vmem:[#allocation10 + $0x50] ss:$8 sps:$4 sm:$0xff]   ;;  %v2720_v25 = vld [vmem:[#allocation8 + $0x64] ss:$8 sps:$4 sm:$0xff]  }
  0xfe   : > { %v2722_v26 = vld [vmem:[#allocation10 + $0x64] ss:$8 sps:$4 sm:$0xff]   ;;  %v2724_v27 = vld [vmem:[#allocation8 + $0x60] ss:$8 sps:$4 sm:$0xff]   ;;  %v2726_v29 = vld [vmem:[#allocation8 + $0x74] ss:$8 sps:$4 sm:$0xff]  }
  0xff   : > { %v2725_v28 = vld [vmem:[#allocation10 + $0x60] ss:$8 sps:$4 sm:$0xff]   ;;  %v2728_v30 = vld [vmem:[#allocation10 + $0x74] ss:$8 sps:$4 sm:$0xff]   ;;  %v2730_v31 = vld [vmem:[#allocation8 + $0x70] ss:$8 sps:$4 sm:$0xff]  }
 0x100   : > { %630 = vmatpush1.bf16.msra.mxu0 %v2700_v11  ;;  %839 = vmatpush1.bf16.msra.mxu1 %v2701_v12  ;;  %v2731_v32 = vld [vmem:[#allocation10 + $0x70] ss:$8 sps:$4 sm:$0xff]   ;;  %v2742_v33 = vld [vmem:[#allocation14 + $0x4] ss:$8 sps:$4 sm:$0xff]   ;;  %v2740_v36 = vld [vmem:[#allocation14] ss:$8 sps:$4 sm:$0xff]  }
 0x101   : > { %631 = vmatprep.subr.bf16.mxu0 %v2702_v13  ;;  %840 = vmatprep.subr.bf16.mxu1 %v2704_v14  ;;  %v3613_v34 = vld [vmem:[%s3588_s17] sm:$0xff]   ;;  %v2748_v38 = vld [vmem:[#allocation14 + $0x14] ss:$8 sps:$4 sm:$0xff]   ;;  %v2746_v40 = vld [vmem:[#allocation14 + $0x10] ss:$8 sps:$4 sm:$0xff]   ;;  %vm1782_vm0 = vcmask 130048  }
 0x102   : > { %v2745_v35 = vld [vmem:[#allocation11 + $0x4] ss:$8 sps:$4 sm:$0xff]   ;;  %v2743_v37 = vld [vmem:[#allocation11] ss:$8 sps:$4 sm:$0xff]   ;;  %v2754_v39 = vld [vmem:[#allocation11 + $0x14] ss:$8 sps:$4 sm:$0xff]  }
 0x103   : > { %v2752_v41 = vld [vmem:[#allocation11 + $0x10] ss:$8 sps:$4 sm:$0xff]   ;;  %v2751_v42 = vld [vmem:[#allocation14 + $0x24] ss:$8 sps:$4 sm:$0xff]   ;;  %v2749_v45 = vld [vmem:[#allocation14 + $0x20] ss:$8 sps:$4 sm:$0xff]  }
 0x104   : > { %632 = vmatpush1.bf16.msra.mxu0 %v2706_v15  ;;  %841 = vmatpush1.bf16.msra.mxu1 %v2707_v16  ;;  %v3620_v43 = vld [vmem:[%s3588_s17 + $0x8] sm:$0xff]   ;;  %v2757_v47 = vld [vmem:[#allocation14 + $0x34] ss:$8 sps:$4 sm:$0xff]   ;;  %v2755_v49 = vld [vmem:[#allocation14 + $0x30] ss:$8 sps:$4 sm:$0xff]   ;;  %s2315_s12 = sshll.u32 %s3584_s8, 7 }
 0x105   : > { %633 = vmatprep.subr.bf16.mxu0 %v2708_v17  ;;  %842 = vmatprep.subr.bf16.mxu1 %v2710_v18  ;;  %v2763_v44 = vld [vmem:[#allocation11 + $0x24] ss:$8 sps:$4 sm:$0xff]   ;;  %v2761_v46 = vld [vmem:[#allocation11 + $0x20] ss:$8 sps:$4 sm:$0xff]   ;;  %v2772_v48 = vld [vmem:[#allocation11 + $0x34] ss:$8 sps:$4 sm:$0xff]  }
 0x106   : > { %v2770_v50 = vld [vmem:[#allocation11 + $0x30] ss:$8 sps:$4 sm:$0xff]   ;;  %v2760_v51 = vld [vmem:[#allocation14 + $0x44] ss:$8 sps:$4 sm:$0xff]   ;;  %v2758_v54 = vld [vmem:[#allocation14 + $0x40] ss:$8 sps:$4 sm:$0xff]  }
 0x107   : > { %v2781_v53 = vld [vmem:[#allocation11 + $0x44] ss:$8 sps:$4 sm:$0xff]   ;;  %v2779_v55 = vld [vmem:[#allocation11 + $0x40] ss:$8 sps:$4 sm:$0xff]   ;;  %v2766_v56 = vld [vmem:[#allocation14 + $0x54] ss:$8 sps:$4 sm:$0xff]  }
 0x108   : > { %634 = vmatpush1.bf16.msra.mxu0 %v2712_v19  ;;  %843 = vmatpush1.bf16.msra.mxu1 %v2713_v20  ;;  %v2790_v57 = vld [vmem:[#allocation11 + $0x54] ss:$8 sps:$4 sm:$0xff]   ;;  %v2764_v58 = vld [vmem:[#allocation14 + $0x50] ss:$8 sps:$4 sm:$0xff]   ;;  %v2769_v61 = vld [vmem:[#allocation14 + $0x64] ss:$8 sps:$4 sm:$0xff]  }
 0x109   : > { %635 = vmatprep.subr.bf16.mxu0 %v2714_v21  ;;  %844 = vmatprep.subr.bf16.mxu1 %v2716_v22  ;;  %v2788_v59 = vld [vmem:[#allocation11 + $0x50] ss:$8 sps:$4 sm:$0xff]   ;;  %v2767_v62 = vld [vmem:[#allocation14 + $0x60] ss:$8 sps:$4 sm:$0xff]   ;;  %v2799_v63 = vld [vmem:[#allocation11 + $0x64] ss:$8 sps:$4 sm:$0xff]  }
 0x10a   : > { %v3634_v60 = vld [vmem:[%s3588_s17 + $0x18] sm:$0xff]   ;;  %v2797_v2 = vld [vmem:[#allocation11 + $0x60] ss:$8 sps:$4 sm:$0xff]   ;;  %v2778_v4 = vld [vmem:[#allocation14 + $0x84] ss:$8 sps:$4 sm:$0xff]   ;;  %s3841_s13 = scalar_lea.vmem [#allocation19], %s2315_s12 }
 0x10b   : > { %v2775_v1 = vld [vmem:[#allocation14 + $0x74] ss:$8 sps:$4 sm:$0xff]   ;;  %v2773_v3 = vld [vmem:[#allocation14 + $0x70] ss:$8 sps:$4 sm:$0xff]   ;;  %v3641_v5 = vld [vmem:[%s3588_s17 + $0x20] sm:$0xff]   ;;  %s3964_s21 = sld [smem:[#allocation26_spill]] }
 0x10c   : > { %636 = vmatpush1.bf16.msra.mxu0 %v2718_v23  ;;  %845 = vmatpush1.bf16.msra.mxu1 %v2719_v24  ;;  %v2776_v6 = vld [vmem:[#allocation14 + $0x80] ss:$8 sps:$4 sm:$0xff]   ;;  %v2784_v7 = vld [vmem:[#allocation14 + $0x94] ss:$8 sps:$4 sm:$0xff]   ;;  %v2782_v8 = vld [vmem:[#allocation14 + $0x90] ss:$8 sps:$4 sm:$0xff]  }
 0x10d   : > { %637 = vmatprep.subr.bf16.mxu0 %v2720_v25  ;;  %846 = vmatprep.subr.bf16.mxu1 %v2722_v26  ;;  %v2787_v9 = vld [vmem:[#allocation14 + $0xa4] ss:$8 sps:$4 sm:$0xff]   ;;  %v2785_v11 = vld [vmem:[#allocation14 + $0xa0] ss:$8 sps:$4 sm:$0xff]   ;;  %v2793_v12 = vld [vmem:[#allocation14 + $0xb4] ss:$8 sps:$4 sm:$0xff]  }
 0x10e   : > { %v2737_v10 = vld [vmem:[%s3588_s17 + $0x28] sm:$0xff]   ;;  %v2791_v13 = vld [vmem:[#allocation14 + $0xb0] ss:$8 sps:$4 sm:$0xff]   ;;  %v2802_v17 = vld [vmem:[#allocation14 + $0xd4] ss:$8 sps:$4 sm:$0xff]   ;;  %s2135_s23 = sshll.u32 %s3841_s13, 4  ;;  %s3878_s23 = int_to_ptr.vmem [resolvable:$true] %s2135_s23 }
 0x10f   : > { %v2796_v14 = vld [vmem:[#allocation14 + $0xc4] ss:$8 sps:$4 sm:$0xff]   ;;  %v2738_v15 = vld [vmem:[%s3588_s17 + $0x30] sm:$0xff]   ;;  %v2794_v16 = vld [vmem:[#allocation14 + $0xc0] ss:$8 sps:$4 sm:$0xff]   ;;  %s3965_s16 = sld [smem:[#allocation29_spill]] }
 0x110   : > { %638 = vmatpush1.bf16.msra.mxu0 %v2724_v27  ;;  %847 = vmatpush1.bf16.msra.mxu1 %v2725_v28  ;;  %v2800_v18 = vld [vmem:[#allocation14 + $0xd0] ss:$8 sps:$4 sm:$0xff]   ;;  %v2805_v20 = vld [vmem:[#allocation14 + $0xe4] ss:$8 sps:$4 sm:$0xff]   ;;  %v2803_v21 = vld [vmem:[#allocation14 + $0xe0] ss:$8 sps:$4 sm:$0xff]  }
 0x111   : > { %639 = vmatprep.subr.bf16.mxu0 %v2726_v29  ;;  %848 = vmatprep.subr.bf16.mxu1 %v2728_v30  ;;  %v2739_v19 = vld [vmem:[%s3588_s17 + $0x38] sm:$0xff]   ;;  %v2812_v26 = vld [vmem:[#allocation13 + $0x40] sm:$0xff]   ;;  %v2814_v28 = vld [vmem:[#allocation13 + $0x48] sm:$0xff]   ;;  %s2436_s22 = sshll.u32 %s3964_s21, 11  ;;  %s2120_s19 = scalar_lea.sflag [#allocation7], %s3584_s8 }
 0x112   : > { %v2808_v22 = vld [vmem:[#allocation11 + $0x74] ss:$8 sps:$4 sm:$0xff]   ;;  %v2806_v23 = vld [vmem:[#allocation11 + $0x70] ss:$8 sps:$4 sm:$0xff]   ;;  %v2813_v27 = vld [vmem:[#allocation13] sm:$0xff]   ;;  %s3119_s15 = scalar_lea.vmem %s3878_s23, 2048 }
 0x113   : > { %v2811_v24 = vld [vmem:[#allocation14 + $0xf4] ss:$8 sps:$4 sm:$0xff]   ;;  %v2809_v25 = vld [vmem:[#allocation14 + $0xf0] ss:$8 sps:$4 sm:$0xff]   ;;  %v2815_v29 = vld [vmem:[#allocation13 + $0x8] sm:$0xff]   ;;  %p3120_p6 = scmp.ne.s32.totalorder %s3878_s23, %s3119_s15  ;;  %p3966_p5 = scmp.ne.s32.totalorder %s3959_s30, 0 }
 0x114   : > { %640 = vmatpush1.bf16.msra.mxu0 %v2730_v31  ;;  %849 = vmatpush1.bf16.msra.mxu1 %v2731_v32  ;;  %v2816_v30 = vld [vmem:[#allocation13 + $0x50] sm:$0xff]   ;;  %v2818_v32 = vld [vmem:[#allocation13 + $0x58] sm:$0xff]   ;;  %s3232_s18 = smov [#allocation19]  }
 0x115   : > { %1187 = vmatprep.subr.bf16.mxu0 %v2742_v33  ;;  %1396 = vmatprep.subr.bf16.mxu1 %v2745_v35  ;;  %v2817_v31 = vld [vmem:[#allocation13 + $0x10] sm:$0xff]   ;;  %v2819_v33 = vld [vmem:[#allocation13 + $0x18] sm:$0xff]   ;;  %v3669_v35 = vld [vmem:[#allocation13 + $0x68] sm:$0xff]   ;;  %s3876_s1 = scalar_lea.hbm %s3965_s16, %s2436_s22  ;;  %p3121_p10 = pnand %p3120_p6, %p3966_p5 }
 0x116   : > { %s3123_s11 = sshll.u32 %s3232_s18, 4  ;;  %s3124_s11 = int_to_ptr.vmem [resolvable:$false] %s3123_s11 }
 0x117   : > { %658 = vmatmul.mubr.bf16.vlgmr.msra.gmra.mrb[0].mxu0 %v3613_v34  ;;  %867 = vmatmul.mubr.bf16.vlgmr.msra.gmra.mrb[0].mxu1 %v3613_v34  ;;  %p3122_p11 = pneg %p3121_p10  ;;  %s3125_s26 = scalar_lea.vmem %s3124_s11, 4096 }
 0x118   : > { %667 = vmatprep.mubr.bf16.mxu0 %v3231_v0  ;;  %876 = vmatprep.mubr.bf16.mxu1 %v3231_v0  ;;  %p3126_p2 = scmp.lt.s32.totalorder %s3878_s23, %s3124_s11  ;;  %p3127_p4 = scmp.lt.s32.totalorder %s3125_s26, %s3119_s15 }
 0x119   : > { %1188 = vmatpush1.bf16.msra.mxu0 %v2740_v36  ;;  %1397 = vmatpush1.bf16.msra.mxu1 %v2743_v37  ;;  %v3673_v36 = vld [vmem:[#allocation13 + $0x28] sm:$0xff]  }
 0x11a   : > { %1189 = vmatprep.subr.bf16.mxu0 %v2748_v38  ;;  %1398 = vmatprep.subr.bf16.mxu1 %v2754_v39  ;;  %p3128_p9 = por %p3127_p4, %p3126_p2 }
 0x11c   : > { %p3129_p8 = pnand %p3128_p9, %p3122_p11 }
 0x11d   : > { %1190 = vmatpush1.bf16.msra.mxu0 %v2746_v40  ;;  %1399 = vmatpush1.bf16.msra.mxu1 %v2752_v41 }
 0x11e   : > { %1191 = vmatprep.subr.bf16.mxu0 %v2751_v42  ;;  %1400 = vmatprep.subr.bf16.mxu1 %v2763_v44 }
 0x11f   : > { %668 = vmatmul.mubr.bf16.gmra.mrb[4].mxu0 %v3620_v43  ;;  %877 = vmatmul.mubr.bf16.gmra.mrb[4].mxu1 %v3620_v43 }
 0x120   : > { %677 = vmatprep.mubr.bf16.mxu0 %v3231_v0  ;;  %886 = vmatprep.mubr.bf16.mxu1 %v3231_v0 }
 0x121   : > { %1192 = vmatpush1.bf16.msra.mxu0 %v2749_v45  ;;  %1401 = vmatpush1.bf16.msra.mxu1 %v2761_v46 }
 0x122   : > { %1193 = vmatprep.subr.bf16.mxu0 %v2757_v47  ;;  %1402 = vmatprep.subr.bf16.mxu1 %v2772_v48 }
 0x125   : > { %1194 = vmatpush1.bf16.msra.mxu0 %v2755_v49  ;;  %1403 = vmatpush1.bf16.msra.mxu1 %v2770_v50 }
 0x126   : > { %1195 = vmatprep.subr.bf16.mxu0 %v2760_v51  ;;  %1404 = vmatprep.subr.bf16.mxu1 %v2781_v53 }
 0x127   : > { %678 = vmatmul.mubr.bf16.gmra.mrb[8].mxu0 %v3627_v52  ;;  %887 = vmatmul.mubr.bf16.gmra.mrb[8].mxu1 %v3627_v52 }
 0x128   : > { %687 = vmatprep.mubr.bf16.mxu0 %v3231_v0  ;;  %896 = vmatprep.mubr.bf16.mxu1 %v3231_v0 }
 0x129   : > { %1196 = vmatpush1.bf16.msra.mxu0 %v2758_v54  ;;  %1405 = vmatpush1.bf16.msra.mxu1 %v2779_v55 }
 0x12a   : > { %1197 = vmatprep.subr.bf16.mxu0 %v2766_v56  ;;  %1406 = vmatprep.subr.bf16.mxu1 %v2790_v57 }
 0x12d   : > { %1198 = vmatpush1.bf16.msra.mxu0 %v2764_v58  ;;  %1407 = vmatpush1.bf16.msra.mxu1 %v2788_v59 }
 0x12e   : > { %1199 = vmatprep.subr.bf16.mxu0 %v2769_v61  ;;  %1408 = vmatprep.subr.bf16.mxu1 %v2799_v63 }
 0x12f   : > { %688 = vmatmul.mubr.bf16.gmra.mrb[12].mxu0 %v3634_v60  ;;  %897 = vmatmul.mubr.bf16.gmra.mrb[12].mxu1 %v3634_v60 }
 0x130   : > { %697 = vmatprep.mubr.bf16.mxu0 %v3231_v0  ;;  %906 = vmatprep.mubr.bf16.mxu1 %v3231_v0 }
 0x131   : > { %1200 = vmatpush1.bf16.msra.mxu0 %v2767_v62  ;;  %1409 = vmatpush1.bf16.msra.mxu1 %v2797_v2 }
 0x132   : > { %1201 = vmatprep.subr.bf16.mxu0 %v2775_v1  ;;  %1410 = vmatprep.subr.bf16.mxu1 %v2808_v22 }
 0x135   : > { %1202 = vmatpush1.bf16.msra.mxu0 %v2773_v3  ;;  %1411 = vmatpush1.bf16.msra.mxu1 %v2806_v23 }
 0x136   : > { %1203 = vmatprep.subr.bf16.mxu0 %v2778_v4  ;;  %2528 = vmatprep.subr.bf16.mxu1 %v2812_v26 }
 0x137   : > { %698 = vmatmul.mubr.bf16.gmra.mrb[16].mxu0 %v3641_v5  ;;  %907 = vmatmul.mubr.bf16.gmra.mrb[16].mxu1 %v3641_v5 }
 0x138   : > { %707 = vmatprep.mubr.bf16.mxu0 %v3231_v0  ;;  %916 = vmatprep.mubr.bf16.mxu1 %v3231_v0 }
 0x139   : > { %1204 = vmatpush1.bf16.msra.mxu0 %v2776_v6 }
 0x13a   : > { %1205 = vmatprep.subr.bf16.mxu0 %v2784_v7 }
 0x13d   : > { %1206 = vmatpush1.bf16.msra.mxu0 %v2782_v8 }
 0x13e   : > { %1207 = vmatprep.subr.bf16.mxu0 %v2787_v9 }
 0x13f   : > { %708 = vmatmul.mubr.bf16.gmra.mrb[20].mxu0 %v2737_v10  ;;  %917 = vmatmul.mubr.bf16.gmra.mrb[20].mxu1 %v2737_v10 }
 0x140   : > { %717 = vmatprep.mubr.bf16.mxu0 %v3231_v0  ;;  %926 = vmatprep.mubr.bf16.mxu1 %v3231_v0 }
 0x141   : > { %1208 = vmatpush1.bf16.msra.mxu0 %v2785_v11 }
 0x142   : > { %1209 = vmatprep.subr.bf16.mxu0 %v2793_v12 }
 0x145   : > { %1210 = vmatpush1.bf16.msra.mxu0 %v2791_v13 }
 0x146   : > { %1211 = vmatprep.subr.bf16.mxu0 %v2796_v14 }
 0x147   : > { %718 = vmatmul.mubr.bf16.gmra.mrb[24].mxu0 %v2738_v15  ;;  %927 = vmatmul.mubr.bf16.gmra.mrb[24].mxu1 %v2738_v15 }
 0x148   : > { %727 = vmatprep.mubr.bf16.mxu0 %v3231_v0  ;;  %936 = vmatprep.mubr.bf16.mxu1 %v3231_v0 }
 0x149   : > { %1212 = vmatpush1.bf16.msra.mxu0 %v2794_v16 }
 0x14a   : > { %1213 = vmatprep.subr.bf16.mxu0 %v2802_v17 }
 0x14d   : > { %1214 = vmatpush1.bf16.msra.mxu0 %v2800_v18 }
 0x14e   : > { %1215 = vmatprep.subr.bf16.mxu0 %v2805_v20 }
 0x14f   : > { %728 = vmatmul.mubr.bf16.gmra.mrb[28].mxu0 %v2739_v19  ;;  %937 = vmatmul.mubr.bf16.gmra.mrb[28].mxu1 %v2739_v19 }
 0x150   : > { %1428 = vmatprep.mubr.bf16.mxu1 %v3231_v0 }
 0x151   : > { %1216 = vmatpush1.bf16.msra.mxu0 %v2803_v21 }
 0x152   : > { %1217 = vmatprep.subr.bf16.mxu0 %v2811_v24 }
 0x155   : > { %1218 = vmatpush1.bf16.msra.mxu0 %v2809_v25 }
 0x156   : > { %2437 = vmatprep.subr.bf16.mxu0 %v2812_v26 }
 0x157   : > { %1429 = vmatmul.mubr.bf16.vlgmr.msra.gmra.mrb[32].mxu1 %v3613_v34  ;;  %v2820_v34 = vld [vmem:[#allocation13 + $0x60] sm:$0xff]  }
 0x158   : > { %1438 = vmatprep.mubr.bf16.mxu1 %v3231_v0  ;;  %2536 = vmatpush3.bf16.msra.mxu1 %v2813_v27 }
 0x159   : > { %2529 = vmatprep.subr.bf16.mxu1 %v2814_v28 }
 0x15c   : > { %2537 = vmatpush3.bf16.msra.mxu1 %v2815_v29 }
 0x15d   : > { %2530 = vmatprep.subr.bf16.mxu1 %v2816_v30 }
 0x15f   : > { %1439 = vmatmul.mubr.bf16.gmra.mrb[36].mxu1 %v3620_v43 }
 0x160   : > { %1448 = vmatprep.mubr.bf16.mxu1 %v3231_v0  ;;  %2538 = vmatpush3.bf16.msra.mxu1 %v2817_v31 }
 0x161   : > { %2531 = vmatprep.subr.bf16.mxu1 %v2818_v32 }
 0x164   : > { %2539 = vmatpush3.bf16.msra.mxu1 %v2819_v33 }
 0x165   : > { %2532 = vmatprep.subr.bf16.mxu1 %v2820_v34 }
 0x167   : > { %1449 = vmatmul.mubr.bf16.gmra.mrb[40].mxu1 %v3627_v52 }
 0x168   : > { %1458 = vmatprep.mubr.bf16.mxu1 %v3231_v0 }
 0x16f   : > { %1459 = vmatmul.mubr.bf16.gmra.mrb[44].mxu1 %v3634_v60 }
 0x170   : > { %1468 = vmatprep.mubr.bf16.mxu1 %v3231_v0 }
 0x177   : > { %1469 = vmatmul.mubr.bf16.gmra.mrb[48].mxu1 %v3641_v5 }
 0x178   : > { %1478 = vmatprep.mubr.bf16.mxu1 %v3231_v0 }
 0x17f   : > { %1479 = vmatmul.mubr.bf16.gmra.mrb[52].mxu1 %v2737_v10 }
 0x180   : > { %1488 = vmatprep.mubr.bf16.mxu1 %v3231_v0 }
 0x187   : > { %1489 = vmatmul.mubr.bf16.gmra.mrb[56].mxu1 %v2738_v15 }
 0x188   : > { %1498 = vmatprep.mubr.bf16.mxu1 %v3231_v0  ;;  %v3667_v0 = vld [vmem:[#allocation13 + $0x20] sm:$0xff]  }
 0x189   : > { %2540 = vmatpush3.bf16.msra.mxu1 %v3667_v0 }
 0x18a   : > { %2533 = vmatprep.subr.bf16.mxu1 %v3669_v35 }
 0x18d   : > { %2541 = vmatpush3.bf16.msra.mxu1 %v3673_v36 }
 0x18f   : > { %1499 = vmatmul.mubr.bf16.gmra.mrb[60].mxu1 %v2739_v19 }
 0x1ea   : > { %v659_v37 = vpop.f32.mrb[0].mxu0  ;;  %v868_v38 = vpop.f32.mrb[0].mxu1 }
 0x1eb   : > { %v947_v39 = vmul.f32 %v868_v38, %v659_v37  ;;  %v661_v40 = vpop.f32.mrb[1].mxu0  ;;  %v870_v41 = vpop.f32.mrb[1].mxu1 }
 0x1ec   : > { %v948_v42 = vmul.f32 %v870_v41, %v661_v40  ;;  %v663_v43 = vpop.f32.mrb[2].mxu0  ;;  %v872_v44 = vpop.f32.mrb[2].mxu1 }
 0x1ed   : > { %v949_v45 = vmul.f32 %v872_v44, %v663_v43  ;;  %v665_v46 = vpop.f32.mrb[3].mxu0  ;;  %v874_v47 = vpop.f32.mrb[3].mxu1 }
 0x1ee   : > { %v950_v48 = vmul.f32 %v874_v47, %v665_v46 }
 0x1ef   : > { %v979_v49 = vpack.c.bf16 %v949_v45, %v947_v39 }
 0x1f0   : > { %v980_v50 = vpack.c.bf16 %v950_v48, %v948_v42 }
 0x1f2   : > { %v669_v51 = vpop.f32.mrb[4].mxu0  ;;  %v878_v52 = vpop.f32.mrb[4].mxu1  ;;  %1219 = vmatprep.mubr.bf16.mxu0 %v980_v50 }
 0x1f3   : > { %v951_v53 = vmul.f32 %v878_v52, %v669_v51  ;;  %v671_v54 = vpop.f32.mrb[5].mxu0  ;;  %v880_v55 = vpop.f32.mrb[5].mxu1  ;;  %1220 = vmatmul.mubr.bf16.vlgmr.msra.gmra.mrb[32].mxu0 %v979_v49 }
 0x1f4   : > { %v952_v56 = vmul.f32 %v880_v55, %v671_v54  ;;  %v673_v57 = vpop.f32.mrb[6].mxu0  ;;  %v882_v58 = vpop.f32.mrb[6].mxu1  ;;  %2438 = vmatpush3.bf16.msra.mxu0 %v2813_v27 }
 0x1f5   : > { %v953_v59 = vmul.f32 %v882_v58, %v673_v57  ;;  %v675_v60 = vpop.f32.mrb[7].mxu0  ;;  %v884_v61 = vpop.f32.mrb[7].mxu1  ;;  %2439 = vmatprep.subr.bf16.mxu0 %v2814_v28 }
 0x1f6   : > { %v954_v62 = vmul.f32 %v884_v61, %v675_v60 }
 0x1f7   : > { %v981_v63 = vpack.c.bf16 %v953_v59, %v951_v53 }
 0x1f8   : > { %v982_v1 = vpack.c.bf16 %v954_v62, %v952_v56  ;;  %2440 = vmatpush3.bf16.msra.mxu0 %v2815_v29 }
 0x1f9   : > { %2441 = vmatprep.subr.bf16.mxu0 %v2816_v30 }
 0x1fa   : > { %v679_v2 = vpop.f32.mrb[8].mxu0  ;;  %v888_v3 = vpop.f32.mrb[8].mxu1  ;;  %1229 = vmatprep.mubr.bf16.mxu0 %v982_v1 }
 0x1fb   : > { %v955_v4 = vmul.f32 %v888_v3, %v679_v2  ;;  %v681_v5 = vpop.f32.mrb[9].mxu0  ;;  %v890_v6 = vpop.f32.mrb[9].mxu1  ;;  %1230 = vmatmul.mubr.bf16.gmra.mrb[36].mxu0 %v981_v63 }
 0x1fc   : > { %v956_v7 = vmul.f32 %v890_v6, %v681_v5  ;;  %v683_v8 = vpop.f32.mrb[10].mxu0  ;;  %v892_v9 = vpop.f32.mrb[10].mxu1  ;;  %2442 = vmatpush3.bf16.msra.mxu0 %v2817_v31 }
 0x1fd   : > { %v957_v10 = vmul.f32 %v892_v9, %v683_v8  ;;  %v685_v11 = vpop.f32.mrb[11].mxu0  ;;  %v894_v12 = vpop.f32.mrb[11].mxu1  ;;  %2443 = vmatprep.subr.bf16.mxu0 %v2818_v32 }
 0x1fe   : > { %v958_v13 = vmul.f32 %v894_v12, %v685_v11 }
 0x1ff   : > { %v983_v14 = vpack.c.bf16 %v957_v10, %v955_v4 }
 0x200   : > { %v984_v15 = vpack.c.bf16 %v958_v13, %v956_v7  ;;  %2444 = vmatpush3.bf16.msra.mxu0 %v2819_v33 }
 0x201   : > { %2445 = vmatprep.subr.bf16.mxu0 %v2820_v34 }
 0x202   : > { %v689_v16 = vpop.f32.mrb[12].mxu0  ;;  %v898_v17 = vpop.f32.mrb[12].mxu1  ;;  %1239 = vmatprep.mubr.bf16.mxu0 %v984_v15 }
 0x203   : > { %v959_v18 = vmul.f32 %v898_v17, %v689_v16  ;;  %v691_v19 = vpop.f32.mrb[13].mxu0  ;;  %v900_v20 = vpop.f32.mrb[13].mxu1  ;;  %1240 = vmatmul.mubr.bf16.gmra.mrb[40].mxu0 %v983_v14 }
 0x204   : > { %v960_v21 = vmul.f32 %v900_v20, %v691_v19  ;;  %v693_v22 = vpop.f32.mrb[14].mxu0  ;;  %v902_v23 = vpop.f32.mrb[14].mxu1  ;;  %2446 = vmatpush3.bf16.msra.mxu0 %v3667_v0 }
 0x205   : > { %v961_v24 = vmul.f32 %v902_v23, %v693_v22  ;;  %v695_v25 = vpop.f32.mrb[15].mxu0  ;;  %v904_v26 = vpop.f32.mrb[15].mxu1  ;;  %2447 = vmatprep.subr.bf16.mxu0 %v3669_v35 }
 0x206   : > { %v962_v27 = vmul.f32 %v904_v26, %v695_v25  ;;  %v2824_v25 = vld [vmem:[#allocation13 + $0x70] sm:$0xff]  }
 0x207   : > { %v985_v28 = vpack.c.bf16 %v961_v24, %v959_v18  ;;  %2534 = vmatprep.subr.bf16.mxu1 %v2824_v25 }
 0x208   : > { %v986_v29 = vpack.c.bf16 %v962_v27, %v960_v21  ;;  %2448 = vmatpush3.bf16.msra.mxu0 %v3673_v36  ;;  %v2825_v27 = vld [vmem:[#allocation13 + $0x30] sm:$0xff]  }
 0x209   : > { %2449 = vmatprep.subr.bf16.mxu0 %v2824_v25  ;;  %2542 = vmatpush3.bf16.msra.mxu1 %v2825_v27 }
 0x20a   : > { %v699_v30 = vpop.f32.mrb[16].mxu0  ;;  %v908_v31 = vpop.f32.mrb[16].mxu1  ;;  %1249 = vmatprep.mubr.bf16.mxu0 %v986_v29  ;;  %v2827_v29 = vld [vmem:[#allocation13 + $0x38] sm:$0xff]  }
 0x20b   : > { %v963_v32 = vmul.f32 %v908_v31, %v699_v30  ;;  %v701_v33 = vpop.f32.mrb[17].mxu0  ;;  %v910_v34 = vpop.f32.mrb[17].mxu1  ;;  %1250 = vmatmul.mubr.bf16.gmra.mrb[44].mxu0 %v985_v28  ;;  %v2826_v28 = vld [vmem:[#allocation13 + $0x78] sm:$0xff]  }
 0x20c   : > { %v964_v37 = vmul.f32 %v910_v34, %v701_v33  ;;  %v703_v38 = vpop.f32.mrb[18].mxu0  ;;  %v912_v0 = vpop.f32.mrb[18].mxu1  ;;  %2450 = vmatpush3.bf16.msra.mxu0 %v2825_v27  ;;  %2535 = vmatprep.subr.bf16.mxu1 %v2826_v28 }
 0x20d   : > { %v965_v39 = vmul.f32 %v912_v0, %v703_v38  ;;  %v705_v40 = vpop.f32.mrb[19].mxu0  ;;  %v914_v41 = vpop.f32.mrb[19].mxu1  ;;  %2451 = vmatprep.subr.bf16.mxu0 %v2826_v28  ;;  %2543 = vmatpush3.bf16.msra.mxu1 %v2827_v29 }
 0x20e   : > { %v966_v42 = vmul.f32 %v914_v41, %v705_v40 }
 0x20f   : > { %v987_v35 = vpack.c.bf16 %v965_v39, %v963_v32 }
 0x210   : > { %v988_v43 = vpack.c.bf16 %v966_v42, %v964_v37  ;;  %2452 = vmatpush3.bf16.msra.mxu0 %v2827_v29 }
 0x212   : > { %v709_v44 = vpop.f32.mrb[20].mxu0  ;;  %v918_v45 = vpop.f32.mrb[20].mxu1  ;;  %1259 = vmatprep.mubr.bf16.mxu0 %v988_v43 }
 0x213   : > { %v967_v36 = vmul.f32 %v918_v45, %v709_v44  ;;  %v711_v46 = vpop.f32.mrb[21].mxu0  ;;  %v920_v47 = vpop.f32.mrb[21].mxu1  ;;  %1260 = vmatmul.mubr.bf16.gmra.mrb[48].mxu0 %v987_v35 }
 0x214   : > { %v968_v48 = vmul.f32 %v920_v47, %v711_v46  ;;  %v713_v49 = vpop.f32.mrb[22].mxu0  ;;  %v922_v50 = vpop.f32.mrb[22].mxu1 }
 0x215   : > { %v969_v51 = vmul.f32 %v922_v50, %v713_v49  ;;  %v715_v52 = vpop.f32.mrb[23].mxu0  ;;  %v924_v53 = vpop.f32.mrb[23].mxu1 }
 0x216   : > { %v970_v54 = vmul.f32 %v924_v53, %v715_v52 }
 0x217   : > { %v989_v55 = vpack.c.bf16 %v969_v51, %v967_v36 }
 0x218   : > { %v990_v56 = vpack.c.bf16 %v970_v54, %v968_v48 }
 0x21a   : > { %v719_v57 = vpop.f32.mrb[24].mxu0  ;;  %v928_v58 = vpop.f32.mrb[24].mxu1  ;;  %1269 = vmatprep.mubr.bf16.mxu0 %v990_v56 }
 0x21b   : > { %v971_v59 = vmul.f32 %v928_v58, %v719_v57  ;;  %v721_v60 = vpop.f32.mrb[25].mxu0  ;;  %v930_v61 = vpop.f32.mrb[25].mxu1  ;;  %1270 = vmatmul.mubr.bf16.gmra.mrb[52].mxu0 %v989_v55 }
 0x21c   : > { %v972_v62 = vmul.f32 %v930_v61, %v721_v60  ;;  %v723_v63 = vpop.f32.mrb[26].mxu0  ;;  %v932_v1 = vpop.f32.mrb[26].mxu1 }
 0x21d   : > { %v973_v2 = vmul.f32 %v932_v1, %v723_v63  ;;  %v725_v3 = vpop.f32.mrb[27].mxu0  ;;  %v934_v4 = vpop.f32.mrb[27].mxu1 }
 0x21e   : > { %v974_v5 = vmul.f32 %v934_v4, %v725_v3 }
 0x21f   : > { %v991_v6 = vpack.c.bf16 %v973_v2, %v971_v59 }
 0x220   : > { %v992_v7 = vpack.c.bf16 %v974_v5, %v972_v62 }
 0x222   : > { %v729_v8 = vpop.f32.mrb[28].mxu0  ;;  %v938_v9 = vpop.f32.mrb[28].mxu1  ;;  %1279 = vmatprep.mubr.bf16.mxu0 %v992_v7 }
 0x223   : > { %v975_v10 = vmul.f32 %v938_v9, %v729_v8  ;;  %v731_v11 = vpop.f32.mrb[29].mxu0  ;;  %v940_v12 = vpop.f32.mrb[29].mxu1  ;;  %1280 = vmatmul.mubr.bf16.gmra.mrb[56].mxu0 %v991_v6 }
 0x224   : > { %v976_v13 = vmul.f32 %v940_v12, %v731_v11  ;;  %v733_v14 = vpop.f32.mrb[30].mxu0  ;;  %v942_v15 = vpop.f32.mrb[30].mxu1 }
 0x225   : > { %v977_v16 = vmul.f32 %v942_v15, %v733_v14  ;;  %v735_v17 = vpop.f32.mrb[31].mxu0  ;;  %v944_v18 = vpop.f32.mrb[31].mxu1 }
 0x226   : > { %v978_v19 = vmul.f32 %v944_v18, %v735_v17 }
 0x227   : > { %v993_v20 = vpack.c.bf16 %v977_v16, %v975_v10 }
 0x228   : > { %v994_v21 = vpack.c.bf16 %v978_v19, %v976_v13 }
 0x22a   : > { %1289 = vmatprep.mubr.bf16.mxu0 %v994_v21  ;;  %v1430_v22 = vpop.f32.mrb[32].mxu1 }
 0x22b   : > { %1290 = vmatmul.mubr.bf16.gmra.mrb[60].mxu0 %v993_v20  ;;  %v1432_v23 = vpop.f32.mrb[33].mxu1 }
 0x22c   : > { %v1434_v24 = vpop.f32.mrb[34].mxu1 }
 0x22d   : > { %v1436_v26 = vpop.f32.mrb[35].mxu1 }
 0x232   : > { %v1440_v30 = vpop.f32.mrb[36].mxu1 }
 0x233   : > { %v1442_v31 = vpop.f32.mrb[37].mxu1 }
 0x234   : > { %v1444_v32 = vpop.f32.mrb[38].mxu1 }
 0x235   : > { %v1446_v33 = vpop.f32.mrb[39].mxu1 }
 0x23a   : > { %v1450_v34 = vpop.f32.mrb[40].mxu1 }
 0x23b   : > { %v1452_v37 = vpop.f32.mrb[41].mxu1 }
 0x23c   : > { %v1454_v38 = vpop.f32.mrb[42].mxu1 }
 0x23d   : > { %v1456_v0 = vpop.f32.mrb[43].mxu1 }
 0x242   : > { %v1460_v39 = vpop.f32.mrb[44].mxu1 }
 0x243   : > { %v1462_v40 = vpop.f32.mrb[45].mxu1 }
 0x244   : > { %v1464_v41 = vpop.f32.mrb[46].mxu1 }
 0x245   : > { %v1466_v42 = vpop.f32.mrb[47].mxu1 }
 0x24a   : > { %v3679_v35 = vpop.f32.mrb[48].mxu1 }
 0x24b   : > { %v3681_v43 = vpop.f32.mrb[49].mxu1 }
 0x24c   : > { %v3683_v44 = vpop.f32.mrb[50].mxu1 }
 0x24d   : > { %v3685_v45 = vpop.f32.mrb[51].mxu1 }
 0x252   : > { %v3687_v36 = vpop.f32.mrb[52].mxu1 }
 0x253   : > { %v3689_v46 = vpop.f32.mrb[53].mxu1 }
 0x254   : > { %v3691_v47 = vpop.f32.mrb[54].mxu1 }
 0x255   : > { %v3693_v48 = vpop.f32.mrb[55].mxu1 }
 0x25a   : > { %v3695_v49 = vpop.f32.mrb[56].mxu1 }
 0x25b   : > { %v3697_v50 = vpop.f32.mrb[57].mxu1 }
 0x25c   : > { %v3699_v51 = vpop.f32.mrb[58].mxu1 }
 0x25d   : > { %v3701_v52 = vpop.f32.mrb[59].mxu1 }
 0x262   : > { %v3703_v53 = vpop.f32.mrb[60].mxu1 }
 0x263   : > { %v3705_v54 = vpop.f32.mrb[61].mxu1 }
 0x264   : > { %v3707_v55 = vpop.f32.mrb[62].mxu1 }
 0x265   : > { %v3709_v56 = vpop.f32.mrb[63].mxu1 }
 0x2c6   : > { %v1221_v57 = vpop.f32.mrb[32].mxu0 }
 0x2c7   : > { %v1509_v58 = vmul.f32 %v1430_v22, %v1221_v57  ;;  %v1223_v59 = vpop.f32.mrb[33].mxu0 }
 0x2c8   : > { %v1510_v60 = vmul.f32 %v1432_v23, %v1223_v59  ;;  %v1225_v61 = vpop.f32.mrb[34].mxu0 }
 0x2c9   : > { %v1511_v62 = vmul.f32 %v1434_v24, %v1225_v61  ;;  %v1227_v63 = vpop.f32.mrb[35].mxu0 }
 0x2ca   : > { %v1512_v1 = vmul.f32 %v1436_v26, %v1227_v63 }
 0x2cb   : > { %v1541_v2 = vpack.c.bf16 %v1511_v62, %v1509_v58 }
 0x2cc   : > { %v1542_v3 = vpack.c.bf16 %v1512_v1, %v1510_v60 }
 0x2ce   : > { %v1231_v4 = vpop.f32.mrb[36].mxu0  ;;  %1717 = vmatprep.mubr.bf16.mxu0 %v1542_v3 }
 0x2cf   : > { %v1513_v5 = vmul.f32 %v1440_v30, %v1231_v4  ;;  %v1233_v6 = vpop.f32.mrb[37].mxu0  ;;  %1718 = vmatmul.mubr.bf16.vlgmr.msra.gmra.mrb[64].mxu0 %v1541_v2 }
 0x2d0   : > { %v1514_v7 = vmul.f32 %v1442_v31, %v1233_v6  ;;  %v1235_v8 = vpop.f32.mrb[38].mxu0 }
 0x2d1   : > { %v1515_v9 = vmul.f32 %v1444_v32, %v1235_v8  ;;  %v1237_v10 = vpop.f32.mrb[39].mxu0 }
 0x2d2   : > { %v1516_v11 = vmul.f32 %v1446_v33, %v1237_v10 }
 0x2d3   : > { %v1543_v12 = vpack.c.bf16 %v1515_v9, %v1513_v5 }
 0x2d4   : > { %v1544_v13 = vpack.c.bf16 %v1516_v11, %v1514_v7 }
 0x2d6   : > { %v1241_v14 = vpop.f32.mrb[40].mxu0  ;;  %1725 = vmatprep.mubr.bf16.mxu0 %v1544_v13 }
 0x2d7   : > { %v1517_v15 = vmul.f32 %v1450_v34, %v1241_v14  ;;  %v1243_v16 = vpop.f32.mrb[41].mxu0  ;;  %1726 = vmatmul.mubr.bf16.gmra.mrb[68].mxu0 %v1543_v12 }
 0x2d8   : > { %v1518_v17 = vmul.f32 %v1452_v37, %v1243_v16  ;;  %v1245_v18 = vpop.f32.mrb[42].mxu0 }
 0x2d9   : > { %v1519_v19 = vmul.f32 %v1454_v38, %v1245_v18  ;;  %v1247_v20 = vpop.f32.mrb[43].mxu0 }
 0x2da   : > { %v1520_v21 = vmul.f32 %v1456_v0, %v1247_v20 }
 0x2db   : > { %v1545_v22 = vpack.c.bf16 %v1519_v19, %v1517_v15 }
 0x2dc   : > { %v1546_v23 = vpack.c.bf16 %v1520_v21, %v1518_v17 }
 0x2de   : > { %v1251_v24 = vpop.f32.mrb[44].mxu0  ;;  %1733 = vmatprep.mubr.bf16.mxu0 %v1546_v23 }
 0x2df   : > { %v1521_v25 = vmul.f32 %v1460_v39, %v1251_v24  ;;  %v1253_v26 = vpop.f32.mrb[45].mxu0  ;;  %1734 = vmatmul.mubr.bf16.gmra.mrb[72].mxu0 %v1545_v22 }
 0x2e0   : > { %v1522_v27 = vmul.f32 %v1462_v40, %v1253_v26  ;;  %v1255_v28 = vpop.f32.mrb[46].mxu0 }
 0x2e1   : > { %v1523_v29 = vmul.f32 %v1464_v41, %v1255_v28  ;;  %v1257_v30 = vpop.f32.mrb[47].mxu0 }
 0x2e2   : > { %v1524_v31 = vmul.f32 %v1466_v42, %v1257_v30 }
 0x2e3   : > { %v1547_v32 = vpack.c.bf16 %v1523_v29, %v1521_v25 }
 0x2e4   : > { %v1548_v33 = vpack.c.bf16 %v1524_v31, %v1522_v27 }
 0x2e6   : > { %v1261_v34 = vpop.f32.mrb[48].mxu0  ;;  %1741 = vmatprep.mubr.bf16.mxu0 %v1548_v33 }
 0x2e7   : > { %v1525_v37 = vmul.f32 %v3679_v35, %v1261_v34  ;;  %v1263_v38 = vpop.f32.mrb[49].mxu0  ;;  %1742 = vmatmul.mubr.bf16.gmra.mrb[76].mxu0 %v1547_v32 }
 0x2e8   : > { %v1526_v0 = vmul.f32 %v3681_v43, %v1263_v38  ;;  %v1265_v57 = vpop.f32.mrb[50].mxu0 }
 0x2e9   : > { %v1527_v39 = vmul.f32 %v3683_v44, %v1265_v57  ;;  %v1267_v58 = vpop.f32.mrb[51].mxu0 }
 0x2ea   : > { %v1528_v40 = vmul.f32 %v3685_v45, %v1267_v58 }
 0x2eb   : > { %v1549_v59 = vpack.c.bf16 %v1527_v39, %v1525_v37 }
 0x2ec   : > { %v1550_v41 = vpack.c.bf16 %v1528_v40, %v1526_v0 }
 0x2ee   : > { %v1271_v60 = vpop.f32.mrb[52].mxu0  ;;  %1749 = vmatprep.mubr.bf16.mxu0 %v1550_v41 }
 0x2ef   : > { %v1529_v42 = vmul.f32 %v3687_v36, %v1271_v60  ;;  %v1273_v61 = vpop.f32.mrb[53].mxu0  ;;  %1750 = vmatmul.mubr.bf16.gmra.mrb[80].mxu0 %v1549_v59 }
 0x2f0   : > { %v1530_v35 = vmul.f32 %v3689_v46, %v1273_v61  ;;  %v1275_v62 = vpop.f32.mrb[54].mxu0 }
 0x2f1   : > { %v1531_v63 = vmul.f32 %v3691_v47, %v1275_v62  ;;  %v1277_v43 = vpop.f32.mrb[55].mxu0 }
 0x2f2   : > { %v1532_v1 = vmul.f32 %v3693_v48, %v1277_v43 }
 0x2f3   : > { %v1551_v44 = vpack.c.bf16 %v1531_v63, %v1529_v42 }
 0x2f4   : > { %v1552_v2 = vpack.c.bf16 %v1532_v1, %v1530_v35 }
 0x2f6   : > { %v1281_v3 = vpop.f32.mrb[56].mxu0  ;;  %1757 = vmatprep.mubr.bf16.mxu0 %v1552_v2 }
 0x2f7   : > { %v1533_v45 = vmul.f32 %v3695_v49, %v1281_v3  ;;  %v1283_v4 = vpop.f32.mrb[57].mxu0  ;;  %1758 = vmatmul.mubr.bf16.gmra.mrb[84].mxu0 %v1551_v44 }
 0x2f8   : > { %v1534_v36 = vmul.f32 %v3697_v50, %v1283_v4  ;;  %v1285_v5 = vpop.f32.mrb[58].mxu0 }
 0x2f9   : > { %v1535_v6 = vmul.f32 %v3699_v51, %v1285_v5  ;;  %v1287_v46 = vpop.f32.mrb[59].mxu0 }
 0x2fa   : > { %v1536_v7 = vmul.f32 %v3701_v52, %v1287_v46  ;;  %v2828_v52 = vld [vmem:[#allocation16] sm:$0xff]  }
 0x2fb   : > { %v1553_v47 = vpack.c.bf16 %v1535_v6, %v1533_v45  ;;  %2510 = vmatprep.subr.bf16.mxu1 %v2828_v52 }
 0x2fc   : > { %v1554_v8 = vpack.c.bf16 %v1536_v7, %v1534_v36 }
 0x2fe   : > { %v1291_v9 = vpop.f32.mrb[60].mxu0  ;;  %1765 = vmatprep.mubr.bf16.mxu1 %v1554_v8 }
 0x2ff   : > { %v1537_v48 = vmul.f32 %v3703_v53, %v1291_v9  ;;  %v1293_v10 = vpop.f32.mrb[61].mxu0  ;;  %1766 = vmatmul.mubr.bf16.vlgmr.msra.gmra.mrb[64].mxu1 %v1553_v47 }
 0x300   : > { %v1538_v49 = vmul.f32 %v3705_v54, %v1293_v10  ;;  %v1295_v11 = vpop.f32.mrb[62].mxu0  ;;  %2511 = vmatpush3.bf16.msra.mxu1 %v2828_v52 }
 0x301   : > { %v1539_v12 = vmul.f32 %v3707_v55, %v1295_v11  ;;  %v1297_v50 = vpop.f32.mrb[63].mxu0 }
 0x302   : > { %v1540_v13 = vmul.f32 %v3709_v56, %v1297_v50 }
 0x303   : > { %v1555_v51 = vpack.c.bf16 %v1539_v12, %v1537_v48 }
 0x304   : > { %v1556_v14 = vpack.c.bf16 %v1540_v13, %v1538_v49 }
 0x306   : > { %1773 = vmatprep.mubr.bf16.mxu1 %v1556_v14 }
 0x307   : > { %1774 = vmatmul.mubr.bf16.gmra.mrb[68].mxu1 %v1555_v51 }
 0x3a2   : > { %v2453_v15 = vpop.f32.mrb[64].mxu0 }
 0x3a3   : > { %v2454_v16 = vpop.f32.mrb[65].mxu0 }
 0x3a4   : > { %v2455_v53 = vadd.f32 %v2454_v16, %v2453_v15  ;;  %v2456_v17 = vpop.f32.mrb[66].mxu0 }
 0x3a5   : > { %v2457_v18 = vpop.f32.mrb[67].mxu0 }
 0x3a6   : > { %1783 = vst.msk [vmem:[#allocation2] sm:$0xff] %vm1782_vm0, %v2455_v53  ;;  %v2458_v54 = vadd.f32 %v2457_v18, %v2456_v17 }
 0x3a8   : > { %1784 = vst.msk [vmem:[#allocation2 + $0x8] sm:$0xff] %vm1782_vm0, %v2458_v54 }
 0x3aa   : > { %v2459_v55 = vpop.f32.mrb[68].mxu0 }
 0x3ab   : > { %v2460_v56 = vpop.f32.mrb[69].mxu0 }
 0x3ac   : > { %v2461_v19 = vadd.f32 %v2460_v56, %v2459_v55  ;;  %v2462_v20 = vpop.f32.mrb[70].mxu0 }
 0x3ad   : > { %v2463_v21 = vpop.f32.mrb[71].mxu0  ;;  %v1799_v23 = vld [vmem:[#allocation2] sm:$0xff] }
 0x3ae   : > { %1785 = vst.msk [vmem:[#allocation2 + $0x10] sm:$0xff] %vm1782_vm0, %v2461_v19  ;;  %v2464_v22 = vadd.f32 %v2463_v21, %v2462_v20  ;;  %v2420_v19 = vld [vmem:[#allocation17] ss:$0 sm:$0xff] }
 0x3af   : > { %v1800_v24 = vld [vmem:[#allocation2 + $0x8] sm:$0xff] }
 0x3b0   : > { %1786 = vst.msk [vmem:[#allocation2 + $0x18] sm:$0xff] %vm1782_vm0, %v2464_v22  ;;  %v1815_v25 = vpack.c.bf16 %v1800_v24, %v1799_v23 }
 0x3b2   : > { %v2465_v26 = vpop.f32.mrb[72].mxu0  ;;  %2512 = vmatprep.mubr.msk.bf16.mxu1 %vm1782_vm0, %v1815_v25 }
 0x3b3   : > { %v2466_v27 = vpop.f32.mrb[73].mxu0 }
 0x3b4   : > { %v2467_v28 = vadd.f32 %v2466_v27, %v2465_v26  ;;  %v2468_v29 = vpop.f32.mrb[74].mxu0 }
 0x3b5   : > { %v2469_v30 = vpop.f32.mrb[75].mxu0  ;;  %v1801_v32 = vld [vmem:[#allocation2 + $0x10] sm:$0xff] }
 0x3b6   : > { %1787 = vst.msk [vmem:[#allocation2 + $0x20] sm:$0xff] %vm1782_vm0, %v2467_v28  ;;  %v2470_v31 = vadd.f32 %v2469_v30, %v2468_v29 }
 0x3b7   : > { %v1802_v33 = vld [vmem:[#allocation2 + $0x18] sm:$0xff] }
 0x3b8   : > { %1788 = vst.msk [vmem:[#allocation2 + $0x28] sm:$0xff] %vm1782_vm0, %v2470_v31  ;;  %v1816_v34 = vpack.c.bf16 %v1802_v33, %v1801_v32 }
 0x3ba   : > { %v2471_v37 = vpop.f32.mrb[76].mxu0  ;;  %2513 = vmatmul.mubr.msk.bf16.vlgmr.msra.gmra.mrb[72].mxu1 %vm1782_vm0, %v1816_v34 }
 0x3bb   : > { %v2472_v38 = vpop.f32.mrb[77].mxu0 }
 0x3bc   : > { %v2473_v0 = vadd.f32 %v2472_v38, %v2471_v37  ;;  %v2474_v57 = vpop.f32.mrb[78].mxu0 }
 0x3bd   : > { %v2475_v39 = vpop.f32.mrb[79].mxu0  ;;  %v1803_v40 = vld [vmem:[#allocation2 + $0x20] sm:$0xff] }
 0x3be   : > { %1789 = vst.msk [vmem:[#allocation2 + $0x30] sm:$0xff] %vm1782_vm0, %v2473_v0  ;;  %v2476_v58 = vadd.f32 %v2475_v39, %v2474_v57 }
 0x3bf   : > { %v1804_v59 = vld [vmem:[#allocation2 + $0x28] sm:$0xff] }
 0x3c0   : > { %1790 = vst.msk [vmem:[#allocation2 + $0x38] sm:$0xff] %vm1782_vm0, %v2476_v58  ;;  %v1817_v41 = vpack.c.bf16 %v1804_v59, %v1803_v40 }
 0x3c2   : > { %v2477_v60 = vpop.f32.mrb[80].mxu0  ;;  %2516 = vmatprep.mubr.msk.bf16.mxu1 %vm1782_vm0, %v1817_v41 }
 0x3c3   : > { %v2478_v42 = vpop.f32.mrb[81].mxu0 }
 0x3c4   : > { %v2479_v61 = vadd.f32 %v2478_v42, %v2477_v60  ;;  %v2480_v35 = vpop.f32.mrb[82].mxu0 }
 0x3c5   : > { %v2481_v62 = vpop.f32.mrb[83].mxu0  ;;  %v1805_v43 = vld [vmem:[#allocation2 + $0x30] sm:$0xff] }
 0x3c6   : > { %1791 = vst.msk [vmem:[#allocation2 + $0x40] sm:$0xff] %vm1782_vm0, %v2479_v61  ;;  %v2482_v63 = vadd.f32 %v2481_v62, %v2480_v35 }
 0x3c7   : > { %v1806_v1 = vld [vmem:[#allocation2 + $0x38] sm:$0xff] }
 0x3c8   : > { %1792 = vst.msk [vmem:[#allocation2 + $0x48] sm:$0xff] %vm1782_vm0, %v2482_v63  ;;  %v1818_v44 = vpack.c.bf16 %v1806_v1, %v1805_v43 }
 0x3ca   : > { %v2483_v2 = vpop.f32.mrb[84].mxu0  ;;  %2517 = vmatmul.mubr.msk.bf16.gmra.mrb[76].mxu1 %vm1782_vm0, %v1818_v44 }
 0x3cb   : > { %v2484_v3 = vpop.f32.mrb[85].mxu0 }
 0x3cc   : > { %v2485_v45 = vadd.f32 %v2484_v3, %v2483_v2  ;;  %v2486_v4 = vpop.f32.mrb[86].mxu0 }
 0x3cd   : > { %v2487_v36 = vpop.f32.mrb[87].mxu0  ;;  %v1807_v6 = vld [vmem:[#allocation2 + $0x40] sm:$0xff] }
 0x3ce   : > { %1793 = vst.msk [vmem:[#allocation2 + $0x50] sm:$0xff] %vm1782_vm0, %v2485_v45  ;;  %v2488_v5 = vadd.f32 %v2487_v36, %v2486_v4 }
 0x3cf   : > { %v1808_v46 = vld [vmem:[#allocation2 + $0x48] sm:$0xff] }
 0x3d0   : > { %1794 = vst.msk [vmem:[#allocation2 + $0x58] sm:$0xff] %vm1782_vm0, %v2488_v5  ;;  %v1819_v7 = vpack.c.bf16 %v1808_v46, %v1807_v6 }
 0x3d2   : > { %v2489_v47 = vpop.f32.mrb[64].mxu1  ;;  %2520 = vmatprep.mubr.msk.bf16.mxu1 %vm1782_vm0, %v1819_v7 }
 0x3d3   : > { %v2490_v8 = vpop.f32.mrb[65].mxu1 }
 0x3d4   : > { %v2491_v9 = vadd.f32 %v2490_v8, %v2489_v47  ;;  %v2492_v48 = vpop.f32.mrb[66].mxu1 }
 0x3d5   : > { %v2493_v10 = vpop.f32.mrb[67].mxu1  ;;  %v1809_v11 = vld [vmem:[#allocation2 + $0x50] sm:$0xff] }
 0x3d6   : > { %1795 = vst.msk [vmem:[#allocation2 + $0x60] sm:$0xff] %vm1782_vm0, %v2491_v9  ;;  %v2494_v49 = vadd.f32 %v2493_v10, %v2492_v48 }
 0x3d7   : > { %v1810_v12 = vld [vmem:[#allocation2 + $0x58] sm:$0xff] }
 0x3d8   : > { %1796 = vst.msk [vmem:[#allocation2 + $0x68] sm:$0xff] %vm1782_vm0, %v2494_v49  ;;  %v1820_v50 = vpack.c.bf16 %v1810_v12, %v1809_v11 }
 0x3da   : > { %v2495_v13 = vpop.f32.mrb[68].mxu1  ;;  %2521 = vmatmul.mubr.msk.bf16.gmra.mrb[80].mxu1 %vm1782_vm0, %v1820_v50 }
 0x3db   : > { %v2496_v51 = vpop.f32.mrb[69].mxu1 }
 0x3dc   : > { %v2497_v14 = vadd.f32 %v2496_v51, %v2495_v13  ;;  %v2498_v52 = vpop.f32.mrb[70].mxu1 }
 0x3dd   : > { %v2499_v15 = vpop.f32.mrb[71].mxu1  ;;  %v1811_v53 = vld [vmem:[#allocation2 + $0x60] sm:$0xff] }
 0x3de   : > { %1797 = vst.msk [vmem:[#allocation2 + $0x70] sm:$0xff] %vm1782_vm0, %v2497_v14  ;;  %v2500_v16 = vadd.f32 %v2499_v15, %v2498_v52 }
 0x3df   : > { %v1812_v17 = vld [vmem:[#allocation2 + $0x68] sm:$0xff] }
 0x3e0   : > { %1798 = vst.msk [vmem:[#allocation2 + $0x78] sm:$0xff] %vm1782_vm0, %v2500_v16  ;;  %v1821_v18 = vpack.c.bf16 %v1812_v17, %v1811_v53 }
 0x3e2   : > { %2524 = vmatprep.mubr.msk.bf16.mxu1 %vm1782_vm0, %v1821_v18 }
 0x3e5   : > { %v1813_v54 = vld [vmem:[#allocation2 + $0x70] sm:$0xff] }
 0x3e7   : > { %v1814_v55 = vld [vmem:[#allocation2 + $0x78] sm:$0xff] }
 0x3e8   : > { %v1822_v56 = vpack.c.bf16 %v1814_v55, %v1813_v54 }
 0x3ea   : > { %2525 = vmatmul.mubr.msk.bf16.gmra.mrb[84].mxu1 %vm1782_vm0, %v1822_v56 }
 0x48d   : > { %v2514_v20 = vpop.f32.mrb[72].mxu1 }
 0x48e   : > { %v1905_v21 = vadd.f32 %v2514_v20, %v2420_v19  ;;  %v1896_v22 = vpop.f32.mrb[73].mxu1 }
 0x48f   : > { %v1897_v23 = vadd.f32 %v2420_v19, %v1896_v22  ;;  %v2515_v24 = vpop.f32.mrb[74].mxu1 }
 0x490   : > { %1963 = vmax.xlane.f32.xlu1 %v1905_v21  ;;  %v1899_v25 = vpop.f32.mrb[75].mxu1  ;;  %v1908_v26 = vadd.f32 %v2515_v24, %v2420_v19 }
 0x491   : > { %1959 = vmax.xlane.f32.xlu0 %v1897_v23  ;;  %v1900_v27 = vadd.f32 %v2420_v19, %v1899_v25 }
 0x494   : > { %1965 = vmax.xlane.f32.xlu1 %v1908_v26 }
 0x495   : > { %1961 = vmax.xlane.f32.xlu0 %v1900_v27 }
 0x49d   : > { %v2518_v28 = vpop.f32.mrb[76].mxu1 }
 0x49e   : > { %v1921_v29 = vadd.f32 %v2518_v28, %v2420_v19  ;;  %v1912_v30 = vpop.f32.mrb[77].mxu1 }
 0x49f   : > { %v2519_v31 = vpop.f32.mrb[78].mxu1  ;;  %v3751_v34 = vadd.f32 %v2420_v19, %v1912_v30 }
 0x4a0   : > { %v1924_v32 = vadd.f32 %v2519_v31, %v2420_v19  ;;  %v1915_v33 = vpop.f32.mrb[79].mxu1  ;;  %1971 = vmax.xlane.f32.xlu0 %v1921_v29 }
 0x4a1   : > { %v3753_v37 = vadd.f32 %v2420_v19, %v1915_v33 }
 0x4a2   : > { %1973 = vmax.xlane.f32.xlu1 %v1924_v32 }
 0x4a4   : > { %1967 = vmax.xlane.f32.xlu0 %v3751_v34 }
 0x4a6   : > { %1969 = vmax.xlane.f32.xlu1 %v3753_v37 }
 0x4ad   : > { %v2522_v38 = vpop.f32.mrb[80].mxu1 }
 0x4ae   : > { %v3757_v0 = vadd.f32 %v2522_v38, %v2420_v19  ;;  %v1928_v57 = vpop.f32.mrb[81].mxu1 }
 0x4af   : > { %v2523_v39 = vpop.f32.mrb[82].mxu1  ;;  %v3762_v59 = vadd.f32 %v2420_v19, %v1928_v57 }
 0x4b0   : > { %v3759_v58 = vadd.f32 %v2523_v39, %v2420_v19  ;;  %v1931_v40 = vpop.f32.mrb[83].mxu1  ;;  %1979 = vmax.xlane.f32.xlu0 %v3757_v0 }
 0x4b1   : > { %v3765_v41 = vadd.f32 %v2420_v19, %v1931_v40 }
 0x4b2   : > { %1981 = vmax.xlane.f32.xlu1 %v3759_v58 }
 0x4b4   : > { %1975 = vmax.xlane.f32.xlu0 %v3762_v59 }
 0x4b6   : > { %1977 = vmax.xlane.f32.xlu1 %v3765_v41 }
 0x4bd   : > { %v2526_v60 = vpop.f32.mrb[84].mxu1 }
 0x4be   : > { %v1944_v42 = vpop.f32.mrb[85].mxu1  ;;  %v3774_v43 = vadd.f32 %v2526_v60, %v2420_v19 }
 0x4bf   : > { %v3769_v61 = vadd.f32 %v2420_v19, %v1944_v42  ;;  %v2527_v35 = vpop.f32.mrb[86].mxu1 }
 0x4c0   : > { %v1947_v62 = vpop.f32.mrb[87].mxu1  ;;  %v3777_v1 = vadd.f32 %v2527_v35, %v2420_v19 }
 0x4c1   : > { %v3771_v63 = vadd.f32 %v2420_v19, %v1947_v62  ;;  %1983 = vmax.xlane.f32.xlu0 %v3769_v61 }
 0x4c3   : > { %1985 = vmax.xlane.f32.xlu1 %v3771_v63 }
 0x4c5   : > { %1987 = vmax.xlane.f32.xlu0 %v3774_v43 }
 0x4c7   : > { %1989 = vmax.xlane.f32.xlu1 %v3777_v1 }
 0x51d   : > { %v1964_v44 = vpop.xlane.xlu1 %1963 }
 0x51e   : > { %v1993_v2 = vsub.f32 %v1905_v21, %v1964_v44  ;;  %v1960_v3 = vpop.xlane.xlu0 %1959 }
 0x51f   : > { %v1991_v45 = vsub.f32 %v1897_v23, %v1960_v3 }
 0x520   : > { %v2011_v4 = vmul.f32 1.442695, %v1993_v2 }
 0x521   : > { %v2007_v36 = vmul.f32 1.442695, %v1991_v45  ;;  %v1966_v5 = vpop.xlane.xlu1 %1965 }
 0x522   : > { %2829 = vpow2.f32 %v2011_v4  ;;  %v1994_v6 = vsub.f32 %v1908_v26, %v1966_v5  ;;  %v1962_v46 = vpop.xlane.xlu0 %1961 }
 0x523   : > { %v1992_v7 = vsub.f32 %v1900_v27, %v1962_v46  ;;  %2831 = vpow2.f32 %v2007_v36 }
 0x524   : > { %v2013_v47 = vmul.f32 1.442695, %v1994_v6 }
 0x525   : > { %v2009_v8 = vmul.f32 1.442695, %v1992_v7 }
 0x526   : > { %2833 = vpow2.f32 %v2013_v47 }
 0x527   : > { %2835 = vpow2.f32 %v2009_v8 }
 0x52c   : > { %v3781_v9 = vpop.eup %2829 }
 0x52d   : > { %v1972_v48 = vpop.xlane.xlu0 %1971  ;;  %2043 = vadd.xlane.f32.xlu0 %v3781_v9  ;;  %v3784_v49 = vpop.eup %2831 }
 0x52e   : > { %v1997_v10 = vsub.f32 %v1921_v29, %v1972_v48 }
 0x52f   : > { %v1974_v11 = vpop.xlane.xlu1 %1973 }
 0x530   : > { %v3786_v12 = vpop.eup %2833  ;;  %v2019_v50 = vmul.f32 1.442695, %v1997_v10  ;;  %v1998_v13 = vsub.f32 %v1924_v32, %v1974_v11 }
 0x531   : > { %v1968_v51 = vpop.xlane.xlu0 %1967  ;;  %2045 = vadd.xlane.f32.xlu1 %v3786_v12  ;;  %2039 = vadd.xlane.f32.xlu0 %v3784_v49  ;;  %v3791_v16 = vpop.eup %2835 }
 0x532   : > { %2837 = vpow2.f32 %v2019_v50  ;;  %v2021_v14 = vmul.f32 1.442695, %v1998_v13  ;;  %v1995_v52 = vsub.f32 %v3751_v34, %v1968_v51 }
 0x533   : > { %v1970_v15 = vpop.xlane.xlu1 %1969 }
 0x534   : > { %2839 = vpow2.f32 %v2021_v14  ;;  %v2015_v53 = vmul.f32 1.442695, %v1995_v52  ;;  %v1996_v17 = vsub.f32 %v3753_v37, %v1970_v15 }
 0x535   : > { %2041 = vadd.xlane.f32.xlu1 %v3791_v16 }
 0x536   : > { %2841 = vpow2.f32 %v2015_v53  ;;  %v2017_v18 = vmul.f32 1.442695, %v1996_v17 }
 0x538   : > { %2843 = vpow2.f32 %v2017_v18 }
 0x53c   : > { %v3795_v54 = vpop.eup %2837 }
 0x53d   : > { %v1980_v55 = vpop.xlane.xlu0 %1979  ;;  %2051 = vadd.xlane.f32.xlu0 %v3795_v54 }
 0x53e   : > { %v3798_v56 = vpop.eup %2839  ;;  %v2001_v19 = vsub.f32 %v3757_v0, %v1980_v55 }
 0x53f   : > { %v1982_v20 = vpop.xlane.xlu1 %1981  ;;  %2053 = vadd.xlane.f32.xlu1 %v3798_v56 }
 0x540   : > { %v3802_v21 = vpop.eup %2841  ;;  %v2027_v22 = vmul.f32 1.442695, %v2001_v19  ;;  %v2002_v23 = vsub.f32 %v3759_v58, %v1982_v20 }
 0x541   : > { %v1976_v24 = vpop.xlane.xlu0 %1975  ;;  %2047 = vadd.xlane.f32.xlu0 %v3802_v21 }
 0x542   : > { %v3806_v25 = vpop.eup %2843  ;;  %2845 = vpow2.f32 %v2027_v22  ;;  %v2029_v26 = vmul.f32 1.442695, %v2002_v23  ;;  %v1999_v27 = vsub.f32 %v3762_v59, %v1976_v24 }
 0x543   : > { %v1978_v28 = vpop.xlane.xlu1 %1977  ;;  %2049 = vadd.xlane.f32.xlu1 %v3806_v25 }
 0x544   : > { %2847 = vpow2.f32 %v2029_v26  ;;  %v2023_v29 = vmul.f32 1.442695, %v1999_v27  ;;  %v2000_v30 = vsub.f32 %v3765_v41, %v1978_v28 }
 0x546   : > { %2849 = vpow2.f32 %v2023_v29  ;;  %v2025_v31 = vmul.f32 1.442695, %v2000_v30 }
 0x548   : > { %2851 = vpow2.f32 %v2025_v31 }
 0x54c   : > { %v3811_v32 = vpop.eup %2845 }
 0x54d   : > { %2059 = vadd.xlane.f32.xlu0 %v3811_v32 }
 0x54e   : > { %v3814_v33 = vpop.eup %2847  ;;  %v1984_v34 = vpop.xlane.xlu0 %1983 }
 0x54f   : > { %v2003_v37 = vsub.f32 %v3769_v61, %v1984_v34  ;;  %2061 = vadd.xlane.f32.xlu1 %v3814_v33 }
 0x550   : > { %v3818_v38 = vpop.eup %2849  ;;  %v1986_v0 = vpop.xlane.xlu1 %1985 }
 0x551   : > { %v2031_v57 = vmul.f32 1.442695, %v2003_v37  ;;  %v2004_v39 = vsub.f32 %v3771_v63, %v1986_v0  ;;  %2055 = vadd.xlane.f32.xlu0 %v3818_v38 }
 0x552   : > { %v3822_v58 = vpop.eup %2851  ;;  %v1988_v40 = vpop.xlane.xlu0 %1987 }
 0x553   : > { %2853 = vpow2.f32 %v2031_v57  ;;  %v2033_v59 = vmul.f32 1.442695, %v2004_v39  ;;  %v2005_v41 = vsub.f32 %v3774_v43, %v1988_v40  ;;  %2057 = vadd.xlane.f32.xlu1 %v3822_v58 }
 0x554   : > { %v1990_v60 = vpop.xlane.xlu1 %1989 }
 0x555   : > { %2855 = vpow2.f32 %v2033_v59  ;;  %v2035_v42 = vmul.f32 1.442695, %v2005_v41  ;;  %v2006_v61 = vsub.f32 %v3777_v1, %v1990_v60 }
 0x557   : > { %2857 = vpow2.f32 %v2035_v42  ;;  %v2037_v35 = vmul.f32 1.442695, %v2006_v61 }
 0x559   : > { %2859 = vpow2.f32 %v2037_v35 }
 0x55d   : > { %v3827_v62 = vpop.eup %2853 }
 0x55e   : > { %2063 = vadd.xlane.f32.xlu0 %v3827_v62 }
 0x55f   : > { %v3830_v63 = vpop.eup %2855 }
 0x560   : > { %2065 = vadd.xlane.f32.xlu1 %v3830_v63 }
 0x561   : > { %v3833_v43 = vpop.eup %2857 }
 0x562   : > { %2067 = vadd.xlane.f32.xlu0 %v3833_v43 }
 0x563   : > { %v3836_v44 = vpop.eup %2859 }
 0x564   : > { %2069 = vadd.xlane.f32.xlu1 %v3836_v44 }
 0x5ba   : > { %v2044_v1 = vpop.xlane.xlu0 %2043 }
 0x5bb   : > { %2861 = vrcp.f32 %v2044_v1 }
 0x5be   : > { %v2046_v2 = vpop.xlane.xlu1 %2045  ;;  %v2040_v3 = vpop.xlane.xlu0 %2039 }
 0x5bf   : > { %2863 = vrcp.f32 %v2046_v2 }
 0x5c0   : > { %2865 = vrcp.f32 %v2040_v3 }
 0x5c2   : > { %v2042_v45 = vpop.xlane.xlu1 %2041 }
 0x5c3   : > { %2867 = vrcp.f32 %v2042_v45 }
 0x5c5   : > { %v2862_v4 = vpop.eup %2861 }
 0x5c6   : > { %v2089_v36 = vmul.f32 %v2862_v4, %v3781_v9 }
 0x5c8   : > { %2105 = vst [vmem:[%s3841_s13 + $0x10] sm:$0xff] %v2089_v36 }
 0x5c9   : > { %v2864_v5 = vpop.eup %2863 }
 0x5ca   : > { %v2866_v6 = vpop.eup %2865  ;;  %v2090_v46 = vmul.f32 %v2864_v5, %v3786_v12  ;;  %v2052_v7 = vpop.xlane.xlu0 %2051 }
 0x5cb   : > { %v2087_v47 = vmul.f32 %v2866_v6, %v3784_v49  ;;  %2869 = vrcp.f32 %v2052_v7 }
 0x5cc   : > { %2106 = vst [vmem:[%s3841_s13 + $0x18] sm:$0xff] %v2090_v46  ;;  %v2054_v8 = vpop.xlane.xlu1 %2053 }
 0x5cd   : > { %v2868_v9 = vpop.eup %2867  ;;  %2103 = vst [vmem:[%s3841_s13] sm:$0xff] %v2087_v47  ;;  %2871 = vrcp.f32 %v2054_v8 }
 0x5ce   : > { %v2088_v48 = vmul.f32 %v2868_v9, %v3791_v16  ;;  %v2048_v10 = vpop.xlane.xlu0 %2047 }
 0x5cf   : > { %2873 = vrcp.f32 %v2048_v10 }
 0x5d0   : > { %2104 = vst [vmem:[%s3841_s13 + $0x8] sm:$0xff] %v2088_v48  ;;  %v2050_v11 = vpop.xlane.xlu1 %2049 }
 0x5d1   : > { %2875 = vrcp.f32 %v2050_v11 }
 0x5d5   : > { %v2870_v12 = vpop.eup %2869 }
 0x5d6   : > { %v2093_v49 = vmul.f32 %v2870_v12, %v3795_v54 }
 0x5d7   : > { %v2872_v50 = vpop.eup %2871 }
 0x5d8   : > { %2109 = vst [vmem:[%s3841_s13 + $0x30] sm:$0xff] %v2093_v49  ;;  %v2094_v13 = vmul.f32 %v2872_v50, %v3798_v56 }
 0x5d9   : > { %v2874_v51 = vpop.eup %2873 }
 0x5da   : > { %2110 = vst [vmem:[%s3841_s13 + $0x38] sm:$0xff] %v2094_v13  ;;  %v2091_v14 = vmul.f32 %v2874_v51, %v3802_v21  ;;  %v2060_v52 = vpop.xlane.xlu0 %2059 }
 0x5db   : > { %v2876_v15 = vpop.eup %2875  ;;  %2877 = vrcp.f32 %v2060_v52 }
 0x5dc   : > { %2107 = vst [vmem:[%s3841_s13 + $0x20] sm:$0xff] %v2091_v14  ;;  %v2092_v16 = vmul.f32 %v2876_v15, %v3806_v25  ;;  %v2062_v53 = vpop.xlane.xlu1 %2061 }
 0x5dd   : > { %2879 = vrcp.f32 %v2062_v53 }
 0x5de   : > { %2108 = vst [vmem:[%s3841_s13 + $0x28] sm:$0xff] %v2092_v16  ;;  %v2056_v17 = vpop.xlane.xlu0 %2055 }
 0x5df   : > { %2881 = vrcp.f32 %v2056_v17 }
 0x5e0   : > { %v2058_v18 = vpop.xlane.xlu1 %2057 }
 0x5e1   : > { %2883 = vrcp.f32 %v2058_v18 }
 0x5e5   : > { %v2878_v54 = vpop.eup %2877 }
 0x5e6   : > { %v2097_v55 = vmul.f32 %v2878_v54, %v3811_v32 }
 0x5e7   : > { %v2880_v56 = vpop.eup %2879 }
 0x5e8   : > { %2113 = vst [vmem:[%s3841_s13 + $0x50] sm:$0xff] %v2097_v55  ;;  %v2098_v19 = vmul.f32 %v2880_v56, %v3814_v33 }
 0x5e9   : > { %v2882_v20 = vpop.eup %2881 }
 0x5ea   : > { %2114 = vst [vmem:[%s3841_s13 + $0x58] sm:$0xff] %v2098_v19  ;;  %v2095_v21 = vmul.f32 %v2882_v20, %v3818_v38 }
 0x5eb   : > { %v2884_v22 = vpop.eup %2883  ;;  %v2064_v23 = vpop.xlane.xlu0 %2063 }
 0x5ec   : > { %2111 = vst [vmem:[%s3841_s13 + $0x40] sm:$0xff] %v2095_v21  ;;  %v2096_v24 = vmul.f32 %v2884_v22, %v3822_v58  ;;  %2885 = vrcp.f32 %v2064_v23 }
 0x5ed   : > { %v2066_v25 = vpop.xlane.xlu1 %2065 }
 0x5ee   : > { %2112 = vst [vmem:[%s3841_s13 + $0x48] sm:$0xff] %v2096_v24  ;;  %2887 = vrcp.f32 %v2066_v25 }
 0x5ef   : > { %v2068_v26 = vpop.xlane.xlu0 %2067 }
 0x5f0   : > { %2889 = vrcp.f32 %v2068_v26 }
 0x5f1   : > { %v2070_v27 = vpop.xlane.xlu1 %2069 }
 0x5f2   : > { %2891 = vrcp.f32 %v2070_v27 }
 0x5f6   : > { %v2886_v28 = vpop.eup %2885 }
 0x5f7   : > { %v2099_v29 = vmul.f32 %v2886_v28, %v3827_v62 }
 0x5f8   : > { %v2888_v30 = vpop.eup %2887 }
 0x5f9   : > { %2115 = vst [vmem:[%s3841_s13 + $0x60] sm:$0xff] %v2099_v29  ;;  %v2100_v31 = vmul.f32 %v2888_v30, %v3830_v63 }
 0x5fa   : > { %v2890_v32 = vpop.eup %2889 }
 0x5fb   : > { %2116 = vst [vmem:[%s3841_s13 + $0x68] sm:$0xff] %v2100_v31  ;;  %v2101_v33 = vmul.f32 %v2890_v32, %v3833_v43 }
 0x5fc   : > { %v2892_v34 = vpop.eup %2891 }
 0x5fd   : > { %2117 = vst [vmem:[%s3841_s13 + $0x70] sm:$0xff] %v2101_v33  ;;  %v2102_v37 = vmul.f32 %v2892_v34, %v3836_v44 }
 0x5ff   : > { %2118 = vst [vmem:[%s3841_s13 + $0x78] sm:$0xff] %v2102_v37 }
 0x600   : > { %3132 = shalt.err (!%p3129_p8)
}
 0x601   : > { %s3133_s17 = scalar_lea.hbm %s3876_s1, 2048  ;;  %s3137_s21 = scalar_lea.hbm %s3965_s16, 4096 }
 0x602   : > { %p3134_p3 = scmp.ne.s32.totalorder %s3876_s1, %s3133_s17  ;;  %p3138_p0 = scmp.lt.u32.totalorder %s3876_s1, %s3965_s16 }
 0x603   : > { %p3139_p1 = scmp.lt.u32.totalorder %s3137_s21, %s3133_s17  ;;  %p3141_p6 = scmp.lt.u32.totalorder %s3133_s17, %s3876_s1 }
 0x604   : > { %p3135_p12 = pnand %p3134_p3, %p3966_p5 }
 0x605   : > { %p3140_p7 = por %p3139_p1, %p3138_p0 }
 0x606   : > { %p3136_p13 = pneg %p3135_p12 }
 0x607   : > { %p3142_p10 = por %p3141_p6, %p3140_p7 }
 0x609   : > { %p3143_p11 = pnand %p3142_p10, %p3136_p13 }
 0x60b   : > { %3146 = shalt.err (!%p3143_p11)
}
 0x60c   : > { %s3233_s20 = smov 128   ;;  %s3234_s15 = smov 8  }
 0x60d   : > { %2574 = dma.vmem_to_hbm [thread:$0]  (%p3966_p5), %s3878_s23, 2048, %s3876_s1, %s2120_s19, %s3233_s20, %s3233_s20, %s3234_s15  }
 0x60e PF: > { %s2150_s18 = sand.u32 1, %s3197_s27   ;;  %p3967_p2 = scmp.ne.s32.totalorder %s3960_s14, 0 }
 0x60f   : > { %p3968_p4 = scmp.ge.s32.totalorder %s3217_s10, 2  ;;  %s2151_s11 = scalar_lea.sflag [#allocation7], %s2150_s18 }
 0x611   : > { %p2603_p9 = pnand %p3968_p4, %p3967_p2 }
 0x613   : > { %3192 = dma.done.wait (!%p2603_p9), %s2151_s11, 2048  }
 0x614   : > { %3194 = vsyncadd (!%p2603_p9), %s2151_s11, 4294965248  ;;  %s28_s10 = sadd.s32 1, %s3217_s10   ;;  %s3969_s27 = smov %s3201_s28 }
 0x615   : > { %p25_p8 = scmp.ge.s32.totalorder %s28_s10, 4   ;;  %s3970_s28 = smov %s3205_s29 }
 0x616   : > { %s3971_s29 = smov %s3529_s25  ;;  %s3972_s30 = smov %s3213_s9 }
 0x617   : > { %s3973_s9 = smov %s3975_s2  ;;  %27 = sbr.rel (!%p25_p8) target bundleno = 14 (0xe), region = 127 }
 0x61e   :  { %2156 = vsyncpa [#allocation6], 1 }
 0x61f   :  { %2158 = vsyncpa [#allocation6 + $0x1], 1 }
 0x620   :  { %2159 = vsyncpa [#allocation9], 1 }
 0x621   :  { %2160 = vsyncpa [#allocation12], 1 }
 0x622   :  { %2161 = vsyncpa [#allocation15], 1 }
 0x623   :  { %2162 = vsyncpa [#allocation18], 1 }
 0x624   :  { %2163 = vsyncpa [#allocation7], 1 }
 0x625   :  { %2165 = vsyncpa [#allocation7 + $0x1], 1 }

</bundles_post_ra>
